<compile_context>
chip_gen: v5e
topology: v5e:2x2
jax: 0.10.0
libtpu: 0.0.40
codegen_flags: <defaults>
</compile_context>

<pallas_src>
import functools

import jax
import jax.numpy as jnp
from jax.experimental import pallas as pl
from jax.experimental.pallas import tpu as pltpu


# ---------------------------------------------------------------------------
# Generation-aware VMEM budget (v5e/v6e: ~96 of 128 MiB; v7x: ~48 of 64 MiB)
# ---------------------------------------------------------------------------
_DEFAULT_VMEM_LIMIT = 48 * 1024 * 1024
_VMEM_FRACTION = 0.75


@functools.lru_cache(maxsize=None)
def _vmem_limit_bytes():
    try:
        info = pltpu.get_tpu_info()
        cap = int(getattr(info, "vmem_capacity_bytes", 0) or 0)
        if cap > 0:
            return int(_VMEM_FRACTION * cap)
    except Exception:
        pass
    return _DEFAULT_VMEM_LIMIT


def _compiler_params(semantics):
    return pltpu.CompilerParams(dimension_semantics=tuple(semantics),
                                vmem_limit_bytes=_vmem_limit_bytes())


def _round_up(n, m):
    return ((n + m - 1) // m) * m


def _pick_tile(n, preferred, align):
    """Largest `align`-multiple divisor of n that is <= preferred (or n)."""
    if n <= preferred:
        return n
    t = (preferred // align) * align
    while t >= align:
        if n % t == 0:
            return t
        t -= align
    return n


def _head_vocab_tile(v):
    # 128-aligned vocab tile; the head weight/logits are PADDED to a multiple
    # of this, so the final head stays tiled at any vocab size (e.g. 50257).
    return min(512, _round_up(v, 128))


def _weight_spec(shape):
    """Grid-invariant (fully VMEM-resident) weight spec; single-buffered when
    the installed JAX supports pipeline_mode=pl.Buffered."""
    nd = len(shape)
    idx_map = lambda *_: (0,) * nd
    if hasattr(pl, "Buffered"):
        try:
            return pl.BlockSpec(shape, idx_map, pipeline_mode=pl.Buffered(1))
        except TypeError:
            pass
    return pl.BlockSpec(shape, idx_map)


# ---------------------------------------------------------------------------
# In-kernel helpers (f32 math)
# ---------------------------------------------------------------------------
def _layernorm(x, scale, shift, eps=1e-5):
    mean = jnp.mean(x, axis=-1, keepdims=True)
    var = jnp.mean(jnp.square(x - mean), axis=-1, keepdims=True)   # unbiased=False
    inv = jax.lax.rsqrt(var + eps)                                  # EUP rsqrt
    return scale * ((x - mean) * inv) + shift


def _gelu_tanh(x):
    c = jnp.sqrt(jnp.float32(2.0 / jnp.pi))
    return 0.5 * x * (1.0 + jnp.tanh(c * (x + 0.044715 * x * x * x)))


# ---------------------------------------------------------------------------
# Kernel 1: LayerNorm1 + fused QKV projection, head-split output layout
# ---------------------------------------------------------------------------
def qkv_kernel(x_ref, ln_s_ref, ln_b_ref, wqkv_ref, q_ref, k_ref, v_ref):
    H = q_ref.shape[1]
    hd = q_ref.shape[3]
    D = x_ref.shape[2]
    x = x_ref[0].astype(jnp.float32)                       # (tt, D)
    xn = _layernorm(x, ln_s_ref[...], ln_b_ref[...]).astype(jnp.bfloat16)
    # One full-width (tt,D)x(D,3D) MXU matmul (1/sqrt(hd) folded into Wq).
    y = jnp.dot(xn, wqkv_ref[...],
                preferred_element_type=jnp.float32).astype(jnp.bfloat16)
    # Write Q/K/V directly in (H, tt, hd) layout: no XLA head-split transpose.
    for h in range(H):
        q_ref[0, h] = y[:, h * hd:(h + 1) * hd]
        k_ref[0, h] = y[:, D + h * hd:D + (h + 1) * hd]
        v_ref[0, h] = y[:, 2 * D + h * hd:2 * D + (h + 1) * hd]


def qkv_proj(x, ln_s, ln_b, w_qkv, num_heads, *, tile_t):
    B, T, D = x.shape
    hd = D // num_heads
    x_spec = pl.BlockSpec((1, tile_t, D), lambda b, t: (b, t, 0))
    qkv_spec = pl.BlockSpec((1, num_heads, tile_t, hd), lambda b, t: (b, 0, t, 0))
    out_sds = jax.ShapeDtypeStruct((B, num_heads, T, hd), jnp.bfloat16)
    return pl.pallas_call(
        qkv_kernel,
        out_shape=(out_sds, out_sds, out_sds),
        grid=(B, T // tile_t),
        in_specs=[x_spec, _weight_spec(ln_s.shape), _weight_spec(ln_b.shape),
                  _weight_spec(w_qkv.shape)],
        out_specs=(qkv_spec, qkv_spec, qkv_spec),
        compiler_params=_compiler_params(("parallel", "parallel")),
    )(x, ln_s, ln_b, w_qkv)


# ---------------------------------------------------------------------------
# Kernel 2: flash-style causal attention + out-proj + bias + residual
# ---------------------------------------------------------------------------
def attn_kernel(x_ref, q_ref, k_ref, v_ref, wo_ref, bo_ref, o_ref,
                m_sc, l_sc, acc_sc):
    qi = pl.program_id(1)
    ki = pl.program_id(2)
    nk = pl.num_programs(2)

    @pl.when(ki == 0)
    def _init():
        m_sc[...] = jnp.full_like(m_sc, -1e30)
        l_sc[...] = jnp.zeros_like(l_sc)
        acc_sc[...] = jnp.zeros_like(acc_sc)

    @pl.when(ki <= qi)                      # causal skip of future KV tiles
    def _compute():
        q = q_ref[0]                        # (H, tq, hd) bf16, pre-scaled
        k = k_ref[0]                        # (H, tk, hd) bf16
        v = v_ref[0]                        # (H, tk, hd) bf16
        tq = q.shape[1]
        tk = k.shape[1]
        s = jnp.einsum('hqd,hkd->hqk', q, k,
                       preferred_element_type=jnp.float32)          # (H,tq,tk)
        row = jax.lax.broadcasted_iota(jnp.int32, (tq, tk), 0) + qi * tq
        col = jax.lax.broadcasted_iota(jnp.int32, (tq, tk), 1) + ki * tk
        s = jnp.where((col <= row)[None, :, :], s, jnp.float32(-1e30))

        m_prev = m_sc[...]
        m_new = jnp.maximum(m_prev, jnp.max(s, axis=-1, keepdims=True))
        alpha = jnp.exp(m_prev - m_new)
        p = jnp.exp(s - m_new)
        l_sc[...] = alpha * l_sc[...] + jnp.sum(p, axis=-1, keepdims=True)
        acc_sc[...] = alpha * acc_sc[...] + jnp.einsum(
            'hqk,hkd->hqd', p.astype(jnp.bfloat16), v,
            preferred_element_type=jnp.float32)
        m_sc[...] = m_new

    @pl.when(ki == nk - 1)
    def _finalize():
        ctx = (acc_sc[...] * pl.reciprocal(l_sc[...], approx=True)
               ).astype(jnp.bfloat16)                               # (H,tq,hd)
        # Out-projection folded in: sum_h ctx_h @ wo_h  -> (tq, D), lane-dense.
        # TODO(synk): head-packed K layout ((H,hd,T)) would widen MXU N/K
        # toward 256 on v6e/v7x for the score/PV matmuls.
        attn_out = jnp.einsum('hqd,hdo->hqo', ctx, wo_ref[...],
                              preferred_element_type=jnp.float32).sum(axis=0)
        x = x_ref[0].astype(jnp.float32)
        o_ref[0] = (x + attn_out + bo_ref[...]).astype(o_ref.dtype)


def flash_attention(x, q, k, v, wo_r, bo, *, tile_a):
    B, H, T, hd = q.shape
    D = x.shape[-1]
    nq = T // tile_a
    nk = T // tile_a
    x_spec = pl.BlockSpec((1, tile_a, D), lambda b, qi, ki: (b, qi, 0))
    q_spec = pl.BlockSpec((1, H, tile_a, hd), lambda b, qi, ki: (b, 0, qi, 0))
    # Clamp the kv block index past the diagonal so the skipped tiles are not
    # even DMA'd (Pallas only re-fetches when the block index changes).
    kv_spec = pl.BlockSpec((1, H, tile_a, hd),
                           lambda b, qi, ki: (b, 0, jnp.minimum(ki, qi), 0))
    o_spec = pl.BlockSpec((1, tile_a, D), lambda b, qi, ki: (b, qi, 0))
    return pl.pallas_call(
        attn_kernel,
        out_shape=jax.ShapeDtypeStruct((B, T, D), jnp.bfloat16),
        grid=(B, nq, nk),
        in_specs=[x_spec, q_spec, kv_spec, kv_spec,
                  _weight_spec(wo_r.shape), _weight_spec(bo.shape)],
        out_specs=o_spec,
        scratch_shapes=[pltpu.VMEM((H, tile_a, 1), jnp.float32),
                        pltpu.VMEM((H, tile_a, 1), jnp.float32),
                        pltpu.VMEM((H, tile_a, hd), jnp.float32)],
        compiler_params=_compiler_params(("parallel", "parallel", "arbitrary")),
    )(x, q, k, v, wo_r, bo)


# ---------------------------------------------------------------------------
# Kernel 3: LayerNorm2 + FFN (GELU) + residual
# ---------------------------------------------------------------------------
def block_tail_kernel(h_ref, ln2_s_ref, ln2_b_ref, w1_ref, b1_ref,
                      w2_ref, b2_ref, o_ref):
    h = h_ref[0].astype(jnp.float32)                       # (tt, D)
    hn = _layernorm(h, ln2_s_ref[...], ln2_b_ref[...]).astype(jnp.bfloat16)
    # TODO(synk): K-tile w1/w2 over the 4*D hidden dim (extra "arbitrary" grid
    # axis + f32 accumulator) for emb_dim >= ~1280 so FFN weights fit v7x VMEM.
    a1 = jnp.dot(hn, w1_ref[...],
                 preferred_element_type=jnp.float32) + b1_ref[...]
    a1 = _gelu_tanh(a1).astype(jnp.bfloat16)
    ff = jnp.dot(a1, w2_ref[...],
                 preferred_element_type=jnp.float32) + b2_ref[...]
    o_ref[0] = (h + ff).astype(o_ref.dtype)                # residual (p=0 dropout)


def block_tail(h, ln2_s, ln2_b, w1, b1, w2, b2, *, tile_t):
    B, T, D = h.shape
    spec = pl.BlockSpec((1, tile_t, D), lambda b, t: (b, t, 0))
    weights = [ln2_s, ln2_b, w1, b1, w2, b2]
    return pl.pallas_call(
        block_tail_kernel,
        out_shape=jax.ShapeDtypeStruct((B, T, D), jnp.bfloat16),
        grid=(B, T // tile_t),
        in_specs=[spec] + [_weight_spec(w.shape) for w in weights],
        out_specs=spec,
        compiler_params=_compiler_params(("parallel", "parallel")),
    )(h, *weights)


# ---------------------------------------------------------------------------
# Final LayerNorm + output head: flattened rows, padded+tiled vocab, bf16 out
# ---------------------------------------------------------------------------
def head_kernel(x_ref, ln_s_ref, ln_b_ref, w_ref, o_ref):
    x = x_ref[...].astype(jnp.float32)                     # (tr, D)
    xn = _layernorm(x, ln_s_ref[...], ln_b_ref[...]).astype(jnp.bfloat16)
    o_ref[...] = jnp.dot(xn, w_ref[...],
                         preferred_element_type=jnp.float32).astype(o_ref.dtype)


def final_head(x2, ln_s, ln_b, w_out_pad, *, tile_r, tile_v, out_dtype):
    R, D = x2.shape
    Vp = w_out_pad.shape[1]
    x_spec = pl.BlockSpec((tile_r, D), lambda r, v: (r, 0))
    w_spec = pl.BlockSpec((D, tile_v), lambda r, v: (0, v))
    o_spec = pl.BlockSpec((tile_r, tile_v), lambda r, v: (r, v))
    return pl.pallas_call(
        head_kernel,
        out_shape=jax.ShapeDtypeStruct((R, Vp), out_dtype),
        grid=(R // tile_r, Vp // tile_v),               # vocab innermost
        in_specs=[x_spec, _weight_spec(ln_s.shape), _weight_spec(ln_b.shape),
                  w_spec],
        out_specs=o_spec,
        compiler_params=_compiler_params(("parallel", "parallel")),
    )(x2, ln_s, ln_b, w_out_pad)


# ---------------------------------------------------------------------------
# Parameter init (f32, PyTorch-like) + bf16 weight prep
# ---------------------------------------------------------------------------
def init_params(key, cfg):
    D, V, C = cfg['emb_dim'], cfg['vocab_size'], cfg['context_length']
    std = 0.02
    keys = jax.random.split(key, 3 + cfg['n_layers'])
    params = {
        'tok_emb': jax.random.normal(keys[0], (V, D), jnp.float32) * std,
        'pos_emb': jax.random.normal(keys[1], (C, D), jnp.float32) * std,
        'out_head': jax.random.normal(keys[2], (D, V), jnp.float32) * std,
        'ln_f_scale': jnp.ones((1, D), jnp.float32),
        'ln_f_shift': jnp.zeros((1, D), jnp.float32),
        'blocks': [],
    }
    for i in range(cfg['n_layers']):
        k = jax.random.split(keys[3 + i], 6)
        params['blocks'].append({
            'ln1_s': jnp.ones((1, D), jnp.float32),
            'ln1_b': jnp.zeros((1, D), jnp.float32),
            'wq': jax.random.normal(k[0], (D, D), jnp.float32) * std,
            'wk': jax.random.normal(k[1], (D, D), jnp.float32) * std,
            'wv': jax.random.normal(k[2], (D, D), jnp.float32) * std,
            'wo': jax.random.normal(k[3], (D, D), jnp.float32) * std,
            'bo': jnp.zeros((1, D), jnp.float32),
            'ln2_s': jnp.ones((1, D), jnp.float32),
            'ln2_b': jnp.zeros((1, D), jnp.float32),
            'w1': jax.random.normal(k[4], (D, 4 * D), jnp.float32) * std,
            'b1': jnp.zeros((1, 4 * D), jnp.float32),
            'w2': jax.random.normal(k[5], (4 * D, D), jnp.float32) * std,
            'b2': jnp.zeros((1, D), jnp.float32),
        })
    return params


def prepare_params(params, cfg):
    """Cast matmul weights to bf16, fuse+scale QKV, reshape wo per-head, and
    pad the output head to a 128-aligned, tileable vocab width."""
    D, H = cfg['emb_dim'], cfg['n_heads']
    hd = D // H
    V = cfg['vocab_size']
    inv_sqrt_hd = 1.0 / (hd ** 0.5)
    bf16 = jnp.bfloat16

    tile_v = _head_vocab_tile(V)
    v_pad = _round_up(V, tile_v)
    w_out = params['out_head'].astype(bf16)
    w_out_pad = jnp.pad(w_out, ((0, 0), (0, v_pad - V)))   # zero padded cols

    prep = {
        'tok_emb': params['tok_emb'].astype(bf16),
        'pos_emb': params['pos_emb'].astype(bf16),
        'out_head': w_out_pad,                              # (D, V_pad) bf16
        'ln_f_scale': params['ln_f_scale'],
        'ln_f_shift': params['ln_f_shift'],
        'blocks': [],
    }
    # TODO(synk): optional fp8 weight path (per-channel scales) for v7x only.
    for blk in params['blocks']:
        w_qkv = jnp.concatenate(
            [blk['wq'] * inv_sqrt_hd, blk['wk'], blk['wv']], axis=1).astype(bf16)
        prep['blocks'].append({
            'ln1_s': blk['ln1_s'], 'ln1_b': blk['ln1_b'],
            'w_qkv': w_qkv,                                   # (D, 3D)
            'wo_r': blk['wo'].astype(bf16).reshape(H, hd, D),  # (H, hd, D)
            'bo': blk['bo'],
            'ln2_s': blk['ln2_s'], 'ln2_b': blk['ln2_b'],
            'w1': blk['w1'].astype(bf16), 'b1': blk['b1'],
            'w2': blk['w2'].astype(bf16), 'b2': blk['b2'],
        })
    return prep


# ---------------------------------------------------------------------------
# Full forward
# ---------------------------------------------------------------------------
def gpt_forward(in_idx, prep, cfg, logits_dtype=jnp.bfloat16):
    B, T = in_idx.shape
    D = cfg['emb_dim']
    V = cfg['vocab_size']

    big_vmem = _vmem_limit_bytes() >= 80 * 1024 * 1024
    tile_t = _pick_tile(T, 512 if big_vmem else 256, 8)     # LN/QKV/FFN tile
    tile_a = _pick_tile(T, 256, 8)                          # attention q/kv tile
    tile_v = _head_vocab_tile(V)                            # vocab tile (head)
    rows = B * T
    tile_r = _pick_tile(rows, 1024, 8)                      # head row tile

    # Embedding gather + positional add (plain-JAX glue), carried as bf16.
    x = (prep['tok_emb'][in_idx].astype(jnp.float32)
         + prep['pos_emb'][:T][None, :, :].astype(jnp.float32)).astype(jnp.bfloat16)
    # drop_emb: p = 0.0 -> identity

    for blk in prep['blocks']:
        q, k, v = qkv_proj(x, blk['ln1_s'], blk['ln1_b'], blk['w_qkv'],
                           cfg['n_heads'], tile_t=tile_t)
        x = flash_attention(x, q, k, v, blk['wo_r'], blk['bo'], tile_a=tile_a)
        x = block_tail(x, blk['ln2_s'], blk['ln2_b'], blk['w1'], blk['b1'],
                       blk['w2'], blk['b2'], tile_t=tile_t)

    x2 = x.reshape(rows, D)
    logits = final_head(x2, prep['ln_f_scale'], prep['ln_f_shift'],
                        prep['out_head'], tile_r=tile_r, tile_v=tile_v,
                        out_dtype=logits_dtype)
    return logits[:, :V].reshape(B, T, V)


if __name__ == "__main__":
    cfg = {
        'vocab_size': 64,
        'context_length': 8,
        'emb_dim': 32,
        'n_heads': 4,
        'n_layers': 2,
        'drop_rate': 0.0,
        'qkv_bias': False,
    }
    key = jax.random.PRNGKey(0)
    pkey, ikey = jax.random.split(key)
    params = init_params(pkey, cfg)
    prep = prepare_params(params, cfg)

    B, T = 2, 8
    in_idx = jax.random.randint(ikey, (B, T), 0, cfg['vocab_size'], dtype=jnp.int32)

    fwd = jax.jit(functools.partial(gpt_forward, prep=prep, cfg=cfg))
    logits = fwd(in_idx)
    jax.block_until_ready(logits)
    assert logits.shape == (B, T, cfg['vocab_size'])
    assert bool(jnp.all(jnp.isfinite(logits.astype(jnp.float32))))
    print("KERNEL_OK")
</pallas_src>

<mosaic_0001>
module attributes {stable_mosaic.version = 11 : i64} {
  func.func @qkv_kernel(%arg0: i32, %arg1: i32, %arg2: memref<1x8x32xbf16, #tpu.memory_space<vmem>>, %arg3: memref<1x32xf32, #tpu.memory_space<vmem>>, %arg4: memref<1x32xf32, #tpu.memory_space<vmem>>, %arg5: memref<32x96xbf16, #tpu.memory_space<vmem>>, %arg6: memref<1x4x8x8xbf16, #tpu.memory_space<vmem>>, %arg7: memref<1x4x8x8xbf16, #tpu.memory_space<vmem>>, %arg8: memref<1x4x8x8xbf16, #tpu.memory_space<vmem>>) attributes {dimension_semantics = [#tpu.dimension_semantics<parallel>, #tpu.dimension_semantics<parallel>], iteration_bounds = array<i64: 2, 1>, scalar_prefetch = 0 : i64, scratch_operands = 0 : i64, tpu.core_type = #tpu.core_type<tc>, window_params = [{transform_indices = @transform_0, window_bounds = array<i64: 1, 8, 32>}, {pipeline_mode = #tpu.pipeline_mode<synchronous>, transform_indices = @transform_1, window_bounds = array<i64: 1, 32>}, {pipeline_mode = #tpu.pipeline_mode<synchronous>, transform_indices = @transform_2, window_bounds = array<i64: 1, 32>}, {pipeline_mode = #tpu.pipeline_mode<synchronous>, transform_indices = @transform_3, window_bounds = array<i64: 32, 96>}, {transform_indices = @transform_4, window_bounds = array<i64: 1, 4, 8, 8>}, {transform_indices = @transform_5, window_bounds = array<i64: 1, 4, 8, 8>}, {transform_indices = @transform_6, window_bounds = array<i64: 1, 4, 8, 8>}]} {
    %c0 = arith.constant 0 : index
    %c0_0 = arith.constant 0 : index
    %c0_1 = arith.constant 0 : index
    %0 = vector.load %arg2[%c0, %c0_0, %c0_1] : memref<1x8x32xbf16, #tpu.memory_space<vmem>>, vector<1x8x32xbf16>
    %1 = vector.shape_cast %0 : vector<1x8x32xbf16> to vector<8x32xbf16>
    %2 = arith.extf %1 : vector<8x32xbf16> to vector<8x32xf32>
    %c0_2 = arith.constant 0 : index
    %c0_3 = arith.constant 0 : index
    %3 = vector.load %arg3[%c0_2, %c0_3] : memref<1x32xf32, #tpu.memory_space<vmem>>, vector<1x32xf32>
    %c0_4 = arith.constant 0 : index
    %c0_5 = arith.constant 0 : index
    %4 = vector.load %arg4[%c0_4, %c0_5] : memref<1x32xf32, #tpu.memory_space<vmem>>, vector<1x32xf32>
    %cst = arith.constant dense<0.000000e+00> : vector<8xf32>
    %5 = vector.multi_reduction <add>, %2, %cst [1] : vector<8x32xf32> to vector<8xf32>
    %6 = vector.shape_cast %5 : vector<8xf32> to vector<8x1xf32>
    %cst_6 = arith.constant 3.200000e+01 : f32
    %7 = vector.broadcast %cst_6 : f32 to vector<8x1xf32>
    %8 = arith.divf %6, %7 : vector<8x1xf32>
    %9 = vector.broadcast %8 : vector<8x1xf32> to vector<8x32xf32>
    %10 = arith.subf %2, %9 : vector<8x32xf32>
    %11 = arith.mulf %10, %10 : vector<8x32xf32>
    %cst_7 = arith.constant dense<0.000000e+00> : vector<8xf32>
    %12 = vector.multi_reduction <add>, %11, %cst_7 [1] : vector<8x32xf32> to vector<8xf32>
    %13 = vector.shape_cast %12 : vector<8xf32> to vector<8x1xf32>
    %cst_8 = arith.constant 3.200000e+01 : f32
    %14 = vector.broadcast %cst_8 : f32 to vector<8x1xf32>
    %15 = arith.divf %13, %14 : vector<8x1xf32>
    %cst_9 = arith.constant 9.99999974E-6 : f32
    %16 = vector.broadcast %cst_9 : f32 to vector<8x1xf32>
    %17 = arith.addf %15, %16 : vector<8x1xf32>
    %18 = math.rsqrt %17 : vector<8x1xf32>
    %19 = vector.broadcast %8 : vector<8x1xf32> to vector<8x32xf32>
    %20 = arith.subf %2, %19 : vector<8x32xf32>
    %21 = vector.broadcast %18 : vector<8x1xf32> to vector<8x32xf32>
    %22 = arith.mulf %20, %21 : vector<8x32xf32>
    %23 = vector.broadcast %3 : vector<1x32xf32> to vector<8x32xf32>
    %24 = arith.mulf %23, %22 : vector<8x32xf32>
    %25 = vector.broadcast %4 : vector<1x32xf32> to vector<8x32xf32>
    %26 = arith.addf %24, %25 : vector<8x32xf32>
    %27 = arith.truncf %26 : vector<8x32xf32> to vector<8x32xbf16>
    %c0_10 = arith.constant 0 : index
    %c0_11 = arith.constant 0 : index
    %28 = vector.load %arg5[%c0_10, %c0_11] : memref<32x96xbf16, #tpu.memory_space<vmem>>, vector<32x96xbf16>
    %cst_12 = arith.constant dense<0.000000e+00> : vector<8x96xf32>
    %29 = tpu.matmul %27, %28, %cst_12 {dimension_numbers = #tpu.dot_dimension_numbers<[1], [0], [0], [1], [0, 0, 1, 1], [], []>} : vector<8x32xbf16>, vector<32x96xbf16>, vector<8x96xf32> -> vector<8x96xf32>
    %30 = arith.truncf %29 : vector<8x96xf32> to vector<8x96xbf16>
    %31 = vector.extract_strided_slice %30 {offsets = [0, 0], sizes = [8, 8], strides = [1, 1]} : vector<8x96xbf16> to vector<8x8xbf16>
    %c0_13 = arith.constant 0 : index
    %c0_14 = arith.constant 0 : index
    %c0_15 = arith.constant 0 : index
    %c0_16 = arith.constant 0 : index
    %32 = vector.load %arg6[%c0_13, %c0_14, %c0_15, %c0_16] : memref<1x4x8x8xbf16, #tpu.memory_space<vmem>>, vector<1x1x8x8xbf16>
    %33 = vector.shape_cast %32 : vector<1x1x8x8xbf16> to vector<8x8xbf16>
    %34 = vector.shape_cast %31 : vector<8x8xbf16> to vector<1x1x8x8xbf16>
    tpu.vector_store %arg6[%c0_13, %c0_14, %c0_15, %c0_16], %34 {strides = array<i32>} : memref<1x4x8x8xbf16, #tpu.memory_space<vmem>>, vector<1x1x8x8xbf16>,
    %35 = vector.extract_strided_slice %30 {offsets = [0, 32], sizes = [8, 8], strides = [1, 1]} : vector<8x96xbf16> to vector<8x8xbf16>
    %c0_17 = arith.constant 0 : index
    %c0_18 = arith.constant 0 : index
    %c0_19 = arith.constant 0 : index
    %c0_20 = arith.constant 0 : index
    %36 = vector.load %arg7[%c0_17, %c0_18, %c0_19, %c0_20] : memref<1x4x8x8xbf16, #tpu.memory_space<vmem>>, vector<1x1x8x8xbf16>
    %37 = vector.shape_cast %36 : vector<1x1x8x8xbf16> to vector<8x8xbf16>
    %38 = vector.shape_cast %35 : vector<8x8xbf16> to vector<1x1x8x8xbf16>
    tpu.vector_store %arg7[%c0_17, %c0_18, %c0_19, %c0_20], %38 {strides = array<i32>} : memref<1x4x8x8xbf16, #tpu.memory_space<vmem>>, vector<1x1x8x8xbf16>,
    %39 = vector.extract_strided_slice %30 {offsets = [0, 64], sizes = [8, 8], strides = [1, 1]} : vector<8x96xbf16> to vector<8x8xbf16>
    %c0_21 = arith.constant 0 : index
    %c0_22 = arith.constant 0 : index
    %c0_23 = arith.constant 0 : index
    %c0_24 = arith.constant 0 : index
    %40 = vector.load %arg8[%c0_21, %c0_22, %c0_23, %c0_24] : memref<1x4x8x8xbf16, #tpu.memory_space<vmem>>, vector<1x1x8x8xbf16>
    %41 = vector.shape_cast %40 : vector<1x1x8x8xbf16> to vector<8x8xbf16>
    %42 = vector.shape_cast %39 : vector<8x8xbf16> to vector<1x1x8x8xbf16>
    tpu.vector_store %arg8[%c0_21, %c0_22, %c0_23, %c0_24], %42 {strides = array<i32>} : memref<1x4x8x8xbf16, #tpu.memory_space<vmem>>, vector<1x1x8x8xbf16>,
    %43 = vector.extract_strided_slice %30 {offsets = [0, 8], sizes = [8, 8], strides = [1, 1]} : vector<8x96xbf16> to vector<8x8xbf16>
    %c0_25 = arith.constant 0 : index
    %c1 = arith.constant 1 : index
    %c0_26 = arith.constant 0 : index
    %c0_27 = arith.constant 0 : index
    %44 = vector.load %arg6[%c0_25, %c1, %c0_26, %c0_27] : memref<1x4x8x8xbf16, #tpu.memory_space<vmem>>, vector<1x1x8x8xbf16>
    %45 = vector.shape_cast %44 : vector<1x1x8x8xbf16> to vector<8x8xbf16>
    %46 = vector.shape_cast %43 : vector<8x8xbf16> to vector<1x1x8x8xbf16>
    tpu.vector_store %arg6[%c0_25, %c1, %c0_26, %c0_27], %46 {strides = array<i32>} : memref<1x4x8x8xbf16, #tpu.memory_space<vmem>>, vector<1x1x8x8xbf16>,
    %47 = vector.extract_strided_slice %30 {offsets = [0, 40], sizes = [8, 8], strides = [1, 1]} : vector<8x96xbf16> to vector<8x8xbf16>
    %c0_28 = arith.constant 0 : index
    %c1_29 = arith.constant 1 : index
    %c0_30 = arith.constant 0 : index
    %c0_31 = arith.constant 0 : index
    %48 = vector.load %arg7[%c0_28, %c1_29, %c0_30, %c0_31] : memref<1x4x8x8xbf16, #tpu.memory_space<vmem>>, vector<1x1x8x8xbf16>
    %49 = vector.shape_cast %48 : vector<1x1x8x8xbf16> to vector<8x8xbf16>
    %50 = vector.shape_cast %47 : vector<8x8xbf16> to vector<1x1x8x8xbf16>
    tpu.vector_store %arg7[%c0_28, %c1_29, %c0_30, %c0_31], %50 {strides = array<i32>} : memref<1x4x8x8xbf16, #tpu.memory_space<vmem>>, vector<1x1x8x8xbf16>,
    %51 = vector.extract_strided_slice %30 {offsets = [0, 72], sizes = [8, 8], strides = [1, 1]} : vector<8x96xbf16> to vector<8x8xbf16>
    %c0_32 = arith.constant 0 : index
    %c1_33 = arith.constant 1 : index
    %c0_34 = arith.constant 0 : index
    %c0_35 = arith.constant 0 : index
    %52 = vector.load %arg8[%c0_32, %c1_33, %c0_34, %c0_35] : memref<1x4x8x8xbf16, #tpu.memory_space<vmem>>, vector<1x1x8x8xbf16>
    %53 = vector.shape_cast %52 : vector<1x1x8x8xbf16> to vector<8x8xbf16>
    %54 = vector.shape_cast %51 : vector<8x8xbf16> to vector<1x1x8x8xbf16>
    tpu.vector_store %arg8[%c0_32, %c1_33, %c0_34, %c0_35], %54 {strides = array<i32>} : memref<1x4x8x8xbf16, #tpu.memory_space<vmem>>, vector<1x1x8x8xbf16>,
    %55 = vector.extract_strided_slice %30 {offsets = [0, 16], sizes = [8, 8], strides = [1, 1]} : vector<8x96xbf16> to vector<8x8xbf16>
    %c0_36 = arith.constant 0 : index
    %c2 = arith.constant 2 : index
    %c0_37 = arith.constant 0 : index
    %c0_38 = arith.constant 0 : index
    %56 = vector.load %arg6[%c0_36, %c2, %c0_37, %c0_38] : memref<1x4x8x8xbf16, #tpu.memory_space<vmem>>, vector<1x1x8x8xbf16>
    %57 = vector.shape_cast %56 : vector<1x1x8x8xbf16> to vector<8x8xbf16>
    %58 = vector.shape_cast %55 : vector<8x8xbf16> to vector<1x1x8x8xbf16>
    tpu.vector_store %arg6[%c0_36, %c2, %c0_37, %c0_38], %58 {strides = array<i32>} : memref<1x4x8x8xbf16, #tpu.memory_space<vmem>>, vector<1x1x8x8xbf16>,
    %59 = vector.extract_strided_slice %30 {offsets = [0, 48], sizes = [8, 8], strides = [1, 1]} : vector<8x96xbf16> to vector<8x8xbf16>
    %c0_39 = arith.constant 0 : index
    %c2_40 = arith.constant 2 : index
    %c0_41 = arith.constant 0 : index
    %c0_42 = arith.constant 0 : index
    %60 = vector.load %arg7[%c0_39, %c2_40, %c0_41, %c0_42] : memref<1x4x8x8xbf16, #tpu.memory_space<vmem>>, vector<1x1x8x8xbf16>
    %61 = vector.shape_cast %60 : vector<1x1x8x8xbf16> to vector<8x8xbf16>
    %62 = vector.shape_cast %59 : vector<8x8xbf16> to vector<1x1x8x8xbf16>
    tpu.vector_store %arg7[%c0_39, %c2_40, %c0_41, %c0_42], %62 {strides = array<i32>} : memref<1x4x8x8xbf16, #tpu.memory_space<vmem>>, vector<1x1x8x8xbf16>,
    %63 = vector.extract_strided_slice %30 {offsets = [0, 80], sizes = [8, 8], strides = [1, 1]} : vector<8x96xbf16> to vector<8x8xbf16>
    %c0_43 = arith.constant 0 : index
    %c2_44 = arith.constant 2 : index
    %c0_45 = arith.constant 0 : index
    %c0_46 = arith.constant 0 : index
    %64 = vector.load %arg8[%c0_43, %c2_44, %c0_45, %c0_46] : memref<1x4x8x8xbf16, #tpu.memory_space<vmem>>, vector<1x1x8x8xbf16>
    %65 = vector.shape_cast %64 : vector<1x1x8x8xbf16> to vector<8x8xbf16>
    %66 = vector.shape_cast %63 : vector<8x8xbf16> to vector<1x1x8x8xbf16>
    tpu.vector_store %arg8[%c0_43, %c2_44, %c0_45, %c0_46], %66 {strides = array<i32>} : memref<1x4x8x8xbf16, #tpu.memory_space<vmem>>, vector<1x1x8x8xbf16>,
    %67 = vector.extract_strided_slice %30 {offsets = [0, 24], sizes = [8, 8], strides = [1, 1]} : vector<8x96xbf16> to vector<8x8xbf16>
    %c0_47 = arith.constant 0 : index
    %c3 = arith.constant 3 : index
    %c0_48 = arith.constant 0 : index
    %c0_49 = arith.constant 0 : index
    %68 = vector.load %arg6[%c0_47, %c3, %c0_48, %c0_49] : memref<1x4x8x8xbf16, #tpu.memory_space<vmem>>, vector<1x1x8x8xbf16>
    %69 = vector.shape_cast %68 : vector<1x1x8x8xbf16> to vector<8x8xbf16>
    %70 = vector.shape_cast %67 : vector<8x8xbf16> to vector<1x1x8x8xbf16>
    tpu.vector_store %arg6[%c0_47, %c3, %c0_48, %c0_49], %70 {strides = array<i32>} : memref<1x4x8x8xbf16, #tpu.memory_space<vmem>>, vector<1x1x8x8xbf16>,
    %71 = vector.extract_strided_slice %30 {offsets = [0, 56], sizes = [8, 8], strides = [1, 1]} : vector<8x96xbf16> to vector<8x8xbf16>
    %c0_50 = arith.constant 0 : index
    %c3_51 = arith.constant 3 : index
    %c0_52 = arith.constant 0 : index
    %c0_53 = arith.constant 0 : index
    %72 = vector.load %arg7[%c0_50, %c3_51, %c0_52, %c0_53] : memref<1x4x8x8xbf16, #tpu.memory_space<vmem>>, vector<1x1x8x8xbf16>
    %73 = vector.shape_cast %72 : vector<1x1x8x8xbf16> to vector<8x8xbf16>
    %74 = vector.shape_cast %71 : vector<8x8xbf16> to vector<1x1x8x8xbf16>
    tpu.vector_store %arg7[%c0_50, %c3_51, %c0_52, %c0_53], %74 {strides = array<i32>} : memref<1x4x8x8xbf16, #tpu.memory_space<vmem>>, vector<1x1x8x8xbf16>,
    %75 = vector.extract_strided_slice %30 {offsets = [0, 88], sizes = [8, 8], strides = [1, 1]} : vector<8x96xbf16> to vector<8x8xbf16>
    %c0_54 = arith.constant 0 : index
    %c3_55 = arith.constant 3 : index
    %c0_56 = arith.constant 0 : index
    %c0_57 = arith.constant 0 : index
    %76 = vector.load %arg8[%c0_54, %c3_55, %c0_56, %c0_57] : memref<1x4x8x8xbf16, #tpu.memory_space<vmem>>, vector<1x1x8x8xbf16>
    %77 = vector.shape_cast %76 : vector<1x1x8x8xbf16> to vector<8x8xbf16>
    %78 = vector.shape_cast %75 : vector<8x8xbf16> to vector<1x1x8x8xbf16>
    tpu.vector_store %arg8[%c0_54, %c3_55, %c0_56, %c0_57], %78 {strides = array<i32>} : memref<1x4x8x8xbf16, #tpu.memory_space<vmem>>, vector<1x1x8x8xbf16>,
    return
  }
  func.func @transform_0(%arg0: i32, %arg1: i32) -> (i32, i32, i32) {
    %c0_i32 = arith.constant 0 : i32
    %c0_i32_0 = arith.constant 0 : i32
    return %arg0, %arg1, %c0_i32 : i32, i32, i32
  }
  func.func @transform_1(%arg0: i32, %arg1: i32) -> (i32, i32) {
    %c0_i32 = arith.constant 0 : i32
    %c0_i32_0 = arith.constant 0 : i32
    %c0_i32_1 = arith.constant 0 : i32
    return %c0_i32, %c0_i32_0 : i32, i32
  }
  func.func @transform_2(%arg0: i32, %arg1: i32) -> (i32, i32) {
    %c0_i32 = arith.constant 0 : i32
    %c0_i32_0 = arith.constant 0 : i32
    %c0_i32_1 = arith.constant 0 : i32
    return %c0_i32, %c0_i32_0 : i32, i32
  }
  func.func @transform_3(%arg0: i32, %arg1: i32) -> (i32, i32) {
    %c0_i32 = arith.constant 0 : i32
    %c0_i32_0 = arith.constant 0 : i32
    %c0_i32_1 = arith.constant 0 : i32
    return %c0_i32, %c0_i32_0 : i32, i32
  }
  func.func @transform_4(%arg0: i32, %arg1: i32) -> (i32, i32, i32, i32) {
    %c0_i32 = arith.constant 0 : i32
    %c0_i32_0 = arith.constant 0 : i32
    %c0_i32_1 = arith.constant 0 : i32
    return %arg0, %c0_i32, %arg1, %c0_i32_0 : i32, i32, i32, i32
  }
  func.func @transform_5(%arg0: i32, %arg1: i32) -> (i32, i32, i32, i32) {
    %c0_i32 = arith.constant 0 : i32
    %c0_i32_0 = arith.constant 0 : i32
    %c0_i32_1 = arith.constant 0 : i32
    return %arg0, %c0_i32, %arg1, %c0_i32_0 : i32, i32, i32, i32
  }
  func.func @transform_6(%arg0: i32, %arg1: i32) -> (i32, i32, i32, i32) {
    %c0_i32 = arith.constant 0 : i32
    %c0_i32_0 = arith.constant 0 : i32
    %c0_i32_1 = arith.constant 0 : i32
    return %arg0, %c0_i32, %arg1, %c0_i32_0 : i32, i32, i32, i32
  }
}

module attributes {stable_mosaic.version = 11 : i64} {
  func.func @attn_kernel(%arg0: i32, %arg1: i32, %arg2: i32, %arg3: memref<1x8x32xbf16, #tpu.memory_space<vmem>>, %arg4: memref<1x4x8x8xbf16, #tpu.memory_space<vmem>>, %arg5: memref<1x4x8x8xbf16, #tpu.memory_space<vmem>>, %arg6: memref<1x4x8x8xbf16, #tpu.memory_space<vmem>>, %arg7: memref<4x8x32xbf16, #tpu.memory_space<vmem>>, %arg8: memref<1x32xf32, #tpu.memory_space<vmem>>, %arg9: memref<1x8x32xbf16, #tpu.memory_space<vmem>>, %arg10: memref<4x8x1xf32, #tpu.memory_space<vmem>>, %arg11: memref<4x8x1xf32, #tpu.memory_space<vmem>>, %arg12: memref<4x8x8xf32, #tpu.memory_space<vmem>>) attributes {dimension_semantics = [#tpu.dimension_semantics<parallel>, #tpu.dimension_semantics<parallel>, #tpu.dimension_semantics<arbitrary>], iteration_bounds = array<i64: 2, 1, 1>, scalar_prefetch = 0 : i64, scratch_operands = 3 : i64, tpu.core_type = #tpu.core_type<tc>, window_params = [{transform_indices = @transform_0, window_bounds = array<i64: 1, 8, 32>}, {transform_indices = @transform_1, window_bounds = array<i64: 1, 4, 8, 8>}, {transform_indices = @transform_2, window_bounds = array<i64: 1, 4, 8, 8>}, {transform_indices = @transform_3, window_bounds = array<i64: 1, 4, 8, 8>}, {pipeline_mode = #tpu.pipeline_mode<synchronous>, transform_indices = @transform_4, window_bounds = array<i64: 4, 8, 32>}, {pipeline_mode = #tpu.pipeline_mode<synchronous>, transform_indices = @transform_5, window_bounds = array<i64: 1, 32>}, {transform_indices = @transform_6, window_bounds = array<i64: 1, 8, 32>}]} {
    %c0_i32 = arith.constant 0 : i32
    %0 = arith.cmpi eq, %arg2, %c0_i32 : i32
    %1 = arith.extui %0 : i1 to i32
    %c0_i32_0 = arith.constant 0 : i32
    %2 = arith.cmpi ne, %1, %c0_i32_0 : i32
    scf.if %2 {
      %cst = arith.constant -1.000000e+30 : f32
      %9 = vector.broadcast %cst : f32 to vector<4x8x1xf32>
      %c0 = arith.constant 0 : index
      %c0_4 = arith.constant 0 : index
      %c0_5 = arith.constant 0 : index
      %10 = vector.load %arg10[%c0, %c0_4, %c0_5] : memref<4x8x1xf32, #tpu.memory_space<vmem>>, vector<4x8x1xf32>
      tpu.vector_store %arg10[%c0, %c0_4, %c0_5], %9 {strides = array<i32>} : memref<4x8x1xf32, #tpu.memory_space<vmem>>, vector<4x8x1xf32>,
      %cst_6 = arith.constant 0.000000e+00 : f32
      %11 = vector.broadcast %cst_6 : f32 to vector<4x8x1xf32>
      %c0_7 = arith.constant 0 : index
      %c0_8 = arith.constant 0 : index
      %c0_9 = arith.constant 0 : index
      %12 = vector.load %arg11[%c0_7, %c0_8, %c0_9] : memref<4x8x1xf32, #tpu.memory_space<vmem>>, vector<4x8x1xf32>
      tpu.vector_store %arg11[%c0_7, %c0_8, %c0_9], %11 {strides = array<i32>} : memref<4x8x1xf32, #tpu.memory_space<vmem>>, vector<4x8x1xf32>,
      %cst_10 = arith.constant 0.000000e+00 : f32
      %13 = vector.broadcast %cst_10 : f32 to vector<4x8x8xf32>
      %c0_11 = arith.constant 0 : index
      %c0_12 = arith.constant 0 : index
      %c0_13 = arith.constant 0 : index
      %14 = vector.load %arg12[%c0_11, %c0_12, %c0_13] : memref<4x8x8xf32, #tpu.memory_space<vmem>>, vector<4x8x8xf32>
      tpu.vector_store %arg12[%c0_11, %c0_12, %c0_13], %13 {strides = array<i32>} : memref<4x8x8xf32, #tpu.memory_space<vmem>>, vector<4x8x8xf32>,
    } else {
    }
    %3 = arith.cmpi sle, %arg2, %arg1 : i32
    %4 = arith.extui %3 : i1 to i32
    %c0_i32_1 = arith.constant 0 : i32
    %5 = arith.cmpi ne, %4, %c0_i32_1 : i32
    scf.if %5 {
      %c0 = arith.constant 0 : index
      %c0_4 = arith.constant 0 : index
      %c0_5 = arith.constant 0 : index
      %c0_6 = arith.constant 0 : index
      %9 = vector.load %arg4[%c0, %c0_4, %c0_5, %c0_6] : memref<1x4x8x8xbf16, #tpu.memory_space<vmem>>, vector<1x4x8x8xbf16>
      %10 = vector.shape_cast %9 : vector<1x4x8x8xbf16> to vector<4x8x8xbf16>
      %c0_7 = arith.constant 0 : index
      %c0_8 = arith.constant 0 : index
      %c0_9 = arith.constant 0 : index
      %c0_10 = arith.constant 0 : index
      %11 = vector.load %arg5[%c0_7, %c0_8, %c0_9, %c0_10] : memref<1x4x8x8xbf16, #tpu.memory_space<vmem>>, vector<1x4x8x8xbf16>
      %12 = vector.shape_cast %11 : vector<1x4x8x8xbf16> to vector<4x8x8xbf16>
      %c0_11 = arith.constant 0 : index
      %c0_12 = arith.constant 0 : index
      %c0_13 = arith.constant 0 : index
      %c0_14 = arith.constant 0 : index
      %13 = vector.load %arg6[%c0_11, %c0_12, %c0_13, %c0_14] : memref<1x4x8x8xbf16, #tpu.memory_space<vmem>>, vector<1x4x8x8xbf16>
      %14 = vector.shape_cast %13 : vector<1x4x8x8xbf16> to vector<4x8x8xbf16>
      "tpu.trace_start"() <{level = 10 : i32, message = "hqd,hkd->hqk"}> : () -> ()
      %cst = arith.constant dense<0.000000e+00> : vector<4x8x8xf32>
      %15 = tpu.matmul %10, %12, %cst {dimension_numbers = #tpu.dot_dimension_numbers<[2], [2], [1], [1], [0, 0, 0, 1, 1, 1], [0], [0]>} : vector<4x8x8xbf16>, vector<4x8x8xbf16>, vector<4x8x8xf32> -> vector<4x8x8xf32>
      "tpu.trace_stop"() : () -> ()
      %16 = tpu.iota {dimensions = array<i32: 0>} : vector<8x8xi32>
      %c8_i32 = arith.constant 8 : i32
      %17 = arith.muli %arg1, %c8_i32 : i32
      %18 = vector.broadcast %17 : i32 to vector<8x8xi32>
      %19 = arith.addi %16, %18 : vector<8x8xi32>
      %20 = tpu.iota {dimensions = array<i32: 1>} : vector<8x8xi32>
      %c8_i32_15 = arith.constant 8 : i32
      %21 = arith.muli %arg2, %c8_i32_15 : i32
      %22 = vector.broadcast %21 : i32 to vector<8x8xi32>
      %23 = arith.addi %20, %22 : vector<8x8xi32>
      %24 = arith.cmpi sle, %23, %19 : vector<8x8xi32>
      %25 = vector.shape_cast %24 : vector<8x8xi1> to vector<1x8x8xi1>
      %cst_16 = arith.constant -1.000000e+30 : f32
      %26 = vector.shape_cast %25 : vector<1x8x8xi1> to vector<1x8x8xi1>
      %27 = vector.broadcast %26 : vector<1x8x8xi1> to vector<4x8x8xi1>
      %28 = vector.broadcast %cst_16 : f32 to vector<4x8x8xf32>
      %29 = arith.select %27, %15, %28 : vector<4x8x8xi1>, vector<4x8x8xf32>
      %c0_17 = arith.constant 0 : index
      %c0_18 = arith.constant 0 : index
      %c0_19 = arith.constant 0 : index
      %30 = vector.load %arg10[%c0_17, %c0_18, %c0_19] : memref<4x8x1xf32, #tpu.memory_space<vmem>>, vector<4x8x1xf32>
      %cst_20 = arith.constant dense<0xFF800000> : vector<4x8xf32>
      %31 = vector.multi_reduction <maximumf>, %29, %cst_20 [2] : vector<4x8x8xf32> to vector<4x8xf32>
      %32 = vector.shape_cast %31 : vector<4x8xf32> to vector<4x8x1xf32>
      %33 = arith.maximumf %30, %32 : vector<4x8x1xf32>
      %34 = arith.subf %30, %33 : vector<4x8x1xf32>
      %35 = math.exp %34 : vector<4x8x1xf32>
      %36 = vector.broadcast %33 : vector<4x8x1xf32> to vector<4x8x8xf32>
      %37 = arith.subf %29, %36 : vector<4x8x8xf32>
      %38 = math.exp %37 : vector<4x8x8xf32>
      %c0_21 = arith.constant 0 : index
      %c0_22 = arith.constant 0 : index
      %c0_23 = arith.constant 0 : index
      %39 = vector.load %arg11[%c0_21, %c0_22, %c0_23] : memref<4x8x1xf32, #tpu.memory_space<vmem>>, vector<4x8x1xf32>
      %40 = arith.mulf %35, %39 : vector<4x8x1xf32>
      %cst_24 = arith.constant dense<0.000000e+00> : vector<4x8xf32>
      %41 = vector.multi_reduction <add>, %38, %cst_24 [2] : vector<4x8x8xf32> to vector<4x8xf32>
      %42 = vector.shape_cast %41 : vector<4x8xf32> to vector<4x8x1xf32>
      %43 = arith.addf %40, %42 : vector<4x8x1xf32>
      %c0_25 = arith.constant 0 : index
      %c0_26 = arith.constant 0 : index
      %c0_27 = arith.constant 0 : index
      %44 = vector.load %arg11[%c0_25, %c0_26, %c0_27] : memref<4x8x1xf32, #tpu.memory_space<vmem>>, vector<4x8x1xf32>
      tpu.vector_store %arg11[%c0_25, %c0_26, %c0_27], %43 {strides = array<i32>} : memref<4x8x1xf32, #tpu.memory_space<vmem>>, vector<4x8x1xf32>,
      %c0_28 = arith.constant 0 : index
      %c0_29 = arith.constant 0 : index
      %c0_30 = arith.constant 0 : index
      %45 = vector.load %arg12[%c0_28, %c0_29, %c0_30] : memref<4x8x8xf32, #tpu.memory_space<vmem>>, vector<4x8x8xf32>
      %46 = vector.broadcast %35 : vector<4x8x1xf32> to vector<4x8x8xf32>
      %47 = arith.mulf %46, %45 : vector<4x8x8xf32>
      %48 = arith.truncf %38 : vector<4x8x8xf32> to vector<4x8x8xbf16>
      "tpu.trace_start"() <{level = 10 : i32, message = "hqk,hkd->hqd"}> : () -> ()
      %cst_31 = arith.constant dense<0.000000e+00> : vector<4x8x8xf32>
      %49 = tpu.matmul %48, %14, %cst_31 {dimension_numbers = #tpu.dot_dimension_numbers<[2], [1], [1], [2], [0, 0, 0, 1, 1, 2], [0], [0]>} : vector<4x8x8xbf16>, vector<4x8x8xbf16>, vector<4x8x8xf32> -> vector<4x8x8xf32>
      "tpu.trace_stop"() : () -> ()
      %50 = arith.addf %47, %49 : vector<4x8x8xf32>
      %c0_32 = arith.constant 0 : index
      %c0_33 = arith.constant 0 : index
      %c0_34 = arith.constant 0 : index
      %51 = vector.load %arg12[%c0_32, %c0_33, %c0_34] : memref<4x8x8xf32, #tpu.memory_space<vmem>>, vector<4x8x8xf32>
      tpu.vector_store %arg12[%c0_32, %c0_33, %c0_34], %50 {strides = array<i32>} : memref<4x8x8xf32, #tpu.memory_space<vmem>>, vector<4x8x8xf32>,
      %c0_35 = arith.constant 0 : index
      %c0_36 = arith.constant 0 : index
      %c0_37 = arith.constant 0 : index
      %52 = vector.load %arg10[%c0_35, %c0_36, %c0_37] : memref<4x8x1xf32, #tpu.memory_space<vmem>>, vector<4x8x1xf32>
      tpu.vector_store %arg10[%c0_35, %c0_36, %c0_37], %33 {strides = array<i32>} : memref<4x8x1xf32, #tpu.memory_space<vmem>>, vector<4x8x1xf32>,
    } else {
    }
    %c0_i32_2 = arith.constant 0 : i32
    %6 = arith.cmpi eq, %arg2, %c0_i32_2 : i32
    %7 = arith.extui %6 : i1 to i32
    %c0_i32_3 = arith.constant 0 : i32
    %8 = arith.cmpi ne, %7, %c0_i32_3 : i32
    scf.if %8 {
      %c0 = arith.constant 0 : index
      %c0_4 = arith.constant 0 : index
      %c0_5 = arith.constant 0 : index
      %9 = vector.load %arg12[%c0, %c0_4, %c0_5] : memref<4x8x8xf32, #tpu.memory_space<vmem>>, vector<4x8x8xf32>
      %c0_6 = arith.constant 0 : index
      %c0_7 = arith.constant 0 : index
      %c0_8 = arith.constant 0 : index
      %10 = vector.load %arg11[%c0_6, %c0_7, %c0_8] : memref<4x8x1xf32, #tpu.memory_space<vmem>>, vector<4x8x1xf32>
      %11 = tpu.reciprocal %10 {approx = true} : vector<4x8x1xf32> -> vector<4x8x1xf32>
      %12 = vector.broadcast %11 : vector<4x8x1xf32> to vector<4x8x8xf32>
      %13 = arith.mulf %9, %12 : vector<4x8x8xf32>
      %14 = arith.truncf %13 : vector<4x8x8xf32> to vector<4x8x8xbf16>
      %c0_9 = arith.constant 0 : index
      %c0_10 = arith.constant 0 : index
      %c0_11 = arith.constant 0 : index
      %15 = vector.load %arg7[%c0_9, %c0_10, %c0_11] : memref<4x8x32xbf16, #tpu.memory_space<vmem>>, vector<4x8x32xbf16>
      "tpu.trace_start"() <{level = 10 : i32, message = "hqd,hdo->hqo"}> : () -> ()
      %cst = arith.constant dense<0.000000e+00> : vector<4x8x32xf32>
      %16 = tpu.matmul %14, %15, %cst {dimension_numbers = #tpu.dot_dimension_numbers<[2], [1], [1], [2], [0, 0, 0, 1, 1, 2], [0], [0]>} : vector<4x8x8xbf16>, vector<4x8x32xbf16>, vector<4x8x32xf32> -> vector<4x8x32xf32>
      "tpu.trace_stop"() : () -> ()
      %cst_12 = arith.constant dense<0.000000e+00> : vector<8x32xf32>
      %17 = vector.multi_reduction <add>, %16, %cst_12 [0] : vector<4x8x32xf32> to vector<8x32xf32>
      %c0_13 = arith.constant 0 : index
      %c0_14 = arith.constant 0 : index
      %c0_15 = arith.constant 0 : index
      %18 = vector.load %arg3[%c0_13, %c0_14, %c0_15] : memref<1x8x32xbf16, #tpu.memory_space<vmem>>, vector<1x8x32xbf16>
      %19 = vector.shape_cast %18 : vector<1x8x32xbf16> to vector<8x32xbf16>
      %20 = arith.extf %19 : vector<8x32xbf16> to vector<8x32xf32>
      %21 = arith.addf %20, %17 : vector<8x32xf32>
      %c0_16 = arith.constant 0 : index
      %c0_17 = arith.constant 0 : index
      %22 = vector.load %arg8[%c0_16, %c0_17] : memref<1x32xf32, #tpu.memory_space<vmem>>, vector<1x32xf32>
      %23 = vector.broadcast %22 : vector<1x32xf32> to vector<8x32xf32>
      %24 = arith.addf %21, %23 : vector<8x32xf32>
      %25 = arith.truncf %24 : vector<8x32xf32> to vector<8x32xbf16>
      %c0_18 = arith.constant 0 : index
      %c0_19 = arith.constant 0 : index
      %c0_20 = arith.constant 0 : index
      %26 = vector.load %arg9[%c0_18, %c0_19, %c0_20] : memref<1x8x32xbf16, #tpu.memory_space<vmem>>, vector<1x8x32xbf16>
      %27 = vector.shape_cast %26 : vector<1x8x32xbf16> to vector<8x32xbf16>
      %28 = vector.shape_cast %25 : vector<8x32xbf16> to vector<1x8x32xbf16>
      tpu.vector_store %arg9[%c0_18, %c0_19, %c0_20], %28 {strides = array<i32>} : memref<1x8x32xbf16, #tpu.memory_space<vmem>>, vector<1x8x32xbf16>,
    } else {
    }
    return
  }
  func.func @transform_0(%arg0: i32, %arg1: i32, %arg2: i32) -> (i32, i32, i32) {
    %c0_i32 = arith.constant 0 : i32
    %c0_i32_0 = arith.constant 0 : i32
    return %arg0, %arg1, %c0_i32 : i32, i32, i32
  }
  func.func @transform_1(%arg0: i32, %arg1: i32, %arg2: i32) -> (i32, i32, i32, i32) {
    %c0_i32 = arith.constant 0 : i32
    %c0_i32_0 = arith.constant 0 : i32
    %c0_i32_1 = arith.constant 0 : i32
    return %arg0, %c0_i32, %arg1, %c0_i32_0 : i32, i32, i32, i32
  }
  func.func @transform_2(%arg0: i32, %arg1: i32, %arg2: i32) -> (i32, i32, i32, i32) {
    %0 = arith.minsi %arg2, %arg1 : i32
    %c0_i32 = arith.constant 0 : i32
    %c0_i32_0 = arith.constant 0 : i32
    %c0_i32_1 = arith.constant 0 : i32
    return %arg0, %c0_i32, %0, %c0_i32_0 : i32, i32, i32, i32
  }
  func.func @transform_3(%arg0: i32, %arg1: i32, %arg2: i32) -> (i32, i32, i32, i32) {
    %0 = arith.minsi %arg2, %arg1 : i32
    %c0_i32 = arith.constant 0 : i32
    %c0_i32_0 = arith.constant 0 : i32
    %c0_i32_1 = arith.constant 0 : i32
    return %arg0, %c0_i32, %0, %c0_i32_0 : i32, i32, i32, i32
  }
  func.func @transform_4(%arg0: i32, %arg1: i32, %arg2: i32) -> (i32, i32, i32) {
    %c0_i32 = arith.constant 0 : i32
    %c0_i32_0 = arith.constant 0 : i32
    %c0_i32_1 = arith.constant 0 : i32
    %c0_i32_2 = arith.constant 0 : i32
    return %c0_i32, %c0_i32_0, %c0_i32_1 : i32, i32, i32
  }
  func.func @transform_5(%arg0: i32, %arg1: i32, %arg2: i32) -> (i32, i32) {
    %c0_i32 = arith.constant 0 : i32
    %c0_i32_0 = arith.constant 0 : i32
    %c0_i32_1 = arith.constant 0 : i32
    return %c0_i32, %c0_i32_0 : i32, i32
  }
  func.func @transform_6(%arg0: i32, %arg1: i32, %arg2: i32) -> (i32, i32, i32) {
    %c0_i32 = arith.constant 0 : i32
    %c0_i32_0 = arith.constant 0 : i32
    return %arg0, %arg1, %c0_i32 : i32, i32, i32
  }
}

module attributes {stable_mosaic.version = 11 : i64} {
  func.func @block_tail_kernel(%arg0: i32, %arg1: i32, %arg2: memref<1x8x32xbf16, #tpu.memory_space<vmem>>, %arg3: memref<1x32xf32, #tpu.memory_space<vmem>>, %arg4: memref<1x32xf32, #tpu.memory_space<vmem>>, %arg5: memref<32x128xbf16, #tpu.memory_space<vmem>>, %arg6: memref<1x128xf32, #tpu.memory_space<vmem>>, %arg7: memref<128x32xbf16, #tpu.memory_space<vmem>>, %arg8: memref<1x32xf32, #tpu.memory_space<vmem>>, %arg9: memref<1x8x32xbf16, #tpu.memory_space<vmem>>) attributes {dimension_semantics = [#tpu.dimension_semantics<parallel>, #tpu.dimension_semantics<parallel>], iteration_bounds = array<i64: 2, 1>, scalar_prefetch = 0 : i64, scratch_operands = 0 : i64, tpu.core_type = #tpu.core_type<tc>, window_params = [{transform_indices = @transform_0, window_bounds = array<i64: 1, 8, 32>}, {pipeline_mode = #tpu.pipeline_mode<synchronous>, transform_indices = @transform_1, window_bounds = array<i64: 1, 32>}, {pipeline_mode = #tpu.pipeline_mode<synchronous>, transform_indices = @transform_2, window_bounds = array<i64: 1, 32>}, {pipeline_mode = #tpu.pipeline_mode<synchronous>, transform_indices = @transform_3, window_bounds = array<i64: 32, 128>}, {pipeline_mode = #tpu.pipeline_mode<synchronous>, transform_indices = @transform_4, window_bounds = array<i64: 1, 128>}, {pipeline_mode = #tpu.pipeline_mode<synchronous>, transform_indices = @transform_5, window_bounds = array<i64: 128, 32>}, {pipeline_mode = #tpu.pipeline_mode<synchronous>, transform_indices = @transform_6, window_bounds = array<i64: 1, 32>}, {transform_indices = @transform_7, window_bounds = array<i64: 1, 8, 32>}]} {
    %c0 = arith.constant 0 : index
    %c0_0 = arith.constant 0 : index
    %c0_1 = arith.constant 0 : index
    %0 = vector.load %arg2[%c0, %c0_0, %c0_1] : memref<1x8x32xbf16, #tpu.memory_space<vmem>>, vector<1x8x32xbf16>
    %1 = vector.shape_cast %0 : vector<1x8x32xbf16> to vector<8x32xbf16>
    %2 = arith.extf %1 : vector<8x32xbf16> to vector<8x32xf32>
    %c0_2 = arith.constant 0 : index
    %c0_3 = arith.constant 0 : index
    %3 = vector.load %arg3[%c0_2, %c0_3] : memref<1x32xf32, #tpu.memory_space<vmem>>, vector<1x32xf32>
    %c0_4 = arith.constant 0 : index
    %c0_5 = arith.constant 0 : index
    %4 = vector.load %arg4[%c0_4, %c0_5] : memref<1x32xf32, #tpu.memory_space<vmem>>, vector<1x32xf32>
    %cst = arith.constant dense<0.000000e+00> : vector<8xf32>
    %5 = vector.multi_reduction <add>, %2, %cst [1] : vector<8x32xf32> to vector<8xf32>
    %6 = vector.shape_cast %5 : vector<8xf32> to vector<8x1xf32>
    %cst_6 = arith.constant 3.200000e+01 : f32
    %7 = vector.broadcast %cst_6 : f32 to vector<8x1xf32>
    %8 = arith.divf %6, %7 : vector<8x1xf32>
    %9 = vector.broadcast %8 : vector<8x1xf32> to vector<8x32xf32>
    %10 = arith.subf %2, %9 : vector<8x32xf32>
    %11 = arith.mulf %10, %10 : vector<8x32xf32>
    %cst_7 = arith.constant dense<0.000000e+00> : vector<8xf32>
    %12 = vector.multi_reduction <add>, %11, %cst_7 [1] : vector<8x32xf32> to vector<8xf32>
    %13 = vector.shape_cast %12 : vector<8xf32> to vector<8x1xf32>
    %cst_8 = arith.constant 3.200000e+01 : f32
    %14 = vector.broadcast %cst_8 : f32 to vector<8x1xf32>
    %15 = arith.divf %13, %14 : vector<8x1xf32>
    %cst_9 = arith.constant 9.99999974E-6 : f32
    %16 = vector.broadcast %cst_9 : f32 to vector<8x1xf32>
    %17 = arith.addf %15, %16 : vector<8x1xf32>
    %18 = math.rsqrt %17 : vector<8x1xf32>
    %19 = vector.broadcast %8 : vector<8x1xf32> to vector<8x32xf32>
    %20 = arith.subf %2, %19 : vector<8x32xf32>
    %21 = vector.broadcast %18 : vector<8x1xf32> to vector<8x32xf32>
    %22 = arith.mulf %20, %21 : vector<8x32xf32>
    %23 = vector.broadcast %3 : vector<1x32xf32> to vector<8x32xf32>
    %24 = arith.mulf %23, %22 : vector<8x32xf32>
    %25 = vector.broadcast %4 : vector<1x32xf32> to vector<8x32xf32>
    %26 = arith.addf %24, %25 : vector<8x32xf32>
    %27 = arith.truncf %26 : vector<8x32xf32> to vector<8x32xbf16>
    %c0_10 = arith.constant 0 : index
    %c0_11 = arith.constant 0 : index
    %28 = vector.load %arg5[%c0_10, %c0_11] : memref<32x128xbf16, #tpu.memory_space<vmem>>, vector<32x128xbf16>
    %cst_12 = arith.constant dense<0.000000e+00> : vector<8x128xf32>
    %29 = tpu.matmul %27, %28, %cst_12 {dimension_numbers = #tpu.dot_dimension_numbers<[1], [0], [0], [1], [0, 0, 1, 1], [], []>} : vector<8x32xbf16>, vector<32x128xbf16>, vector<8x128xf32> -> vector<8x128xf32>
    %c0_13 = arith.constant 0 : index
    %c0_14 = arith.constant 0 : index
    %30 = vector.load %arg6[%c0_13, %c0_14] : memref<1x128xf32, #tpu.memory_space<vmem>>, vector<1x128xf32>
    %31 = vector.broadcast %30 : vector<1x128xf32> to vector<8x128xf32>
    %32 = arith.addf %29, %31 : vector<8x128xf32>
    %cst_15 = arith.constant 0.636619746 : f32
    %33 = math.sqrt %cst_15 : f32
    %cst_16 = arith.constant 5.000000e-01 : f32
    %34 = vector.broadcast %cst_16 : f32 to vector<8x128xf32>
    %35 = arith.mulf %34, %32 : vector<8x128xf32>
    %cst_17 = arith.constant 4.471500e-02 : f32
    %36 = vector.broadcast %cst_17 : f32 to vector<8x128xf32>
    %37 = arith.mulf %36, %32 : vector<8x128xf32>
    %38 = arith.mulf %37, %32 : vector<8x128xf32>
    %39 = arith.mulf %38, %32 : vector<8x128xf32>
    %40 = arith.addf %32, %39 : vector<8x128xf32>
    %41 = vector.broadcast %33 : f32 to vector<8x128xf32>
    %42 = arith.mulf %41, %40 : vector<8x128xf32>
    %43 = math.tanh %42 : vector<8x128xf32>
    %cst_18 = arith.constant 1.000000e+00 : f32
    %44 = vector.broadcast %cst_18 : f32 to vector<8x128xf32>
    %45 = arith.addf %44, %43 : vector<8x128xf32>
    %46 = arith.mulf %35, %45 : vector<8x128xf32>
    %47 = arith.truncf %46 : vector<8x128xf32> to vector<8x128xbf16>
    %c0_19 = arith.constant 0 : index
    %c0_20 = arith.constant 0 : index
    %48 = vector.load %arg7[%c0_19, %c0_20] : memref<128x32xbf16, #tpu.memory_space<vmem>>, vector<128x32xbf16>
    %cst_21 = arith.constant dense<0.000000e+00> : vector<8x32xf32>
    %49 = tpu.matmul %47, %48, %cst_21 {dimension_numbers = #tpu.dot_dimension_numbers<[1], [0], [0], [1], [0, 0, 1, 1], [], []>} : vector<8x128xbf16>, vector<128x32xbf16>, vector<8x32xf32> -> vector<8x32xf32>
    %c0_22 = arith.constant 0 : index
    %c0_23 = arith.constant 0 : index
    %50 = vector.load %arg8[%c0_22, %c0_23] : memref<1x32xf32, #tpu.memory_space<vmem>>, vector<1x32xf32>
    %51 = vector.broadcast %50 : vector<1x32xf32> to vector<8x32xf32>
    %52 = arith.addf %49, %51 : vector<8x32xf32>
    %53 = arith.addf %2, %52 : vector<8x32xf32>
    %54 = arith.truncf %53 : vector<8x32xf32> to vector<8x32xbf16>
    %c0_24 = arith.constant 0 : index
    %c0_25 = arith.constant 0 : index
    %c0_26 = arith.constant 0 : index
    %55 = vector.load %arg9[%c0_24, %c0_25, %c0_26] : memref<1x8x32xbf16, #tpu.memory_space<vmem>>, vector<1x8x32xbf16>
    %56 = vector.shape_cast %55 : vector<1x8x32xbf16> to vector<8x32xbf16>
    %57 = vector.shape_cast %54 : vector<8x32xbf16> to vector<1x8x32xbf16>
    tpu.vector_store %arg9[%c0_24, %c0_25, %c0_26], %57 {strides = array<i32>} : memref<1x8x32xbf16, #tpu.memory_space<vmem>>, vector<1x8x32xbf16>,
    return
  }
  func.func @transform_0(%arg0: i32, %arg1: i32) -> (i32, i32, i32) {
    %c0_i32 = arith.constant 0 : i32
    %c0_i32_0 = arith.constant 0 : i32
    return %arg0, %arg1, %c0_i32 : i32, i32, i32
  }
  func.func @transform_1(%arg0: i32, %arg1: i32) -> (i32, i32) {
    %c0_i32 = arith.constant 0 : i32
    %c0_i32_0 = arith.constant 0 : i32
    %c0_i32_1 = arith.constant 0 : i32
    return %c0_i32, %c0_i32_0 : i32, i32
  }
  func.func @transform_2(%arg0: i32, %arg1: i32) -> (i32, i32) {
    %c0_i32 = arith.constant 0 : i32
    %c0_i32_0 = arith.constant 0 : i32
    %c0_i32_1 = arith.constant 0 : i32
    return %c0_i32, %c0_i32_0 : i32, i32
  }
  func.func @transform_3(%arg0: i32, %arg1: i32) -> (i32, i32) {
    %c0_i32 = arith.constant 0 : i32
    %c0_i32_0 = arith.constant 0 : i32
    %c0_i32_1 = arith.constant 0 : i32
    return %c0_i32, %c0_i32_0 : i32, i32
  }
  func.func @transform_4(%arg0: i32, %arg1: i32) -> (i32, i32) {
    %c0_i32 = arith.constant 0 : i32
    %c0_i32_0 = arith.constant 0 : i32
    %c0_i32_1 = arith.constant 0 : i32
    return %c0_i32, %c0_i32_0 : i32, i32
  }
  func.func @transform_5(%arg0: i32, %arg1: i32) -> (i32, i32) {
    %c0_i32 = arith.constant 0 : i32
    %c0_i32_0 = arith.constant 0 : i32
    %c0_i32_1 = arith.constant 0 : i32
    return %c0_i32, %c0_i32_0 : i32, i32
  }
  func.func @transform_6(%arg0: i32, %arg1: i32) -> (i32, i32) {
    %c0_i32 = arith.constant 0 : i32
    %c0_i32_0 = arith.constant 0 : i32
    %c0_i32_1 = arith.constant 0 : i32
    return %c0_i32, %c0_i32_0 : i32, i32
  }
  func.func @transform_7(%arg0: i32, %arg1: i32) -> (i32, i32, i32) {
    %c0_i32 = arith.constant 0 : i32
    %c0_i32_0 = arith.constant 0 : i32
    return %arg0, %arg1, %c0_i32 : i32, i32, i32
  }
}

module attributes {stable_mosaic.version = 11 : i64} {
  func.func @attn_kernel(%arg0: i32, %arg1: i32, %arg2: i32, %arg3: memref<1x8x32xbf16, #tpu.memory_space<vmem>>, %arg4: memref<1x4x8x8xbf16, #tpu.memory_space<vmem>>, %arg5: memref<1x4x8x8xbf16, #tpu.memory_space<vmem>>, %arg6: memref<1x4x8x8xbf16, #tpu.memory_space<vmem>>, %arg7: memref<4x8x32xbf16, #tpu.memory_space<vmem>>, %arg8: memref<1x32xf32, #tpu.memory_space<vmem>>, %arg9: memref<1x8x32xbf16, #tpu.memory_space<vmem>>, %arg10: memref<4x8x1xf32, #tpu.memory_space<vmem>>, %arg11: memref<4x8x1xf32, #tpu.memory_space<vmem>>, %arg12: memref<4x8x8xf32, #tpu.memory_space<vmem>>) attributes {dimension_semantics = [#tpu.dimension_semantics<parallel>, #tpu.dimension_semantics<parallel>, #tpu.dimension_semantics<arbitrary>], iteration_bounds = array<i64: 2, 1, 1>, scalar_prefetch = 0 : i64, scratch_operands = 3 : i64, tpu.core_type = #tpu.core_type<tc>, window_params = [{transform_indices = @transform_0, window_bounds = array<i64: 1, 8, 32>}, {transform_indices = @transform_1, window_bounds = array<i64: 1, 4, 8, 8>}, {transform_indices = @transform_2, window_bounds = array<i64: 1, 4, 8, 8>}, {transform_indices = @transform_3, window_bounds = array<i64: 1, 4, 8, 8>}, {pipeline_mode = #tpu.pipeline_mode<synchronous>, transform_indices = @transform_4, window_bounds = array<i64: 4, 8, 32>}, {pipeline_mode = #tpu.pipeline_mode<synchronous>, transform_indices = @transform_5, window_bounds = array<i64: 1, 32>}, {transform_indices = @transform_6, window_bounds = array<i64: 1, 8, 32>}]} {
    %c0_i32 = arith.constant 0 : i32
    %0 = arith.cmpi eq, %arg2, %c0_i32 : i32
    %1 = arith.extui %0 : i1 to i32
    %c0_i32_0 = arith.constant 0 : i32
    %2 = arith.cmpi ne, %1, %c0_i32_0 : i32
    scf.if %2 {
      %cst = arith.constant -1.000000e+30 : f32
      %9 = vector.broadcast %cst : f32 to vector<4x8x1xf32>
      %c0 = arith.constant 0 : index
      %c0_4 = arith.constant 0 : index
      %c0_5 = arith.constant 0 : index
      %10 = vector.load %arg10[%c0, %c0_4, %c0_5] : memref<4x8x1xf32, #tpu.memory_space<vmem>>, vector<4x8x1xf32>
      tpu.vector_store %arg10[%c0, %c0_4, %c0_5], %9 {strides = array<i32>} : memref<4x8x1xf32, #tpu.memory_space<vmem>>, vector<4x8x1xf32>,
      %cst_6 = arith.constant 0.000000e+00 : f32
      %11 = vector.broadcast %cst_6 : f32 to vector<4x8x1xf32>
      %c0_7 = arith.constant 0 : index
      %c0_8 = arith.constant 0 : index
      %c0_9 = arith.constant 0 : index
      %12 = vector.load %arg11[%c0_7, %c0_8, %c0_9] : memref<4x8x1xf32, #tpu.memory_space<vmem>>, vector<4x8x1xf32>
      tpu.vector_store %arg11[%c0_7, %c0_8, %c0_9], %11 {strides = array<i32>} : memref<4x8x1xf32, #tpu.memory_space<vmem>>, vector<4x8x1xf32>,
      %cst_10 = arith.constant 0.000000e+00 : f32
      %13 = vector.broadcast %cst_10 : f32 to vector<4x8x8xf32>
      %c0_11 = arith.constant 0 : index
      %c0_12 = arith.constant 0 : index
      %c0_13 = arith.constant 0 : index
      %14 = vector.load %arg12[%c0_11, %c0_12, %c0_13] : memref<4x8x8xf32, #tpu.memory_space<vmem>>, vector<4x8x8xf32>
      tpu.vector_store %arg12[%c0_11, %c0_12, %c0_13], %13 {strides = array<i32>} : memref<4x8x8xf32, #tpu.memory_space<vmem>>, vector<4x8x8xf32>,
    } else {
    }
    %3 = arith.cmpi sle, %arg2, %arg1 : i32
    %4 = arith.extui %3 : i1 to i32
    %c0_i32_1 = arith.constant 0 : i32
    %5 = arith.cmpi ne, %4, %c0_i32_1 : i32
    scf.if %5 {
      %c0 = arith.constant 0 : index
      %c0_4 = arith.constant 0 : index
      %c0_5 = arith.constant 0 : index
      %c0_6 = arith.constant 0 : index
      %9 = vector.load %arg4[%c0, %c0_4, %c0_5, %c0_6] : memref<1x4x8x8xbf16, #tpu.memory_space<vmem>>, vector<1x4x8x8xbf16>
      %10 = vector.shape_cast %9 : vector<1x4x8x8xbf16> to vector<4x8x8xbf16>
      %c0_7 = arith.constant 0 : index
      %c0_8 = arith.constant 0 : index
      %c0_9 = arith.constant 0 : index
      %c0_10 = arith.constant 0 : index
      %11 = vector.load %arg5[%c0_7, %c0_8, %c0_9, %c0_10] : memref<1x4x8x8xbf16, #tpu.memory_space<vmem>>, vector<1x4x8x8xbf16>
      %12 = vector.shape_cast %11 : vector<1x4x8x8xbf16> to vector<4x8x8xbf16>
      %c0_11 = arith.constant 0 : index
      %c0_12 = arith.constant 0 : index
      %c0_13 = arith.constant 0 : index
      %c0_14 = arith.constant 0 : index
      %13 = vector.load %arg6[%c0_11, %c0_12, %c0_13, %c0_14] : memref<1x4x8x8xbf16, #tpu.memory_space<vmem>>, vector<1x4x8x8xbf16>
      %14 = vector.shape_cast %13 : vector<1x4x8x8xbf16> to vector<4x8x8xbf16>
      "tpu.trace_start"() <{level = 10 : i32, message = "hqd,hkd->hqk"}> : () -> ()
      %cst = arith.constant dense<0.000000e+00> : vector<4x8x8xf32>
      %15 = tpu.matmul %10, %12, %cst {dimension_numbers = #tpu.dot_dimension_numbers<[2], [2], [1], [1], [0, 0, 0, 1, 1, 1], [0], [0]>} : vector<4x8x8xbf16>, vector<4x8x8xbf16>, vector<4x8x8xf32> -> vector<4x8x8xf32>
      "tpu.trace_stop"() : () -> ()
      %16 = tpu.iota {dimensions = array<i32: 0>} : vector<8x8xi32>
      %c8_i32 = arith.constant 8 : i32
      %17 = arith.muli %arg1, %c8_i32 : i32
      %18 = vector.broadcast %17 : i32 to vector<8x8xi32>
      %19 = arith.addi %16, %18 : vector<8x8xi32>
      %20 = tpu.iota {dimensions = array<i32: 1>} : vector<8x8xi32>
      %c8_i32_15 = arith.constant 8 : i32
      %21 = arith.muli %arg2, %c8_i32_15 : i32
      %22 = vector.broadcast %21 : i32 to vector<8x8xi32>
      %23 = arith.addi %20, %22 : vector<8x8xi32>
      %24 = arith.cmpi sle, %23, %19 : vector<8x8xi32>
      %25 = vector.shape_cast %24 : vector<8x8xi1> to vector<1x8x8xi1>
      %cst_16 = arith.constant -1.000000e+30 : f32
      %26 = vector.shape_cast %25 : vector<1x8x8xi1> to vector<1x8x8xi1>
      %27 = vector.broadcast %26 : vector<1x8x8xi1> to vector<4x8x8xi1>
      %28 = vector.broadcast %cst_16 : f32 to vector<4x8x8xf32>
      %29 = arith.select %27, %15, %28 : vector<4x8x8xi1>, vector<4x8x8xf32>
      %c0_17 = arith.constant 0 : index
      %c0_18 = arith.constant 0 : index
      %c0_19 = arith.constant 0 : index
      %30 = vector.load %arg10[%c0_17, %c0_18, %c0_19] : memref<4x8x1xf32, #tpu.memory_space<vmem>>, vector<4x8x1xf32>
      %cst_20 = arith.constant dense<0xFF800000> : vector<4x8xf32>
      %31 = vector.multi_reduction <maximumf>, %29, %cst_20 [2] : vector<4x8x8xf32> to vector<4x8xf32>
      %32 = vector.shape_cast %31 : vector<4x8xf32> to vector<4x8x1xf32>
      %33 = arith.maximumf %30, %32 : vector<4x8x1xf32>
      %34 = arith.subf %30, %33 : vector<4x8x1xf32>
      %35 = math.exp %34 : vector<4x8x1xf32>
      %36 = vector.broadcast %33 : vector<4x8x1xf32> to vector<4x8x8xf32>
      %37 = arith.subf %29, %36 : vector<4x8x8xf32>
      %38 = math.exp %37 : vector<4x8x8xf32>
      %c0_21 = arith.constant 0 : index
      %c0_22 = arith.constant 0 : index
      %c0_23 = arith.constant 0 : index
      %39 = vector.load %arg11[%c0_21, %c0_22, %c0_23] : memref<4x8x1xf32, #tpu.memory_space<vmem>>, vector<4x8x1xf32>
      %40 = arith.mulf %35, %39 : vector<4x8x1xf32>
      %cst_24 = arith.constant dense<0.000000e+00> : vector<4x8xf32>
      %41 = vector.multi_reduction <add>, %38, %cst_24 [2] : vector<4x8x8xf32> to vector<4x8xf32>
      %42 = vector.shape_cast %41 : vector<4x8xf32> to vector<4x8x1xf32>
      %43 = arith.addf %40, %42 : vector<4x8x1xf32>
      %c0_25 = arith.constant 0 : index
      %c0_26 = arith.constant 0 : index
      %c0_27 = arith.constant 0 : index
      %44 = vector.load %arg11[%c0_25, %c0_26, %c0_27] : memref<4x8x1xf32, #tpu.memory_space<vmem>>, vector<4x8x1xf32>
      tpu.vector_store %arg11[%c0_25, %c0_26, %c0_27], %43 {strides = array<i32>} : memref<4x8x1xf32, #tpu.memory_space<vmem>>, vector<4x8x1xf32>,
      %c0_28 = arith.constant 0 : index
      %c0_29 = arith.constant 0 : index
      %c0_30 = arith.constant 0 : index
      %45 = vector.load %arg12[%c0_28, %c0_29, %c0_30] : memref<4x8x8xf32, #tpu.memory_space<vmem>>, vector<4x8x8xf32>
      %46 = vector.broadcast %35 : vector<4x8x1xf32> to vector<4x8x8xf32>
      %47 = arith.mulf %46, %45 : vector<4x8x8xf32>
      %48 = arith.truncf %38 : vector<4x8x8xf32> to vector<4x8x8xbf16>
      "tpu.trace_start"() <{level = 10 : i32, message = "hqk,hkd->hqd"}> : () -> ()
      %cst_31 = arith.constant dense<0.000000e+00> : vector<4x8x8xf32>
      %49 = tpu.matmul %48, %14, %cst_31 {dimension_numbers = #tpu.dot_dimension_numbers<[2], [1], [1], [2], [0, 0, 0, 1, 1, 2], [0], [0]>} : vector<4x8x8xbf16>, vector<4x8x8xbf16>, vector<4x8x8xf32> -> vector<4x8x8xf32>
      "tpu.trace_stop"() : () -> ()
      %50 = arith.addf %47, %49 : vector<4x8x8xf32>
      %c0_32 = arith.constant 0 : index
      %c0_33 = arith.constant 0 : index
      %c0_34 = arith.constant 0 : index
      %51 = vector.load %arg12[%c0_32, %c0_33, %c0_34] : memref<4x8x8xf32, #tpu.memory_space<vmem>>, vector<4x8x8xf32>
      tpu.vector_store %arg12[%c0_32, %c0_33, %c0_34], %50 {strides = array<i32>} : memref<4x8x8xf32, #tpu.memory_space<vmem>>, vector<4x8x8xf32>,
      %c0_35 = arith.constant 0 : index
      %c0_36 = arith.constant 0 : index
      %c0_37 = arith.constant 0 : index
      %52 = vector.load %arg10[%c0_35, %c0_36, %c0_37] : memref<4x8x1xf32, #tpu.memory_space<vmem>>, vector<4x8x1xf32>
      tpu.vector_store %arg10[%c0_35, %c0_36, %c0_37], %33 {strides = array<i32>} : memref<4x8x1xf32, #tpu.memory_space<vmem>>, vector<4x8x1xf32>,
    } else {
    }
    %c0_i32_2 = arith.constant 0 : i32
    %6 = arith.cmpi eq, %arg2, %c0_i32_2 : i32
    %7 = arith.extui %6 : i1 to i32
    %c0_i32_3 = arith.constant 0 : i32
    %8 = arith.cmpi ne, %7, %c0_i32_3 : i32
    scf.if %8 {
      %c0 = arith.constant 0 : index
      %c0_4 = arith.constant 0 : index
      %c0_5 = arith.constant 0 : index
      %9 = vector.load %arg12[%c0, %c0_4, %c0_5] : memref<4x8x8xf32, #tpu.memory_space<vmem>>, vector<4x8x8xf32>
      %c0_6 = arith.constant 0 : index
      %c0_7 = arith.constant 0 : index
      %c0_8 = arith.constant 0 : index
      %10 = vector.load %arg11[%c0_6, %c0_7, %c0_8] : memref<4x8x1xf32, #tpu.memory_space<vmem>>, vector<4x8x1xf32>
      %11 = tpu.reciprocal %10 {approx = true} : vector<4x8x1xf32> -> vector<4x8x1xf32>
      %12 = vector.broadcast %11 : vector<4x8x1xf32> to vector<4x8x8xf32>
      %13 = arith.mulf %9, %12 : vector<4x8x8xf32>
      %14 = arith.truncf %13 : vector<4x8x8xf32> to vector<4x8x8xbf16>
      %c0_9 = arith.constant 0 : index
      %c0_10 = arith.constant 0 : index
      %c0_11 = arith.constant 0 : index
      %15 = vector.load %arg7[%c0_9, %c0_10, %c0_11] : memref<4x8x32xbf16, #tpu.memory_space<vmem>>, vector<4x8x32xbf16>
      "tpu.trace_start"() <{level = 10 : i32, message = "hqd,hdo->hqo"}> : () -> ()
      %cst = arith.constant dense<0.000000e+00> : vector<4x8x32xf32>
      %16 = tpu.matmul %14, %15, %cst {dimension_numbers = #tpu.dot_dimension_numbers<[2], [1], [1], [2], [0, 0, 0, 1, 1, 2], [0], [0]>} : vector<4x8x8xbf16>, vector<4x8x32xbf16>, vector<4x8x32xf32> -> vector<4x8x32xf32>
      "tpu.trace_stop"() : () -> ()
      %cst_12 = arith.constant dense<0.000000e+00> : vector<8x32xf32>
      %17 = vector.multi_reduction <add>, %16, %cst_12 [0] : vector<4x8x32xf32> to vector<8x32xf32>
      %c0_13 = arith.constant 0 : index
      %c0_14 = arith.constant 0 : index
      %c0_15 = arith.constant 0 : index
      %18 = vector.load %arg3[%c0_13, %c0_14, %c0_15] : memref<1x8x32xbf16, #tpu.memory_space<vmem>>, vector<1x8x32xbf16>
      %19 = vector.shape_cast %18 : vector<1x8x32xbf16> to vector<8x32xbf16>
      %20 = arith.extf %19 : vector<8x32xbf16> to vector<8x32xf32>
      %21 = arith.addf %20, %17 : vector<8x32xf32>
      %c0_16 = arith.constant 0 : index
      %c0_17 = arith.constant 0 : index
      %22 = vector.load %arg8[%c0_16, %c0_17] : memref<1x32xf32, #tpu.memory_space<vmem>>, vector<1x32xf32>
      %23 = vector.broadcast %22 : vector<1x32xf32> to vector<8x32xf32>
      %24 = arith.addf %21, %23 : vector<8x32xf32>
      %25 = arith.truncf %24 : vector<8x32xf32> to vector<8x32xbf16>
      %c0_18 = arith.constant 0 : index
      %c0_19 = arith.constant 0 : index
      %c0_20 = arith.constant 0 : index
      %26 = vector.load %arg9[%c0_18, %c0_19, %c0_20] : memref<1x8x32xbf16, #tpu.memory_space<vmem>>, vector<1x8x32xbf16>
      %27 = vector.shape_cast %26 : vector<1x8x32xbf16> to vector<8x32xbf16>
      %28 = vector.shape_cast %25 : vector<8x32xbf16> to vector<1x8x32xbf16>
      tpu.vector_store %arg9[%c0_18, %c0_19, %c0_20], %28 {strides = array<i32>} : memref<1x8x32xbf16, #tpu.memory_space<vmem>>, vector<1x8x32xbf16>,
    } else {
    }
    return
  }
  func.func @transform_0(%arg0: i32, %arg1: i32, %arg2: i32) -> (i32, i32, i32) {
    %c0_i32 = arith.constant 0 : i32
    %c0_i32_0 = arith.constant 0 : i32
    return %arg0, %arg1, %c0_i32 : i32, i32, i32
  }
  func.func @transform_1(%arg0: i32, %arg1: i32, %arg2: i32) -> (i32, i32, i32, i32) {
    %c0_i32 = arith.constant 0 : i32
    %c0_i32_0 = arith.constant 0 : i32
    %c0_i32_1 = arith.constant 0 : i32
    return %arg0, %c0_i32, %arg1, %c0_i32_0 : i32, i32, i32, i32
  }
  func.func @transform_2(%arg0: i32, %arg1: i32, %arg2: i32) -> (i32, i32, i32, i32) {
    %0 = arith.minsi %arg2, %arg1 : i32
    %c0_i32 = arith.constant 0 : i32
    %c0_i32_0 = arith.constant 0 : i32
    %c0_i32_1 = arith.constant 0 : i32
    return %arg0, %c0_i32, %0, %c0_i32_0 : i32, i32, i32, i32
  }
  func.func @transform_3(%arg0: i32, %arg1: i32, %arg2: i32) -> (i32, i32, i32, i32) {
    %0 = arith.minsi %arg2, %arg1 : i32
    %c0_i32 = arith.constant 0 : i32
    %c0_i32_0 = arith.constant 0 : i32
    %c0_i32_1 = arith.constant 0 : i32
    return %arg0, %c0_i32, %0, %c0_i32_0 : i32, i32, i32, i32
  }
  func.func @transform_4(%arg0: i32, %arg1: i32, %arg2: i32) -> (i32, i32, i32) {
    %c0_i32 = arith.constant 0 : i32
    %c0_i32_0 = arith.constant 0 : i32
    %c0_i32_1 = arith.constant 0 : i32
    %c0_i32_2 = arith.constant 0 : i32
    return %c0_i32, %c0_i32_0, %c0_i32_1 : i32, i32, i32
  }
  func.func @transform_5(%arg0: i32, %arg1: i32, %arg2: i32) -> (i32, i32) {
    %c0_i32 = arith.constant 0 : i32
    %c0_i32_0 = arith.constant 0 : i32
    %c0_i32_1 = arith.constant 0 : i32
    return %c0_i32, %c0_i32_0 : i32, i32
  }
  func.func @transform_6(%arg0: i32, %arg1: i32, %arg2: i32) -> (i32, i32, i32) {
    %c0_i32 = arith.constant 0 : i32
    %c0_i32_0 = arith.constant 0 : i32
    return %arg0, %arg1, %c0_i32 : i32, i32, i32
  }
}

module attributes {stable_mosaic.version = 11 : i64} {
  func.func @head_kernel(%arg0: i32, %arg1: i32, %arg2: memref<16x32xbf16, #tpu.memory_space<vmem>>, %arg3: memref<1x32xf32, #tpu.memory_space<vmem>>, %arg4: memref<1x32xf32, #tpu.memory_space<vmem>>, %arg5: memref<32x128xbf16, #tpu.memory_space<vmem>>, %arg6: memref<16x128xbf16, #tpu.memory_space<vmem>>) attributes {dimension_semantics = [#tpu.dimension_semantics<parallel>, #tpu.dimension_semantics<parallel>], iteration_bounds = array<i64: 1, 1>, scalar_prefetch = 0 : i64, scratch_operands = 0 : i64, tpu.core_type = #tpu.core_type<tc>, window_params = [{transform_indices = @transform_0, window_bounds = array<i64: 16, 32>}, {pipeline_mode = #tpu.pipeline_mode<synchronous>, transform_indices = @transform_1, window_bounds = array<i64: 1, 32>}, {pipeline_mode = #tpu.pipeline_mode<synchronous>, transform_indices = @transform_2, window_bounds = array<i64: 1, 32>}, {transform_indices = @transform_3, window_bounds = array<i64: 32, 128>}, {transform_indices = @transform_4, window_bounds = array<i64: 16, 128>}]} {
    %c0 = arith.constant 0 : index
    %c0_0 = arith.constant 0 : index
    %0 = vector.load %arg2[%c0, %c0_0] : memref<16x32xbf16, #tpu.memory_space<vmem>>, vector<16x32xbf16>
    %1 = arith.extf %0 : vector<16x32xbf16> to vector<16x32xf32>
    %c0_1 = arith.constant 0 : index
    %c0_2 = arith.constant 0 : index
    %2 = vector.load %arg3[%c0_1, %c0_2] : memref<1x32xf32, #tpu.memory_space<vmem>>, vector<1x32xf32>
    %c0_3 = arith.constant 0 : index
    %c0_4 = arith.constant 0 : index
    %3 = vector.load %arg4[%c0_3, %c0_4] : memref<1x32xf32, #tpu.memory_space<vmem>>, vector<1x32xf32>
    %cst = arith.constant dense<0.000000e+00> : vector<16xf32>
    %4 = vector.multi_reduction <add>, %1, %cst [1] : vector<16x32xf32> to vector<16xf32>
    %5 = vector.shape_cast %4 : vector<16xf32> to vector<16x1xf32>
    %cst_5 = arith.constant 3.200000e+01 : f32
    %6 = vector.broadcast %cst_5 : f32 to vector<16x1xf32>
    %7 = arith.divf %5, %6 : vector<16x1xf32>
    %8 = vector.broadcast %7 : vector<16x1xf32> to vector<16x32xf32>
    %9 = arith.subf %1, %8 : vector<16x32xf32>
    %10 = arith.mulf %9, %9 : vector<16x32xf32>
    %cst_6 = arith.constant dense<0.000000e+00> : vector<16xf32>
    %11 = vector.multi_reduction <add>, %10, %cst_6 [1] : vector<16x32xf32> to vector<16xf32>
    %12 = vector.shape_cast %11 : vector<16xf32> to vector<16x1xf32>
    %cst_7 = arith.constant 3.200000e+01 : f32
    %13 = vector.broadcast %cst_7 : f32 to vector<16x1xf32>
    %14 = arith.divf %12, %13 : vector<16x1xf32>
    %cst_8 = arith.constant 9.99999974E-6 : f32
    %15 = vector.broadcast %cst_8 : f32 to vector<16x1xf32>
    %16 = arith.addf %14, %15 : vector<16x1xf32>
    %17 = math.rsqrt %16 : vector<16x1xf32>
    %18 = vector.broadcast %7 : vector<16x1xf32> to vector<16x32xf32>
    %19 = arith.subf %1, %18 : vector<16x32xf32>
    %20 = vector.broadcast %17 : vector<16x1xf32> to vector<16x32xf32>
    %21 = arith.mulf %19, %20 : vector<16x32xf32>
    %22 = vector.broadcast %2 : vector<1x32xf32> to vector<16x32xf32>
    %23 = arith.mulf %22, %21 : vector<16x32xf32>
    %24 = vector.broadcast %3 : vector<1x32xf32> to vector<16x32xf32>
    %25 = arith.addf %23, %24 : vector<16x32xf32>
    %26 = arith.truncf %25 : vector<16x32xf32> to vector<16x32xbf16>
    %c0_9 = arith.constant 0 : index
    %c0_10 = arith.constant 0 : index
    %27 = vector.load %arg5[%c0_9, %c0_10] : memref<32x128xbf16, #tpu.memory_space<vmem>>, vector<32x128xbf16>
    %cst_11 = arith.constant dense<0.000000e+00> : vector<16x128xf32>
    %28 = tpu.matmul %26, %27, %cst_11 {dimension_numbers = #tpu.dot_dimension_numbers<[1], [0], [0], [1], [0, 0, 1, 1], [], []>} : vector<16x32xbf16>, vector<32x128xbf16>, vector<16x128xf32> -> vector<16x128xf32>
    %29 = arith.truncf %28 : vector<16x128xf32> to vector<16x128xbf16>
    %c0_12 = arith.constant 0 : index
    %c0_13 = arith.constant 0 : index
    %30 = vector.load %arg6[%c0_12, %c0_13] : memref<16x128xbf16, #tpu.memory_space<vmem>>, vector<16x128xbf16>
    tpu.vector_store %arg6[%c0_12, %c0_13], %29 {strides = array<i32>} : memref<16x128xbf16, #tpu.memory_space<vmem>>, vector<16x128xbf16>,
    return
  }
  func.func @transform_0(%arg0: i32, %arg1: i32) -> (i32, i32) {
    %c0_i32 = arith.constant 0 : i32
    %c0_i32_0 = arith.constant 0 : i32
    return %arg0, %c0_i32 : i32, i32
  }
  func.func @transform_1(%arg0: i32, %arg1: i32) -> (i32, i32) {
    %c0_i32 = arith.constant 0 : i32
    %c0_i32_0 = arith.constant 0 : i32
    %c0_i32_1 = arith.constant 0 : i32
    return %c0_i32, %c0_i32_0 : i32, i32
  }
  func.func @transform_2(%arg0: i32, %arg1: i32) -> (i32, i32) {
    %c0_i32 = arith.constant 0 : i32
    %c0_i32_0 = arith.constant 0 : i32
    %c0_i32_1 = arith.constant 0 : i32
    return %c0_i32, %c0_i32_0 : i32, i32
  }
  func.func @transform_3(%arg0: i32, %arg1: i32) -> (i32, i32) {
    %c0_i32 = arith.constant 0 : i32
    %c0_i32_0 = arith.constant 0 : i32
    return %c0_i32, %arg1 : i32, i32
  }
  func.func @transform_4(%arg0: i32, %arg1: i32) -> (i32, i32) {
    %c0_i32 = arith.constant 0 : i32
    return %arg0, %arg1 : i32, i32
  }
}

module attributes {stable_mosaic.version = 11 : i64} {
  func.func @block_tail_kernel(%arg0: i32, %arg1: i32, %arg2: memref<1x8x32xbf16, #tpu.memory_space<vmem>>, %arg3: memref<1x32xf32, #tpu.memory_space<vmem>>, %arg4: memref<1x32xf32, #tpu.memory_space<vmem>>, %arg5: memref<32x128xbf16, #tpu.memory_space<vmem>>, %arg6: memref<1x128xf32, #tpu.memory_space<vmem>>, %arg7: memref<128x32xbf16, #tpu.memory_space<vmem>>, %arg8: memref<1x32xf32, #tpu.memory_space<vmem>>, %arg9: memref<1x8x32xbf16, #tpu.memory_space<vmem>>) attributes {dimension_semantics = [#tpu.dimension_semantics<parallel>, #tpu.dimension_semantics<parallel>], iteration_bounds = array<i64: 2, 1>, scalar_prefetch = 0 : i64, scratch_operands = 0 : i64, tpu.core_type = #tpu.core_type<tc>, window_params = [{transform_indices = @transform_0, window_bounds = array<i64: 1, 8, 32>}, {pipeline_mode = #tpu.pipeline_mode<synchronous>, transform_indices = @transform_1, window_bounds = array<i64: 1, 32>}, {pipeline_mode = #tpu.pipeline_mode<synchronous>, transform_indices = @transform_2, window_bounds = array<i64: 1, 32>}, {pipeline_mode = #tpu.pipeline_mode<synchronous>, transform_indices = @transform_3, window_bounds = array<i64: 32, 128>}, {pipeline_mode = #tpu.pipeline_mode<synchronous>, transform_indices = @transform_4, window_bounds = array<i64: 1, 128>}, {pipeline_mode = #tpu.pipeline_mode<synchronous>, transform_indices = @transform_5, window_bounds = array<i64: 128, 32>}, {pipeline_mode = #tpu.pipeline_mode<synchronous>, transform_indices = @transform_6, window_bounds = array<i64: 1, 32>}, {transform_indices = @transform_7, window_bounds = array<i64: 1, 8, 32>}]} {
    %c0 = arith.constant 0 : index
    %c0_0 = arith.constant 0 : index
    %c0_1 = arith.constant 0 : index
    %0 = vector.load %arg2[%c0, %c0_0, %c0_1] : memref<1x8x32xbf16, #tpu.memory_space<vmem>>, vector<1x8x32xbf16>
    %1 = vector.shape_cast %0 : vector<1x8x32xbf16> to vector<8x32xbf16>
    %2 = arith.extf %1 : vector<8x32xbf16> to vector<8x32xf32>
    %c0_2 = arith.constant 0 : index
    %c0_3 = arith.constant 0 : index
    %3 = vector.load %arg3[%c0_2, %c0_3] : memref<1x32xf32, #tpu.memory_space<vmem>>, vector<1x32xf32>
    %c0_4 = arith.constant 0 : index
    %c0_5 = arith.constant 0 : index
    %4 = vector.load %arg4[%c0_4, %c0_5] : memref<1x32xf32, #tpu.memory_space<vmem>>, vector<1x32xf32>
    %cst = arith.constant dense<0.000000e+00> : vector<8xf32>
    %5 = vector.multi_reduction <add>, %2, %cst [1] : vector<8x32xf32> to vector<8xf32>
    %6 = vector.shape_cast %5 : vector<8xf32> to vector<8x1xf32>
    %cst_6 = arith.constant 3.200000e+01 : f32
    %7 = vector.broadcast %cst_6 : f32 to vector<8x1xf32>
    %8 = arith.divf %6, %7 : vector<8x1xf32>
    %9 = vector.broadcast %8 : vector<8x1xf32> to vector<8x32xf32>
    %10 = arith.subf %2, %9 : vector<8x32xf32>
    %11 = arith.mulf %10, %10 : vector<8x32xf32>
    %cst_7 = arith.constant dense<0.000000e+00> : vector<8xf32>
    %12 = vector.multi_reduction <add>, %11, %cst_7 [1] : vector<8x32xf32> to vector<8xf32>
    %13 = vector.shape_cast %12 : vector<8xf32> to vector<8x1xf32>
    %cst_8 = arith.constant 3.200000e+01 : f32
    %14 = vector.broadcast %cst_8 : f32 to vector<8x1xf32>
    %15 = arith.divf %13, %14 : vector<8x1xf32>
    %cst_9 = arith.constant 9.99999974E-6 : f32
    %16 = vector.broadcast %cst_9 : f32 to vector<8x1xf32>
    %17 = arith.addf %15, %16 : vector<8x1xf32>
    %18 = math.rsqrt %17 : vector<8x1xf32>
    %19 = vector.broadcast %8 : vector<8x1xf32> to vector<8x32xf32>
    %20 = arith.subf %2, %19 : vector<8x32xf32>
    %21 = vector.broadcast %18 : vector<8x1xf32> to vector<8x32xf32>
    %22 = arith.mulf %20, %21 : vector<8x32xf32>
    %23 = vector.broadcast %3 : vector<1x32xf32> to vector<8x32xf32>
    %24 = arith.mulf %23, %22 : vector<8x32xf32>
    %25 = vector.broadcast %4 : vector<1x32xf32> to vector<8x32xf32>
    %26 = arith.addf %24, %25 : vector<8x32xf32>
    %27 = arith.truncf %26 : vector<8x32xf32> to vector<8x32xbf16>
    %c0_10 = arith.constant 0 : index
    %c0_11 = arith.constant 0 : index
    %28 = vector.load %arg5[%c0_10, %c0_11] : memref<32x128xbf16, #tpu.memory_space<vmem>>, vector<32x128xbf16>
    %cst_12 = arith.constant dense<0.000000e+00> : vector<8x128xf32>
    %29 = tpu.matmul %27, %28, %cst_12 {dimension_numbers = #tpu.dot_dimension_numbers<[1], [0], [0], [1], [0, 0, 1, 1], [], []>} : vector<8x32xbf16>, vector<32x128xbf16>, vector<8x128xf32> -> vector<8x128xf32>
    %c0_13 = arith.constant 0 : index
    %c0_14 = arith.constant 0 : index
    %30 = vector.load %arg6[%c0_13, %c0_14] : memref<1x128xf32, #tpu.memory_space<vmem>>, vector<1x128xf32>
    %31 = vector.broadcast %30 : vector<1x128xf32> to vector<8x128xf32>
    %32 = arith.addf %29, %31 : vector<8x128xf32>
    %cst_15 = arith.constant 0.636619746 : f32
    %33 = math.sqrt %cst_15 : f32
    %cst_16 = arith.constant 5.000000e-01 : f32
    %34 = vector.broadcast %cst_16 : f32 to vector<8x128xf32>
    %35 = arith.mulf %34, %32 : vector<8x128xf32>
    %cst_17 = arith.constant 4.471500e-02 : f32
    %36 = vector.broadcast %cst_17 : f32 to vector<8x128xf32>
    %37 = arith.mulf %36, %32 : vector<8x128xf32>
    %38 = arith.mulf %37, %32 : vector<8x128xf32>
    %39 = arith.mulf %38, %32 : vector<8x128xf32>
    %40 = arith.addf %32, %39 : vector<8x128xf32>
    %41 = vector.broadcast %33 : f32 to vector<8x128xf32>
    %42 = arith.mulf %41, %40 : vector<8x128xf32>
    %43 = math.tanh %42 : vector<8x128xf32>
    %cst_18 = arith.constant 1.000000e+00 : f32
    %44 = vector.broadcast %cst_18 : f32 to vector<8x128xf32>
    %45 = arith.addf %44, %43 : vector<8x128xf32>
    %46 = arith.mulf %35, %45 : vector<8x128xf32>
    %47 = arith.truncf %46 : vector<8x128xf32> to vector<8x128xbf16>
    %c0_19 = arith.constant 0 : index
    %c0_20 = arith.constant 0 : index
    %48 = vector.load %arg7[%c0_19, %c0_20] : memref<128x32xbf16, #tpu.memory_space<vmem>>, vector<128x32xbf16>
    %cst_21 = arith.constant dense<0.000000e+00> : vector<8x32xf32>
    %49 = tpu.matmul %47, %48, %cst_21 {dimension_numbers = #tpu.dot_dimension_numbers<[1], [0], [0], [1], [0, 0, 1, 1], [], []>} : vector<8x128xbf16>, vector<128x32xbf16>, vector<8x32xf32> -> vector<8x32xf32>
    %c0_22 = arith.constant 0 : index
    %c0_23 = arith.constant 0 : index
    %50 = vector.load %arg8[%c0_22, %c0_23] : memref<1x32xf32, #tpu.memory_space<vmem>>, vector<1x32xf32>
    %51 = vector.broadcast %50 : vector<1x32xf32> to vector<8x32xf32>
    %52 = arith.addf %49, %51 : vector<8x32xf32>
    %53 = arith.addf %2, %52 : vector<8x32xf32>
    %54 = arith.truncf %53 : vector<8x32xf32> to vector<8x32xbf16>
    %c0_24 = arith.constant 0 : index
    %c0_25 = arith.constant 0 : index
    %c0_26 = arith.constant 0 : index
    %55 = vector.load %arg9[%c0_24, %c0_25, %c0_26] : memref<1x8x32xbf16, #tpu.memory_space<vmem>>, vector<1x8x32xbf16>
    %56 = vector.shape_cast %55 : vector<1x8x32xbf16> to vector<8x32xbf16>
    %57 = vector.shape_cast %54 : vector<8x32xbf16> to vector<1x8x32xbf16>
    tpu.vector_store %arg9[%c0_24, %c0_25, %c0_26], %57 {strides = array<i32>} : memref<1x8x32xbf16, #tpu.memory_space<vmem>>, vector<1x8x32xbf16>,
    return
  }
  func.func @transform_0(%arg0: i32, %arg1: i32) -> (i32, i32, i32) {
    %c0_i32 = arith.constant 0 : i32
    %c0_i32_0 = arith.constant 0 : i32
    return %arg0, %arg1, %c0_i32 : i32, i32, i32
  }
  func.func @transform_1(%arg0: i32, %arg1: i32) -> (i32, i32) {
    %c0_i32 = arith.constant 0 : i32
    %c0_i32_0 = arith.constant 0 : i32
    %c0_i32_1 = arith.constant 0 : i32
    return %c0_i32, %c0_i32_0 : i32, i32
  }
  func.func @transform_2(%arg0: i32, %arg1: i32) -> (i32, i32) {
    %c0_i32 = arith.constant 0 : i32
    %c0_i32_0 = arith.constant 0 : i32
    %c0_i32_1 = arith.constant 0 : i32
    return %c0_i32, %c0_i32_0 : i32, i32
  }
  func.func @transform_3(%arg0: i32, %arg1: i32) -> (i32, i32) {
    %c0_i32 = arith.constant 0 : i32
    %c0_i32_0 = arith.constant 0 : i32
    %c0_i32_1 = arith.constant 0 : i32
    return %c0_i32, %c0_i32_0 : i32, i32
  }
  func.func @transform_4(%arg0: i32, %arg1: i32) -> (i32, i32) {
    %c0_i32 = arith.constant 0 : i32
    %c0_i32_0 = arith.constant 0 : i32
    %c0_i32_1 = arith.constant 0 : i32
    return %c0_i32, %c0_i32_0 : i32, i32
  }
  func.func @transform_5(%arg0: i32, %arg1: i32) -> (i32, i32) {
    %c0_i32 = arith.constant 0 : i32
    %c0_i32_0 = arith.constant 0 : i32
    %c0_i32_1 = arith.constant 0 : i32
    return %c0_i32, %c0_i32_0 : i32, i32
  }
  func.func @transform_6(%arg0: i32, %arg1: i32) -> (i32, i32) {
    %c0_i32 = arith.constant 0 : i32
    %c0_i32_0 = arith.constant 0 : i32
    %c0_i32_1 = arith.constant 0 : i32
    return %c0_i32, %c0_i32_0 : i32, i32
  }
  func.func @transform_7(%arg0: i32, %arg1: i32) -> (i32, i32, i32) {
    %c0_i32 = arith.constant 0 : i32
    %c0_i32_0 = arith.constant 0 : i32
    return %arg0, %arg1, %c0_i32 : i32, i32, i32
  }
}

</mosaic_0001>

<bundles_post_ra>
// kernel: gpt_forward.7
= control target key start
LH: loop header
LB: loop body
LE: loop exit
PB: predicated region body
PF: predicated region fallthrough
CT: control target
= control target key end

     0   :  { %12 = vsyncpa [#allocation3], 0  ;;  %s860_s21 = smov 0   ;;  %s862_s22 = smov 0   ;;  %s939_s0 = inlined_call_operand.vmem [shape: bf16[2,8,32], index: 0, kind: input, shape index: {}]   ;;  %s940_s1 = inlined_call_operand.vmem [shape: f32[1,32], index: 1, kind: input, shape index: {}]   ;;  %s941_s2 = inlined_call_operand.vmem [shape: f32[1,32], index: 2, kind: input, shape index: {}]   ;;  %s942_s3 = inlined_call_operand.hbm [shape: bf16[32,96], index: 3, kind: input, shape index: {}]   ;;  %s943_s4 = inlined_call_operand.vmem [shape: bf16[2,4,8,8], index: 4, kind: output, shape index: {0}]   ;;  %s944_s5 = inlined_call_operand.vmem [shape: bf16[2,4,8,8], index: 5, kind: output, shape index: {1}]   ;;  %s945_s6 = inlined_call_operand.vmem [shape: bf16[2,4,8,8], index: 6, kind: output, shape index: {2}]  }
   0x1   :  { %s864_s23 = smov 0  }
   0x2 LB: > { %s658_s24 = sadd.s32 4294967295, %s808_s23   ;;  %s30_s25 = sadd.s32 1, %s804_s22  ;;  %s808_s23 = sphi %s864_s23, %s18_s23   ;;  %s804_s22 = sphi %s862_s22, %s947_s22   ;;  %s800_s21 = sphi %s860_s21, %s946_s21  }
   0x3   : > { %p32_p0 = scmp.ge.s32.totalorder %s30_s25, 2  ;;  %p660_p1 = scmp.ge.s32.totalorder %s808_s23, 1 }
   0x4   : > { %p210_p2 = scmp.lt.s32.totalorder %s808_s23, 3  ;;  %p705_p4 = scmp.eq.s32.totalorder %s658_s24, 0 }
   0x5   : > { %s949_s25 = smov (%p32_p0, %s30_s25), 0  ;;  %s227_s28 = sshll.u32 %s942_s3, 4  ;;  %s228_s28 = int_to_ptr.hbm [resolvable:$true] %s227_s28 }
   0x6   : > { %p211_p3 = pnand %p660_p1, %p210_p2  ;;  %s810_s29 = smov [#allocation2]  }
   0x7   : > { %s229_s30 = sshll.u32 %s810_s29, 4  ;;  %s811_s7 = smov 64   ;;  %s230_s30 = int_to_ptr.vmem [resolvable:$true] %s229_s30 }
   0x8   : > { %p701_p5 = pneg %p211_p3  ;;  %s812_s8 = smov 4  }
   0x9   : > { %255 = sbr.rel (%p211_p3) target bundleno = 570 (0x23a), region = 36 }
   0xa   : > { %p702_p6 = pnand %p705_p4, %p701_p5 }
   0xc   : > { %704 = dma.hbm_to_vmem [thread:$0]  (!%p702_p6), %s228_s28, 256, %s230_s30, [#allocation3], %s811_s7, %s811_s7, %s812_s8  }
   0xe   : > { %795 = dma.done.wait (%p705_p4), [#allocation3], 256  }
   0xf   : > { %797 = vsyncadd (%p705_p4), [#allocation3], 4294967040  ;;  %p307_p7 = scmp.lt.s32.totalorder %s800_s21, 1  ;;  %vm343_vm0 = vcmask 261120   ;;  %v813_v3 = vmov 32.0   ;;  %v696_v15 = vld [vmem:[#allocation2 + $0x8] sm:$0xff] }
  0x10   : > { %748 = vrcp.f32 %v813_v3  ;;  %407 = vmatpush.bf16.msra.mxu0 %v696_v15  ;;  %v695_v16 = vld [vmem:[#allocation2] sm:$0xff]  ;;  %vm415_vm5 = vcmask 60416   ;;  %s814_s24 = smov 56   ;;  %s815_s26 = smov 120  }
  0x11   : > { %s951_s21 = smov (!%p307_p7, %s800_s21), 1  ;;  %v746_v26 = vld [vmem:[%s940_s1] ss:$0 sm:$0xff]  ;;  %s816_s27 = smov 96  }
  0x12   : > { %s665_s9 = sshll.u32 %s951_s21, 2  ;;  %v747_v29 = vld [vmem:[%s941_s2] ss:$0 sm:$0xff]  ;;  %s898_s17 = sshll.u32 %s951_s21, 4 }
  0x13   : > { %s313_s12 = scalar_lea.vmem %s939_s0, %s665_s9  ;;  %s904_s20 = scalar_lea.vmem %s943_s4, %s898_s17 }
  0x14   : > { %v339_v0 = vld [vmem:[%s313_s12] sm:$0xf]  ;;  %408 = vmatpush.bf16.msra.mxu0 %v695_v16  ;;  %s817_s21 = smov 88   ;;  %s818_s28 = smov 64  }
  0x15   : > { %v340_v1 = vunpack.c.l.bf16 %v339_v0  ;;  %s819_s29 = smov 80   ;;  %s820_s30 = smov 112  }
  0x16   : > { %v749_v4 = vpop.eup %748  ;;  %s821_s7 = smov 104   ;;  %s822_s8 = smov 48  }
  0x17   : > { %v344_v2 = vsel %vm343_vm0, %v340_v1, 0.0  ;;  %v348_v5 = vmul.f32 32.0, %v749_v4  ;;  %vm352_vm1 = vweird.f32 %v749_v4  ;;  %s823_s9 = smov 40   ;;  %s824_s10 = smov 72  }
  0x18   : > { %345 = vadd.xlane.f32.xlu0 %v344_v2  ;;  %s329_s13 = scalar_lea.vmem %s944_s5, %s898_s17  ;;  %s337_s16 = scalar_lea.vmem %s945_s6, %s898_s17 }
  0x19   : > { %v349_v6 = vsub.f32 1.0, %v348_v5 }
  0x1b   : > { %v350_v7 = vmul.f32 %v749_v4, %v349_v6 }
  0x1d   : > { %v351_v8 = vadd.f32 %v749_v4, %v350_v7 }
  0x1f   : > { %v353_v9 = vsel %vm352_vm1, %v749_v4, %v351_v8 }
  0x8b   : > { %v346_v10 = vpop.xlane.xlu0 %345 }
  0x8c   : > { %v354_v11 = vmul.f32 %v353_v9, %v346_v10 }
  0x8e   : > { %v355_v12 = vsub.f32 %v340_v1, %v354_v11 }
  0x90   : > { %v356_v13 = vmul.f32 %v355_v12, %v355_v12 }
  0x92   : > { %v357_v14 = vsel %vm343_vm0, %v356_v13, 0.0 }
  0x93   : > { %358 = vadd.xlane.f32.xlu0 %v357_v14 }
 0x106   : > { %v359_v17 = vpop.xlane.xlu0 %358 }
 0x107   : > { %v360_v18 = vmul.f32 %v359_v17, %v353_v9 }
 0x109   : > { %v361_v19 = vadd.f32 1e-05, %v360_v18 }
 0x10b   : > { %750 = vrsqrt.f32 %v361_v19  ;;  %vm368_vm3 = vweird.f32 %v361_v19 }
 0x111   : > { %v751_v20 = vpop.eup %750 }
 0x112   : > { %v363_v21 = vmul.f32 %v751_v20, %v361_v19  ;;  %vm369_vm2 = vweird.f32 %v751_v20 }
 0x113   : > { %vm370_vm4 = vmor %vm368_vm3, %vm369_vm2 }
 0x114   : > { %v364_v22 = vmul.f32 %v751_v20, %v363_v21 }
 0x116   : > { %v365_v23 = vmul.f32 0.5, %v364_v22 }
 0x118   : > { %v366_v24 = vsub.f32 1.5, %v365_v23 }
 0x11a   : > { %v367_v25 = vmul.f32 %v751_v20, %v366_v24 }
 0x11c   : > { %v371_v27 = vsel %vm370_vm4, %v751_v20, %v367_v25 }
 0x11d   : > { %v372_v28 = vmul.f32 %v371_v27, %v355_v12 }
 0x11f   : > { %v376_v30 = vmul.f32 %v746_v26, %v372_v28 }
 0x121   : > { %v380_v31 = vadd.f32 %v747_v29, %v376_v30 }
 0x123   : > { %v381_v32 = vpack.c.bf16 %v380_v31, %v380_v31 }
 0x125   : > { %680 = vmatmul.msk.bf16.vlgmr.msra.gmra.mxu0 %vm343_vm0, %v381_v32 }
 0x1a2   : > { %v410_v33 = vpop.f32.mrf.mxu0 }
 0x1a3   : > { %v414_v34 = vpack.c.bf16 %v410_v33, %v410_v33 }
 0x1a5   : > { %436 = vrot.lane.b32.xlu0 %v414_v34, %s814_s24  ;;  %426 = vrot.lane.b32.xlu2 %v414_v34, %s815_s26  ;;  %416 = vst.msk [vmem:[%s904_s20] sm:$0xf] %vm415_vm5, %v414_v34 }
 0x1a6   : > { %418 = vrot.lane.b32.xlu1 %v414_v34, %s816_s27 }
 0x1aa   : > { %v412_v35 = vpop.f32.mrf.mxu0 }
 0x1ad   : > { %431 = vrot.lane.b32.xlu2 %v414_v34, %s817_s21 }
 0x1ae   : > { %422 = vrot.lane.b32.xlu1 %v414_v34, %s818_s28 }
 0x1b5   : > { %446 = vrot.lane.b32.xlu2 %v414_v34, %s819_s29 }
 0x1b6   : > { %441 = vrot.lane.b32.xlu1 %v414_v34, %s820_s30 }
 0x1bd   : > { %456 = vrot.lane.b32.xlu2 %v414_v34, %s821_s7 }
 0x1be   : > { %451 = vrot.lane.b32.xlu1 %v414_v34, %s822_s8 }
 0x1c5   : > { %466 = vrot.lane.b32.xlu2 %v414_v34, %s823_s9 }
 0x1c6   : > { %461 = vrot.lane.b32.xlu1 %v414_v34, %s824_s10 }
 0x1ff   : > { %v427_v36 = vpop.permute.xlu2 %426 }
 0x200   : > { %681 = vst.msk [vmem:[%s904_s20 + $0x4] sm:$0xf] %vm415_vm5, %v427_v36 }
 0x207   : > { %v432_v37 = vpop.permute.xlu2 %431 }
 0x208   : > { %682 = vst.msk [vmem:[%s329_s13 + $0x4] sm:$0xf] %vm415_vm5, %v432_v37 }
 0x20f   : > { %v447_v38 = vpop.permute.xlu2 %446 }
 0x210   : > { %685 = vst.msk [vmem:[%s329_s13 + $0x8] sm:$0xf] %vm415_vm5, %v447_v38 }
 0x217   : > { %v437_v39 = vpop.permute.xlu0 %436  ;;  %v457_v40 = vpop.permute.xlu2 %456 }
 0x218   : > { %683 = vst.msk [vmem:[%s337_s16 + $0x4] sm:$0xf] %vm415_vm5, %v437_v39  ;;  %v419_v41 = vpop.permute.xlu1 %418 }
 0x219   : > { %687 = vst.msk [vmem:[%s904_s20 + $0xc] sm:$0xf] %vm415_vm5, %v457_v40 }
 0x21a   : > { %421 = vst.msk [vmem:[%s329_s13] sm:$0xf] %vm415_vm5, %v419_v41 }
 0x21f   : > { %v467_v42 = vpop.permute.xlu2 %466 }
 0x220   : > { %689 = vst.msk [vmem:[%s337_s16 + $0xc] sm:$0xf] %vm415_vm5, %v467_v42  ;;  %v423_v43 = vpop.permute.xlu1 %422 }
 0x221   : > { %425 = vst.msk [vmem:[%s337_s16] sm:$0xf] %vm415_vm5, %v423_v43 }
 0x228   : > { %v442_v44 = vpop.permute.xlu1 %441 }
 0x229   : > { %684 = vst.msk [vmem:[%s904_s20 + $0x8] sm:$0xf] %vm415_vm5, %v442_v44 }
 0x230   : > { %v452_v45 = vpop.permute.xlu1 %451 }
 0x231   : > { %686 = vst.msk [vmem:[%s337_s16 + $0x8] sm:$0xf] %vm415_vm5, %v452_v45 }
 0x238   : > { %v462_v46 = vpop.permute.xlu1 %461 }
 0x239   : > { %688 = vst.msk [vmem:[%s329_s13 + $0xc] sm:$0xf] %vm415_vm5, %v462_v46 }
 0x23a PF: > { %s18_s23 = sadd.s32 1, %s808_s23   ;;  %s946_s21 = smov %s804_s22 }
 0x23b   : > { %p15_p8 = scmp.ge.s32.totalorder %s18_s23, 4   ;;  %s947_s22 = smov %s949_s25 }
 0x23d   :  { %17 = sbr.rel (!%p15_p8) target bundleno = 2 (0x2), region = 104 }
 0x242   :  { %542 = vsyncpa [#allocation3], 1 }
 0x243   :  { %544 = vsyncpa [#allocation3 + $0x1], 1 }

// kernel: gpt_forward.9
= control target key start
LH: loop header
LB: loop body
LE: loop exit
PB: predicated region body
PF: predicated region fallthrough
CT: control target
= control target key end

     0   :  { %12 = vsyncpa [#allocation3], 0  ;;  %s796_s24 = smov 0   ;;  %s798_s25 = smov 0   ;;  %s866_s0 = inlined_call_operand.vmem [shape: bf16[2,8,32], index: 0, kind: input, shape index: {}]   ;;  %s867_s1 = inlined_call_operand.vmem [shape: f32[1,32], index: 1, kind: input, shape index: {}]   ;;  %s868_s2 = inlined_call_operand.vmem [shape: f32[1,32], index: 2, kind: input, shape index: {}, may-alias: {2,6}]   ;;  %s869_s3 = inlined_call_operand.vmem [shape: bf16[32,128], index: 3, kind: input, shape index: {}]   ;;  %s870_s4 = inlined_call_operand.vmem [shape: f32[1,128], index: 4, kind: input, shape index: {}]   ;;  %s871_s5 = inlined_call_operand.hbm [shape: bf16[128,32], index: 5, kind: input, shape index: {}]   ;;  %s872_s6 = inlined_call_operand.vmem [shape: f32[1,32], index: 6, kind: input, shape index: {}, may-alias: {2,6}]   ;;  %s873_s7 = inlined_call_operand.vmem [shape: bf16[2,8,32], index: 7, kind: output, shape index: {}]  }
   0x1   :  { %s800_s26 = smov 0  }
   0x2 LB: > { %s584_s27 = sadd.s32 4294967295, %s750_s26   ;;  %s30_s28 = sadd.s32 1, %s746_s25  ;;  %s750_s26 = sphi %s800_s26, %s18_s26   ;;  %s746_s25 = sphi %s798_s25, %s875_s25   ;;  %s742_s24 = sphi %s796_s24, %s874_s24  }
   0x3   : > { %p32_p0 = scmp.ge.s32.totalorder %s30_s28, 2  ;;  %p586_p1 = scmp.ge.s32.totalorder %s750_s26, 1 }
   0x4   : > { %p217_p2 = scmp.lt.s32.totalorder %s750_s26, 3  ;;  %p654_p4 = scmp.eq.s32.totalorder %s584_s27, 0 }
   0x5   : > { %s877_s28 = smov (%p32_p0, %s30_s28), 0  ;;  %s240_s8 = sshll.u32 %s871_s5, 4  ;;  %s241_s8 = int_to_ptr.hbm [resolvable:$true] %s240_s8 }
   0x6   : > { %p218_p3 = pnand %p586_p1, %p217_p2  ;;  %s752_s9 = smov [#allocation2]  }
   0x7   : > { %s242_s10 = sshll.u32 %s752_s9, 4  ;;  %s753_s11 = smov 64   ;;  %s243_s10 = int_to_ptr.vmem [resolvable:$true] %s242_s10 }
   0x8   : > { %p650_p5 = pneg %p218_p3  ;;  %s754_s12 = smov 4  }
   0x9   : > { %271 = sbr.rel (%p218_p3) target bundleno = 578 (0x242), region = 48 }
   0xa   : > { %p651_p6 = pnand %p654_p4, %p650_p5 }
   0xc   : > { %653 = dma.hbm_to_vmem [thread:$0]  (!%p651_p6), %s241_s8, 1024, %s243_s10, [#allocation3], %s753_s11, %s753_s11, %s754_s12  }
   0xe   : > { %737 = dma.done.wait (%p654_p4), [#allocation3], 1024  }
   0xf   : > { %739 = vsyncadd (%p654_p4), [#allocation3], 4294966272  ;;  %p308_p7 = scmp.lt.s32.totalorder %s742_s24, 1  ;;  %vm327_vm0 = vcmask 261120   ;;  %v755_v3 = vmov 32.0   ;;  %v637_v15 = vld [vmem:[%s869_s3 + $0x8] sm:$0xff] }
  0x10   : > { %688 = vrcp.f32 %v755_v3  ;;  %395 = vmatpush.bf16.msra.mxu0 %v637_v15  ;;  %v636_v16 = vld [vmem:[%s869_s3] sm:$0xff]  ;;  %v645_v17 = vld [vmem:[#allocation2 + $0x38] sm:$0xff]  ;;  %v644_v20 = vld [vmem:[#allocation2 + $0x30] sm:$0xff]  ;;  %vm495_vm5 = vcmask 257024  }
  0x11   : > { %s879_s24 = smov (!%p308_p7, %s742_s24), 1  ;;  %480 = vmatpush.bf16.msra.mxu1 %v645_v17  ;;  %v684_v28 = vld [vmem:[%s867_s1] ss:$0 sm:$0xff]  ;;  %v643_v35 = vld [vmem:[#allocation2 + $0x28] sm:$0xff]  ;;  %v641_v37 = vld [vmem:[#allocation2 + $0x18] sm:$0xff] }
  0x12   : > { %s591_s13 = sshll.u32 %s879_s24, 2  ;;  %v685_v31 = vld [vmem:[%s868_s2] ss:$0 sm:$0xff]  ;;  %v640_v38 = vld [vmem:[#allocation2 + $0x10] sm:$0xff]  ;;  %v639_v39 = vld [vmem:[#allocation2 + $0x8] sm:$0xff] }
  0x13   : > { %s314_s16 = scalar_lea.vmem %s866_s0, %s591_s13  ;;  %v642_v36 = vld [vmem:[#allocation2 + $0x20] sm:$0xff]  ;;  %s321_s12 = scalar_lea.vmem %s873_s7, %s591_s13 }
  0x14   : > { %v323_v0 = vld [vmem:[%s314_s16] sm:$0xf]  ;;  %396 = vmatpush.bf16.msra.mxu0 %v636_v16 }
  0x15   : > { %v826_v1 = vunpack.c.l.bf16 %v323_v0  ;;  %481 = vmatpush.bf16.msra.mxu1 %v644_v20  ;;  %v638_v40 = vld [vmem:[#allocation2] sm:$0xff] }
  0x16   : > { %v689_v4 = vpop.eup %688  ;;  %v686_v41 = vld [vmem:[%s870_s4] ss:$0 sm:$0xff] }
  0x17   : > { %v328_v2 = vsel %vm327_vm0, %v826_v1, 0.0  ;;  %v332_v5 = vmul.f32 32.0, %v689_v4  ;;  %vm336_vm1 = vweird.f32 %v689_v4  ;;  %v687_v55 = vld [vmem:[%s872_s6] ss:$0 sm:$0xff] }
  0x18   : > { %329 = vadd.xlane.f32.xlu0 %v328_v2 }
  0x19   : > { %v333_v6 = vsub.f32 1.0, %v332_v5  ;;  %482 = vmatpush.bf16.msra.mxu1 %v643_v35 }
  0x1b   : > { %v334_v7 = vmul.f32 %v689_v4, %v333_v6 }
  0x1d   : > { %v335_v8 = vadd.f32 %v689_v4, %v334_v7  ;;  %483 = vmatpush.bf16.msra.mxu1 %v642_v36 }
  0x1f   : > { %v337_v9 = vsel %vm336_vm1, %v689_v4, %v335_v8 }
  0x21   : > { %484 = vmatpush.bf16.msra.mxu1 %v641_v37 }
  0x25   : > { %485 = vmatpush.bf16.msra.mxu1 %v640_v38 }
  0x29   : > { %486 = vmatpush.bf16.msra.mxu1 %v639_v39 }
  0x2d   : > { %487 = vmatpush.bf16.msra.mxu1 %v638_v40 }
  0x8b   : > { %v330_v10 = vpop.xlane.xlu0 %329 }
  0x8c   : > { %v338_v11 = vmul.f32 %v337_v9, %v330_v10 }
  0x8e   : > { %v339_v12 = vsub.f32 %v826_v1, %v338_v11 }
  0x90   : > { %v340_v13 = vmul.f32 %v339_v12, %v339_v12 }
  0x92   : > { %v341_v14 = vsel %vm327_vm0, %v340_v13, 0.0 }
  0x93   : > { %342 = vadd.xlane.f32.xlu0 %v341_v14 }
 0x106   : > { %v343_v18 = vpop.xlane.xlu0 %342 }
 0x107   : > { %v344_v19 = vmul.f32 %v343_v18, %v337_v9 }
 0x109   : > { %v345_v21 = vadd.f32 1e-05, %v344_v19 }
 0x10b   : > { %690 = vrsqrt.f32 %v345_v21  ;;  %vm352_vm3 = vweird.f32 %v345_v21 }
 0x111   : > { %v691_v22 = vpop.eup %690 }
 0x112   : > { %v347_v23 = vmul.f32 %v691_v22, %v345_v21  ;;  %vm353_vm2 = vweird.f32 %v691_v22 }
 0x113   : > { %vm354_vm4 = vmor %vm352_vm3, %vm353_vm2 }
 0x114   : > { %v348_v24 = vmul.f32 %v691_v22, %v347_v23 }
 0x116   : > { %v349_v25 = vmul.f32 0.5, %v348_v24 }
 0x118   : > { %v350_v26 = vsub.f32 1.5, %v349_v25 }
 0x11a   : > { %v351_v27 = vmul.f32 %v691_v22, %v350_v26 }
 0x11c   : > { %v355_v29 = vsel %vm354_vm4, %v691_v22, %v351_v27 }
 0x11d   : > { %v356_v30 = vmul.f32 %v355_v29, %v339_v12 }
 0x11f   : > { %v360_v32 = vmul.f32 %v684_v28, %v356_v30 }
 0x121   : > { %v364_v33 = vadd.f32 %v685_v31, %v360_v32 }
 0x123   : > { %v365_v34 = vpack.c.bf16 %v364_v33, %v364_v33 }
 0x125   : > { %601 = vmatmul.msk.bf16.vlgmr.msra.gmra.mxu0 %vm327_vm0, %v365_v34 }
 0x1a2   : > { %v398_v42 = vpop.f32.mrf.mxu0 }
 0x1a3   : > { %v399_v43 = vadd.f32 %v686_v41, %v398_v42 }
 0x1a5   : > { %v403_v44 = vmul.f32 0.044715, %v399_v43  ;;  %v402_v51 = vmul.f32 0.5, %v399_v43 }
 0x1a7   : > { %v404_v45 = vmul.f32 %v403_v44, %v399_v43 }
 0x1a9   : > { %v405_v46 = vmul.f32 %v404_v45, %v399_v43 }
 0x1aa   : > { %v400_v47 = vpop.f32.mrf.mxu0 }
 0x1ab   : > { %v406_v48 = vadd.f32 %v405_v46, %v399_v43 }
 0x1ad   : > { %v407_v49 = vmul.f32 0.7978845, %v406_v48 }
 0x1af   : > { %692 = vtanh.f32 %v407_v49 }
 0x1b5   : > { %v693_v50 = vpop.eup %692 }
 0x1b6   : > { %v409_v52 = vadd.f32 1.0, %v693_v50 }
 0x1b8   : > { %v410_v53 = vmul.f32 %v409_v52, %v402_v51 }
 0x1ba   : > { %v411_v54 = vpack.c.bf16 %v410_v53, %v410_v53 }
 0x1bc   : > { %488 = vmatmul.bf16.vlgmr.msra.gmra.mxu1 %v411_v54 }
 0x239   : > { %v489_v56 = vpop.f32.mrf.mxu1 }
 0x23a   : > { %v490_v57 = vadd.f32 %v687_v55, %v489_v56 }
 0x23c   : > { %v493_v58 = vadd.f32 %v490_v57, %v826_v1 }
 0x23e   : > { %v494_v59 = vpack.c.bf16 %v493_v58, %v493_v58 }
 0x240   : > { %496 = vst.msk [vmem:[%s321_s12] sm:$0xf] %vm495_vm5, %v494_v59 }
 0x241   : > { %v491_v60 = vpop.f32.mrf.mxu1 }
 0x242 PF: > { %s18_s26 = sadd.s32 1, %s750_s26   ;;  %s874_s24 = smov %s746_s25 }
 0x243   : > { %p15_p8 = scmp.ge.s32.totalorder %s18_s26, 4   ;;  %s875_s25 = smov %s877_s28 }
 0x245   :  { %17 = sbr.rel (!%p15_p8) target bundleno = 2 (0x2), region = 83 }
 0x24a   :  { %522 = vsyncpa [#allocation3], 1 }
 0x24b   :  { %524 = vsyncpa [#allocation3 + $0x1], 1 }

// kernel: gpt_forward.11
= control target key start
LH: loop header
LB: loop body
LE: loop exit
PB: predicated region body
PF: predicated region fallthrough
CT: control target
= control target key end

     0   :  { %s1171_s21 = smov 0   ;;  %s1173_s22 = smov 0   ;;  %s1349_s0 = inlined_call_operand.vmem [shape: bf16[2,8,32], index: 0, kind: input, shape index: {}]   ;;  %s1350_s1 = inlined_call_operand.vmem [shape: bf16[2,4,8,8], index: 1, kind: input, shape index: {}]   ;;  %s1351_s2 = inlined_call_operand.vmem [shape: bf16[2,4,8,8], index: 2, kind: input, shape index: {}]   ;;  %s1352_s3 = inlined_call_operand.vmem [shape: bf16[2,4,8,8], index: 3, kind: input, shape index: {}]   ;;  %s1353_s4 = inlined_call_operand.vmem [shape: bf16[4,8,32], index: 4, kind: input, shape index: {}]   ;;  %s1354_s5 = inlined_call_operand.vmem [shape: f32[1,32], index: 5, kind: input, shape index: {}]   ;;  %s1355_s6 = inlined_call_operand.vmem [shape: bf16[2,8,32], index: 6, kind: output, shape index: {}]  }
   0x1   :  { %s1175_s23 = smov 0  }
   0x2 LB: > { %s35_s24 = sadd.s32 1, %s1127_s22  ;;  %p1028_p0 = scmp.ge.s32.totalorder %s1131_s23, 1  ;;  %s1131_s23 = sphi %s1175_s23, %s16_s23   ;;  %s1127_s22 = sphi %s1173_s22, %s1357_s22   ;;  %s1123_s21 = sphi %s1171_s21, %s1356_s21  }
   0x3   : > { %p37_p1 = scmp.ge.s32.totalorder %s35_s24, 2  ;;  %p298_p2 = scmp.lt.s32.totalorder %s1131_s23, 3 }
   0x5   : > { %s1359_s24 = smov (%p37_p1, %s35_s24), 0  ;;  %p299_p3 = pnand %p1028_p0, %p298_p2 }
   0x6   : > { %p360_p4 = scmp.lt.s32.totalorder (!%p299_p3), %s1123_s21, 1 }
   0x7   : > { %302 = sbr.rel (%p299_p3) target bundleno = 789 (0x315), region = 44 }
   0xc   : > { %s1361_s21 = smov (!%p360_p4, %s1123_s21), 1  ;;  %vm420_vm0 = vcmask 64512   ;;  %vm411_vm1 = vcmask 7168   ;;  %v1133_v12 = vmov -1e+30   ;;  %v518_v13 = vlaneseq }
   0xd   : > { %s1192_s25 = sshll.u32 %s1361_s21, 4  ;;  %412 = vst.msk [vmem:[#allocation2] sm:$0xff] %vm411_vm1, %v1133_v12  ;;  %v1134_v32 = vmov 0   ;;  %v1135_v33 = vmov 0.0   ;;  %vm663_vm3 = vcmask 1043456   ;;  %s1029_s19 = sshll.u32 %s1361_s21, 2 }
   0xe   : > { %s384_s28 = scalar_lea.vmem %s1351_s2, %s1192_s25  ;;  %s374_s7 = scalar_lea.vmem %s1350_s1, %s1192_s25  ;;  %413 = vst.msk [vmem:[#allocation2 + $0x8] sm:$0xff] %vm411_vm1, %v1133_v12  ;;  %v519_v14 = vshrl.u32 %v518_v13, 7  ;;  %v524_v15 = vand.u32 127, %v518_v13  ;;  %1082 = vset.pattern.permute.xlu0 %v1134_v32  ;;  %1081 = vset.pattern.permute.xlu2 %v1134_v32  ;;  %vm874_vm4 = vcmask 261120   ;;  %vm891_vm5 = vcmask 257024  }
   0xf   : > { %v433_v0 = vld [vmem:[%s384_s28] sm:$0xf]  ;;  %v435_v1 = vld [vmem:[%s384_s28 + $0x8] sm:$0xf]  ;;  %v434_v4 = vld [vmem:[%s384_s28 + $0x4] sm:$0xf]  ;;  %1083 = vset.pattern.permute.xlu1 %v1134_v32  ;;  %s396_s10 = scalar_lea.vmem %s1352_s3, %s1192_s25  ;;  %s366_s26 = scalar_lea.vmem %s1349_s0, %s1029_s19 }
  0x10   : > { %v446_v2 = vsel %vm420_vm0, %v433_v0, 0  ;;  %v484_v3 = vsel %vm420_vm0, %v435_v1, 0  ;;  %v465_v5 = vsel %vm420_vm0, %v434_v4, 0  ;;  %v436_v6 = vld [vmem:[%s384_s28 + $0xc] sm:$0xf]  ;;  %414 = vst.msk [vmem:[#allocation2 + $0x10] sm:$0xff] %vm411_vm1, %v1133_v12  ;;  %vm528_vm2 = vcmp.le.s32.totalorder %v524_v15, %v519_v14  ;;  %s405_s30 = scalar_lea.vmem %s1355_s6, %s1029_s19 }
  0x11   : > { %455 = vmatpush.bf16.xpose.msra.mxu0 %v446_v2  ;;  %493 = vmatpush.bf16.xpose.msra.mxu2 %v484_v3  ;;  %v503_v7 = vsel %vm420_vm0, %v436_v6, 0  ;;  %v429_v8 = vld [vmem:[%s374_s7] sm:$0xf]  ;;  %v431_v9 = vld [vmem:[%s374_s7 + $0x8] sm:$0xf]  ;;  %415 = vst.msk [vmem:[#allocation2 + $0x18] sm:$0xff] %vm411_vm1, %v1133_v12 }
  0x12   : > { %474 = vmatpush.bf16.xpose.msra.mxu1 %v465_v5  ;;  %512 = vmatpush.bf16.xpose.msra.mxu3 %v503_v7  ;;  %v430_v10 = vld [vmem:[%s374_s7 + $0x4] sm:$0xf]  ;;  %v432_v11 = vld [vmem:[%s374_s7 + $0xc] sm:$0xf]  ;;  %418 = vst.msk [vmem:[#allocation3 + $0x10] sm:$0xff] %vm411_vm1, %v1135_v33 }
  0x13   : > { %416 = vst.msk [vmem:[#allocation3] sm:$0xff] %vm411_vm1, %v1135_v33  ;;  %v439_v50 = vld [vmem:[%s396_s10 + $0x8] sm:$0xf]  ;;  %v440_v52 = vld [vmem:[%s396_s10 + $0xc] sm:$0xf] }
  0x14   : > { %417 = vst.msk [vmem:[#allocation3 + $0x8] sm:$0xff] %vm411_vm1, %v1135_v33  ;;  %v1242_v34 = vld [vmem:[#allocation2] sm:$0xff]  ;;  %v703_v51 = vsel %vm663_vm3, %v439_v50, 0  ;;  %v722_v53 = vsel %vm663_vm3, %v440_v52, 0 }
  0x15   : > { %419 = vst.msk [vmem:[#allocation3 + $0x18] sm:$0xff] %vm411_vm1, %v1135_v33  ;;  %v1254_v40 = vld [vmem:[#allocation2 + $0x8] sm:$0xff]  ;;  %v437_v54 = vld [vmem:[%s396_s10] sm:$0xf]  ;;  %v438_v57 = vld [vmem:[%s396_s10 + $0x4] sm:$0xf] }
  0x16   : > { %421 = vst.msk [vmem:[#allocation4] sm:$0xff] %vm420_vm0, %v1135_v33  ;;  %v665_v55 = vsel %vm663_vm3, %v437_v54, 0  ;;  %v684_v59 = vsel %vm663_vm3, %v438_v57, 0 }
  0x17   : > { %422 = vst.msk [vmem:[#allocation4 + $0x8] sm:$0xff] %vm420_vm0, %v1135_v33  ;;  %v1252_v38 = vld [vmem:[#allocation2 + $0x10] sm:$0xff] }
  0x18   : > { %1037 = vmatmul.msk.bf16.vlgmr.msra.gmra.mxu0 %vm420_vm0, %v429_v8  ;;  %1039 = vmatmul.msk.bf16.vlgmr.msra.gmra.mxu2 %vm420_vm0, %v431_v9  ;;  %423 = vst.msk [vmem:[#allocation4 + $0x10] sm:$0xff] %vm420_vm0, %v1135_v33  ;;  %v538_v46 = vld [vmem:[#allocation2 + $0x18] sm:$0xff] }
  0x19   : > { %1038 = vmatmul.msk.bf16.vlgmr.msra.gmra.mxu1 %vm420_vm0, %v430_v10  ;;  %1040 = vmatmul.msk.bf16.vlgmr.msra.gmra.mxu3 %vm420_vm0, %v432_v11  ;;  %424 = vst.msk [vmem:[#allocation4 + $0x18] sm:$0xff] %vm420_vm0, %v1135_v33 }
  0x1a   : > { %712 = vmatpush.bf16.msrb.mxu2 %v703_v51  ;;  %731 = vmatpush.bf16.msrb.mxu3 %v722_v53 }
  0x1b   : > { %674 = vmatpush.bf16.msrb.mxu0 %v665_v55  ;;  %693 = vmatpush.bf16.msrb.mxu1 %v684_v59 }
  0x1f   : > { %v630_v53 = vld [vmem:[#allocation4 + $0x10] sm:$0xff] }
  0x20   : > { %v631_v51 = vld [vmem:[#allocation4 + $0x18] sm:$0xff] }
  0x95   : > { %v457_v16 = vpop.f32.mrf.mxu0 }
  0x96   : > { %v1215_v17 = vsel %vm528_vm2, %v457_v16, -1e+30  ;;  %v476_v18 = vpop.f32.mrf.mxu1 }
  0x97   : > { %v539_v19 = vsel %vm420_vm0, %v1215_v17, -inf  ;;  %v1220_v20 = vsel %vm528_vm2, %v476_v18, -1e+30 }
  0x98   : > { %540 = vmax.xlane.f32.xlu1 %v539_v19  ;;  %v542_v25 = vsel %vm420_vm0, %v1220_v20, -inf }
  0x9b   : > { %v495_v21 = vpop.f32.mrf.mxu2 }
  0x9c   : > { %v1223_v22 = vsel %vm528_vm2, %v495_v21, -1e+30  ;;  %v514_v26 = vpop.f32.mrf.mxu3 }
  0x9d   : > { %v459_v23 = vpop.f32.mrf.mxu0  ;;  %v545_v24 = vsel %vm420_vm0, %v1223_v22, -inf  ;;  %v1230_v28 = vsel %vm528_vm2, %v514_v26, -1e+30  ;;  %v601_v26 = vld [vmem:[#allocation3 + $0x10] sm:$0xff] }
  0x9e   : > { %546 = vmax.xlane.f32.xlu0 %v545_v24  ;;  %v478_v27 = vpop.f32.mrf.mxu1  ;;  %v548_v29 = vsel %vm420_vm0, %v1230_v28, -inf }
  0xa0   : > { %543 = vmax.xlane.f32.xlu1 %v542_v25 }
  0xa3   : > { %v497_v30 = vpop.f32.mrf.mxu2 }
  0xa4   : > { %v516_v31 = vpop.f32.mrf.mxu3  ;;  %v602_v30 = vld [vmem:[#allocation3 + $0x18] sm:$0xff] }
  0xa6   : > { %549 = vmax.xlane.f32.xlu0 %v548_v29 }
 0x10b   : > { %v541_v35 = vpop.xlane.xlu1 %540 }
 0x10c   : > { %v1245_v36 = vmax.f32 %v1242_v34, %v541_v35  ;;  %v599_v35 = vld [vmem:[#allocation3] sm:$0xff] }
 0x10e   : > { %v555_v37 = vsub.f32 %v1242_v34, %v1245_v36  ;;  %745 = vst.msk [vmem:[#allocation2] sm:$0xff] %vm411_vm1, %v1245_v36  ;;  %569 = vperm.xlu0 %1082, %v1245_v36  }
 0x110   : > { %v559_v21 = vmul.f32 1.442695, %v555_v37 }
 0x111   : > { %v547_v39 = vpop.xlane.xlu0 %546 }
 0x112   : > { %v1257_v41 = vmax.f32 %v1252_v38, %v547_v39 }
 0x113   : > { %v544_v42 = vpop.xlane.xlu1 %543 }
 0x114   : > { %v557_v43 = vsub.f32 %v1252_v38, %v1257_v41  ;;  %747 = vst.msk [vmem:[#allocation2 + $0x10] sm:$0xff] %vm411_vm1, %v1257_v41  ;;  %v1264_v44 = vmax.f32 %v1254_v40, %v544_v42  ;;  %579 = vperm.xlu2 %1081, %v1257_v41   ;;  %v600_v42 = vld [vmem:[#allocation3 + $0x8] sm:$0xff] }
 0x116   : > { %v556_v45 = vsub.f32 %v1254_v40, %v1264_v44  ;;  %746 = vst.msk [vmem:[#allocation2 + $0x8] sm:$0xff] %vm411_vm1, %v1264_v44  ;;  %574 = vperm.xlu1 %1083, %v1264_v44  }
 0x118   : > { %v561_v23 = vmul.f32 1.442695, %v556_v45 }
 0x119   : > { %v550_v47 = vpop.xlane.xlu0 %549 }
 0x11a   : > { %v554_v48 = vmax.f32 %v538_v46, %v550_v47 }
 0x11c   : > { %v558_v49 = vsub.f32 %v538_v46, %v554_v48  ;;  %748 = vst.msk [vmem:[#allocation2 + $0x18] sm:$0xff] %vm411_vm1, %v554_v48  ;;  %584 = vperm.xlu2 %1081, %v554_v48  }
 0x11e   : > { %v565_v15 = vmul.f32 1.442695, %v558_v49 }
 0x16e   : > { %v580_v56 = vpop.permute.xlu2 %579 }
 0x16f   : > { %v589_v58 = vsub.f32 %v1223_v22, %v580_v56 }
 0x171   : > { %v595_v60 = vmul.f32 1.442695, %v589_v58 }
 0x173   : > { %1085 = vpow2.f32 %v595_v60 }
 0x176   : > { %v585_v61 = vpop.permute.xlu2 %584 }
 0x177   : > { %v590_v62 = vsub.f32 %v1230_v28, %v585_v61 }
 0x179   : > { %v1086_v63 = vpop.eup %1085  ;;  %v597_v0 = vmul.f32 1.442695, %v590_v62 }
 0x17a   : > { %v613_v1 = vsel %vm420_vm0, %v1086_v63, 0.0  ;;  %v658_v2 = vpack.c.bf16 %v1086_v63, %v1086_v63 }
 0x17b   : > { %1087 = vpow2.f32 %v597_v0  ;;  %614 = vadd.xlane.f32.xlu2 %v613_v1  ;;  %v628_v0 = vld [vmem:[#allocation4] sm:$0xff] }
 0x17c   : > { %1043 = vmatmul.msk.bf16.vlgmr.msrb.gmra.mxu2 %vm420_vm0, %v658_v2 }
 0x180   : > { %v570_v3 = vpop.permute.xlu0 %569 }
 0x181   : > { %v1088_v4 = vpop.eup %1087  ;;  %v587_v5 = vsub.f32 %v1215_v17, %v570_v3 }
 0x182   : > { %v616_v6 = vsel %vm420_vm0, %v1088_v4, 0.0  ;;  %v659_v7 = vpack.c.bf16 %v1088_v4, %v1088_v4 }
 0x183   : > { %v591_v8 = vmul.f32 1.442695, %v587_v5  ;;  %617 = vadd.xlane.f32.xlu1 %v616_v6  ;;  %v629_v6 = vld [vmem:[#allocation4 + $0x8] sm:$0xff] }
 0x184   : > { %1044 = vmatmul.msk.bf16.vlgmr.msrb.gmra.mxu3 %vm420_vm0, %v659_v7 }
 0x185   : > { %1089 = vpow2.f32 %v591_v8 }
 0x188   : > { %v575_v9 = vpop.permute.xlu1 %574 }
 0x189   : > { %v588_v10 = vsub.f32 %v1220_v20, %v575_v9  ;;  %v563_v20 = vmul.f32 1.442695, %v557_v43 }
 0x18b   : > { %v1090_v11 = vpop.eup %1089  ;;  %v593_v12 = vmul.f32 1.442695, %v588_v10  ;;  %v795_v10 = vld [vmem:[%s1353_s4 + $0xc] sm:$0xf] }
 0x18c   : > { %v607_v13 = vsel %vm420_vm0, %v1090_v11, 0.0  ;;  %v656_v14 = vpack.c.bf16 %v1090_v11, %v1090_v11  ;;  %v859_v11 = vsel %vm663_vm3, %v795_v10, 0 }
 0x18d   : > { %1091 = vpow2.f32 %v593_v12  ;;  %608 = vadd.xlane.f32.xlu0 %v607_v13  ;;  %868 = vmatpush.bf16.msra.mxu3 %v859_v11  ;;  %v794_v12 = vld [vmem:[%s1353_s4 + $0x8] sm:$0xf] }
 0x18e   : > { %1041 = vmatmul.msk.bf16.vlgmr.msrb.gmra.mxu0 %vm420_vm0, %v656_v14  ;;  %1093 = vpow2.f32 %v565_v15  ;;  %v840_v13 = vsel %vm663_vm3, %v794_v12, 0  ;;  %v793_v14 = vld [vmem:[%s1353_s4 + $0x4] sm:$0xf] }
 0x18f   : > { %1095 = vpow2.f32 %v563_v20  ;;  %849 = vmatpush.bf16.msra.mxu2 %v840_v13  ;;  %v821_v15 = vsel %vm663_vm3, %v793_v14, 0 }
 0x190   : > { %1097 = vpow2.f32 %v559_v21  ;;  %830 = vmatpush.bf16.msra.mxu1 %v821_v15 }
 0x191   : > { %1099 = vpow2.f32 %v561_v23 }
 0x193   : > { %v1092_v16 = vpop.eup %1091 }
 0x194   : > { %v610_v17 = vsel %vm420_vm0, %v1092_v16, 0.0  ;;  %v657_v18 = vpack.c.bf16 %v1092_v16, %v1092_v16  ;;  %v1094_v19 = vpop.eup %1093  ;;  %v792_v16 = vld [vmem:[%s1353_s4] sm:$0xf] }
 0x195   : > { %611 = vadd.xlane.f32.xlu2 %v610_v17  ;;  %v1096_v22 = vpop.eup %1095  ;;  %v606_v31 = vmul.f32 %v1094_v19, %v602_v30  ;;  %v802_v17 = vsel %vm663_vm3, %v792_v16, 0 }
 0x196   : > { %1042 = vmatmul.msk.bf16.vlgmr.msrb.gmra.mxu1 %vm420_vm0, %v657_v18  ;;  %v1098_v24 = vpop.eup %1097  ;;  %v605_v27 = vmul.f32 %v1096_v22, %v601_v26  ;;  %811 = vmatpush.bf16.msra.mxu0 %v802_v17 }
 0x197   : > { %v1100_v25 = vpop.eup %1099  ;;  %v603_v38 = vmul.f32 %v1098_v24, %v599_v35 }
 0x198   : > { %v604_v46 = vmul.f32 %v1100_v25, %v600_v42 }
 0x19c   : > { %649 = vperm.xlu1 %1083, %v1094_v19  }
 0x1ad   : > { %644 = vperm.xlu2 %1081, %v1096_v22  }
 0x1b5   : > { %634 = vperm.xlu2 %1081, %v1098_v24  }
 0x1bd   : > { %639 = vperm.xlu2 %1081, %v1100_v25  }
 0x1ee   : > { %v615_v28 = vpop.xlane.xlu2 %614 }
 0x1ef   : > { %v621_v29 = vadd.f32 %v615_v28, %v605_v27 }
 0x1f1   : > { %626 = vst.msk [vmem:[#allocation3 + $0x10] sm:$0xff] %vm411_vm1, %v621_v29 }
 0x1f6   : > { %v618_v32 = vpop.xlane.xlu1 %617 }
 0x1f7   : > { %v622_v33 = vadd.f32 %v618_v32, %v606_v31 }
 0x1f8   : > { %v758_v34 = vld [vmem:[#allocation3 + $0x10] sm:$0xff] }
 0x1f9   : > { %627 = vst.msk [vmem:[#allocation3 + $0x18] sm:$0xff] %vm411_vm1, %v622_v33  ;;  %1101 = vrcp.f32 %v758_v34 }
 0x1ff   : > { %v1102_v36 = vpop.eup %1101  ;;  %v714_v37 = vpop.f32.mrf.mxu2 }
 0x200   : > { %776 = vperm.xlu0 %1082, %v1102_v36   ;;  %v609_v39 = vpop.xlane.xlu0 %608  ;;  %v759_v40 = vld [vmem:[#allocation3 + $0x18] sm:$0xff] }
 0x201   : > { %v619_v41 = vadd.f32 %v609_v39, %v603_v38  ;;  %1103 = vrcp.f32 %v759_v40 }
 0x203   : > { %624 = vst.msk [vmem:[#allocation3] sm:$0xff] %vm411_vm1, %v619_v41 }
 0x207   : > { %v1104_v43 = vpop.eup %1103  ;;  %v716_v44 = vpop.f32.mrf.mxu2 }
 0x208   : > { %v733_v45 = vpop.f32.mrf.mxu3  ;;  %v612_v47 = vpop.xlane.xlu2 %611  ;;  %781 = vperm.xlu2 %1081, %v1104_v43   ;;  %v882_v43 = vld [vmem:[%s366_s26] sm:$0xf] }
 0x209   : > { %v620_v48 = vadd.f32 %v612_v47, %v604_v46  ;;  %v883_v47 = vunpack.c.l.bf16 %v882_v43 }
 0x20a   : > { %v756_v49 = vld [vmem:[#allocation3] sm:$0xff] }
 0x20b   : > { %625 = vst.msk [vmem:[#allocation3 + $0x8] sm:$0xff] %vm411_vm1, %v620_v48  ;;  %v676_v50 = vpop.f32.mrf.mxu0  ;;  %1105 = vrcp.f32 %v756_v49 }
 0x20e   : > { %v650_v52 = vpop.permute.xlu1 %649 }
 0x20f   : > { %v655_v54 = vmul.f32 %v650_v52, %v631_v51 }
 0x210   : > { %v735_v55 = vpop.f32.mrf.mxu3  ;;  %v645_v56 = vpop.permute.xlu2 %644 }
 0x211   : > { %v1106_v57 = vpop.eup %1105  ;;  %v740_v58 = vadd.f32 %v733_v45, %v655_v54  ;;  %v654_v59 = vmul.f32 %v645_v56, %v630_v53 }
 0x212   : > { %766 = vperm.xlu1 %1083, %v1106_v57   ;;  %v757_v60 = vld [vmem:[#allocation3 + $0x8] sm:$0xff] }
 0x213   : > { %744 = vst.msk [vmem:[#allocation4 + $0x18] sm:$0xff] %vm420_vm0, %v740_v58  ;;  %v739_v61 = vadd.f32 %v714_v37, %v654_v59  ;;  %v678_v62 = vpop.f32.mrf.mxu0  ;;  %v695_v63 = vpop.f32.mrf.mxu1  ;;  %1107 = vrcp.f32 %v757_v60 }
 0x215   : > { %743 = vst.msk [vmem:[#allocation4 + $0x10] sm:$0xff] %vm420_vm0, %v739_v61 }
 0x218   : > { %v635_v1 = vpop.permute.xlu2 %634 }
 0x219   : > { %v1108_v2 = vpop.eup %1107  ;;  %v652_v3 = vmul.f32 %v635_v1, %v628_v0 }
 0x21a   : > { %771 = vperm.xlu2 %1081, %v1108_v2   ;;  %v755_v18 = vld [vmem:[#allocation4 + $0x18] sm:$0xff] }
 0x21b   : > { %v737_v4 = vadd.f32 %v676_v50, %v652_v3  ;;  %v697_v5 = vpop.f32.mrf.mxu1  ;;  %v1084_v50 = vld [vmem:[%s1354_s5] ss:$0 sm:$0xff] }
 0x21c   : > { %v754_v23 = vld [vmem:[#allocation4 + $0x10] sm:$0xff] }
 0x21d   : > { %741 = vst.msk [vmem:[#allocation4] sm:$0xff] %vm420_vm0, %v737_v4 }
 0x220   : > { %v640_v7 = vpop.permute.xlu2 %639 }
 0x221   : > { %v653_v8 = vmul.f32 %v640_v7, %v629_v6 }
 0x223   : > { %v738_v9 = vadd.f32 %v695_v63, %v653_v8 }
 0x224   : > { %v752_v31 = vld [vmem:[#allocation4] sm:$0xff] }
 0x225   : > { %742 = vst.msk [vmem:[#allocation4 + $0x8] sm:$0xff] %vm420_vm0, %v738_v9 }
 0x22c   : > { %v753_v25 = vld [vmem:[#allocation4 + $0x8] sm:$0xff] }
 0x262   : > { %v782_v19 = vpop.permute.xlu2 %781 }
 0x263   : > { %v787_v20 = vmul.f32 %v782_v19, %v755_v18 }
 0x265   : > { %v791_v21 = vpack.c.bf16 %v787_v20, %v787_v20 }
 0x267   : > { %1048 = vmatmul.msk.bf16.vlgmr.msra.gmra.mxu3 %vm420_vm0, %v791_v21 }
 0x272   : > { %v777_v22 = vpop.permute.xlu0 %776 }
 0x273   : > { %v786_v24 = vmul.f32 %v777_v22, %v754_v23 }
 0x274   : > { %v772_v26 = vpop.permute.xlu2 %771 }
 0x275   : > { %v790_v27 = vpack.c.bf16 %v786_v24, %v786_v24  ;;  %v785_v28 = vmul.f32 %v772_v26, %v753_v25 }
 0x277   : > { %v789_v29 = vpack.c.bf16 %v785_v28, %v785_v28  ;;  %1047 = vmatmul.msk.bf16.vlgmr.msra.gmra.mxu2 %vm420_vm0, %v790_v27 }
 0x279   : > { %1046 = vmatmul.msk.bf16.vlgmr.msra.gmra.mxu1 %vm420_vm0, %v789_v29 }
 0x284   : > { %v767_v30 = vpop.permute.xlu1 %766 }
 0x285   : > { %v784_v32 = vmul.f32 %v767_v30, %v752_v31 }
 0x287   : > { %v788_v33 = vpack.c.bf16 %v784_v32, %v784_v32 }
 0x289   : > { %1045 = vmatmul.msk.bf16.vlgmr.msra.gmra.mxu0 %vm420_vm0, %v788_v33 }
 0x2ea   : > { %v870_v34 = vpop.f32.mrf.mxu3 }
 0x2eb   : > { %v880_v48 = vsel %vm874_vm4, %v870_v34, 0.0 }
 0x2f2   : > { %v872_v35 = vpop.f32.mrf.mxu3 }
 0x2f6   : > { %v832_v36 = vpop.f32.mrf.mxu1 }
 0x2f7   : > { %v876_v41 = vsel %vm874_vm4, %v832_v36, 0.0 }
 0x2fa   : > { %v851_v37 = vpop.f32.mrf.mxu2 }
 0x2fb   : > { %v878_v45 = vsel %vm874_vm4, %v851_v37, 0.0 }
 0x2fe   : > { %v834_v38 = vpop.f32.mrf.mxu1 }
 0x302   : > { %v853_v39 = vpop.f32.mrf.mxu2 }
 0x306   : > { %v813_v40 = vpop.f32.mrf.mxu0 }
 0x307   : > { %v875_v42 = vsel %vm874_vm4, %v813_v40, 0.0 }
 0x308   : > { %v877_v44 = vadd.f32 %v876_v41, %v875_v42 }
 0x30a   : > { %v879_v46 = vadd.f32 %v878_v45, %v877_v44 }
 0x30c   : > { %v881_v49 = vadd.f32 %v880_v48, %v879_v46 }
 0x30e   : > { %v884_v51 = vadd.f32 %v883_v47, %v881_v49  ;;  %v815_v52 = vpop.f32.mrf.mxu0 }
 0x310   : > { %v889_v53 = vadd.f32 %v1084_v50, %v884_v51 }
 0x312   : > { %v890_v54 = vpack.c.bf16 %v889_v53, %v889_v53 }
 0x314   : > { %892 = vst.msk [vmem:[%s405_s30] sm:$0xf] %vm891_vm5, %v890_v54 }
 0x315 PF: > { %s16_s23 = sadd.s32 1, %s1131_s23   ;;  %s1356_s21 = smov %s1127_s22 }
 0x316   : > { %p13_p5 = scmp.ge.s32.totalorder %s16_s23, 4   ;;  %s1357_s22 = smov %s1359_s24 }
 0x318   :  { %15 = sbr.rel (!%p13_p5) target bundleno = 2 (0x2), region = 95 }

// kernel: gpt_forward.8
= control target key start
LH: loop header
LB: loop body
LE: loop exit
PB: predicated region body
PF: predicated region fallthrough
CT: control target
= control target key end

     0   :  { %11 = vsyncpa [#allocation6], 0  ;;  %s1253_s21 = smov 0   ;;  %s1255_s22 = smov 0   ;;  %s1423_s0 = inlined_call_operand.vmem [shape: bf16[2,8,32], index: 0, kind: input, shape index: {}]   ;;  %s1424_s1 = inlined_call_operand.vmem [shape: bf16[2,4,8,8], index: 1, kind: input, shape index: {}]   ;;  %s1425_s2 = inlined_call_operand.vmem [shape: bf16[2,4,8,8], index: 2, kind: input, shape index: {}]   ;;  %s1426_s3 = inlined_call_operand.vmem [shape: bf16[2,4,8,8], index: 3, kind: input, shape index: {}]   ;;  %s1427_s4 = inlined_call_operand.hbm [shape: bf16[4,8,32], index: 4, kind: input, shape index: {}]   ;;  %s1428_s5 = inlined_call_operand.vmem [shape: f32[1,32], index: 5, kind: input, shape index: {}]   ;;  %s1429_s6 = inlined_call_operand.vmem [shape: bf16[2,8,32], index: 6, kind: output, shape index: {}]  }
   0x1   :  { %s1257_s23 = smov 0  }
   0x2 LB: > { %s1054_s24 = sadd.s32 4294967295, %s1210_s23   ;;  %s36_s25 = sadd.s32 1, %s1206_s22  ;;  %s1210_s23 = sphi %s1257_s23, %s17_s23   ;;  %s1206_s22 = sphi %s1255_s22, %s1431_s22   ;;  %s1202_s21 = sphi %s1253_s21, %s1430_s21  }
   0x3   : > { %p38_p0 = scmp.ge.s32.totalorder %s36_s25, 2  ;;  %p1056_p1 = scmp.ge.s32.totalorder %s1210_s23, 1 }
   0x4   : > { %p231_p2 = scmp.lt.s32.totalorder %s1210_s23, 3  ;;  %p1094_p4 = scmp.eq.s32.totalorder %s1054_s24, 0 }
   0x5   : > { %s1433_s25 = smov (%p38_p0, %s36_s25), 0  ;;  %s242_s28 = sshll.u32 %s1427_s4, 4  ;;  %s243_s28 = int_to_ptr.hbm [resolvable:$true] %s242_s28 }
   0x6   : > { %p232_p3 = pnand %p1056_p1, %p231_p2  ;;  %s1212_s29 = smov [#allocation5]  }
   0x7   : > { %s244_s30 = sshll.u32 %s1212_s29, 4  ;;  %s1213_s7 = smov 64   ;;  %s245_s30 = int_to_ptr.vmem [resolvable:$true] %s244_s30 }
   0x8   : > { %p1090_p5 = pneg %p232_p3  ;;  %s1214_s8 = smov 4  }
   0x9   : > { %314 = sbr.rel (%p232_p3) target bundleno = 794 (0x31a), region = 44 }
   0xa   : > { %p1091_p6 = pnand %p1094_p4, %p1090_p5 }
   0xc   : > { %1093 = dma.hbm_to_vmem [thread:$0]  (!%p1091_p6), %s243_s28, 256, %s245_s30, [#allocation6], %s1213_s7, %s1213_s7, %s1214_s8  }
   0xe   : > { %1197 = dma.done.wait (%p1094_p4), [#allocation6], 256  }
   0xf   : > { %1199 = vsyncadd (%p1094_p4), [#allocation6], 4294967040  ;;  %p377_p7 = scmp.lt.s32.totalorder %s1202_s21, 1  ;;  %vm437_vm0 = vcmask 64512   ;;  %vm428_vm1 = vcmask 7168   ;;  %v535_v13 = vlaneseq  ;;  %v1216_v32 = vmov 0  }
  0x10   : > { %v1215_v12 = vmov -1e+30   ;;  %1127 = vset.pattern.permute.xlu0 %v1216_v32  ;;  %1126 = vset.pattern.permute.xlu2 %v1216_v32  ;;  %v1217_v33 = vmov 0.0   ;;  %vm680_vm3 = vcmask 1043456   ;;  %vm891_vm4 = vcmask 261120  }
  0x11   : > { %s1435_s21 = smov (!%p377_p7, %s1202_s21), 1  ;;  %429 = vst.msk [vmem:[#allocation2] sm:$0xff] %vm428_vm1, %v1215_v12  ;;  %v536_v14 = vshrl.u32 %v535_v13, 7  ;;  %v541_v15 = vand.u32 127, %v535_v13  ;;  %1128 = vset.pattern.permute.xlu1 %v1216_v32  ;;  %vm908_vm5 = vcmask 257024  }
  0x12   : > { %s1278_s9 = sshll.u32 %s1435_s21, 4  ;;  %430 = vst.msk [vmem:[#allocation2 + $0x8] sm:$0xff] %vm428_vm1, %v1215_v12  ;;  %s1061_s19 = sshll.u32 %s1435_s21, 2 }
  0x13   : > { %s401_s12 = scalar_lea.vmem %s1425_s2, %s1278_s9  ;;  %s391_s15 = scalar_lea.vmem %s1424_s1, %s1278_s9  ;;  %431 = vst.msk [vmem:[#allocation2 + $0x10] sm:$0xff] %vm428_vm1, %v1215_v12  ;;  %vm545_vm2 = vcmp.le.s32.totalorder %v541_v15, %v536_v14 }
  0x14   : > { %v450_v0 = vld [vmem:[%s401_s12] sm:$0xf]  ;;  %v452_v1 = vld [vmem:[%s401_s12 + $0x8] sm:$0xf]  ;;  %v451_v4 = vld [vmem:[%s401_s12 + $0x4] sm:$0xf]  ;;  %s413_s18 = scalar_lea.vmem %s1426_s3, %s1278_s9  ;;  %s383_s26 = scalar_lea.vmem %s1423_s0, %s1061_s19 }
  0x15   : > { %v463_v2 = vsel %vm437_vm0, %v450_v0, 0  ;;  %v501_v3 = vsel %vm437_vm0, %v452_v1, 0  ;;  %v482_v5 = vsel %vm437_vm0, %v451_v4, 0  ;;  %v453_v6 = vld [vmem:[%s401_s12 + $0xc] sm:$0xf]  ;;  %432 = vst.msk [vmem:[#allocation2 + $0x18] sm:$0xff] %vm428_vm1, %v1215_v12  ;;  %s422_s30 = scalar_lea.vmem %s1429_s6, %s1061_s19 }
  0x16   : > { %472 = vmatpush.bf16.xpose.msra.mxu0 %v463_v2  ;;  %510 = vmatpush.bf16.xpose.msra.mxu2 %v501_v3  ;;  %v520_v7 = vsel %vm437_vm0, %v453_v6, 0  ;;  %v446_v8 = vld [vmem:[%s391_s15] sm:$0xf]  ;;  %v448_v9 = vld [vmem:[%s391_s15 + $0x8] sm:$0xf]  ;;  %435 = vst.msk [vmem:[#allocation3 + $0x10] sm:$0xff] %vm428_vm1, %v1217_v33 }
  0x17   : > { %491 = vmatpush.bf16.xpose.msra.mxu1 %v482_v5  ;;  %529 = vmatpush.bf16.xpose.msra.mxu3 %v520_v7  ;;  %v447_v10 = vld [vmem:[%s391_s15 + $0x4] sm:$0xf]  ;;  %v449_v11 = vld [vmem:[%s391_s15 + $0xc] sm:$0xf]  ;;  %433 = vst.msk [vmem:[#allocation3] sm:$0xff] %vm428_vm1, %v1217_v33 }
  0x18   : > { %434 = vst.msk [vmem:[#allocation3 + $0x8] sm:$0xff] %vm428_vm1, %v1217_v33  ;;  %v1328_v34 = vld [vmem:[#allocation2] sm:$0xff]  ;;  %v456_v50 = vld [vmem:[%s413_s18 + $0x8] sm:$0xf]  ;;  %v457_v52 = vld [vmem:[%s413_s18 + $0xc] sm:$0xf] }
  0x19   : > { %436 = vst.msk [vmem:[#allocation3 + $0x18] sm:$0xff] %vm428_vm1, %v1217_v33  ;;  %v1340_v40 = vld [vmem:[#allocation2 + $0x8] sm:$0xff]  ;;  %v720_v51 = vsel %vm680_vm3, %v456_v50, 0  ;;  %v739_v53 = vsel %vm680_vm3, %v457_v52, 0  ;;  %v454_v54 = vld [vmem:[%s413_s18] sm:$0xf] }
  0x1a   : > { %438 = vst.msk [vmem:[#allocation4] sm:$0xff] %vm437_vm0, %v1217_v33  ;;  %v1338_v38 = vld [vmem:[#allocation2 + $0x10] sm:$0xff]  ;;  %v682_v55 = vsel %vm680_vm3, %v454_v54, 0  ;;  %v455_v57 = vld [vmem:[%s413_s18 + $0x4] sm:$0xf] }
  0x1b   : > { %439 = vst.msk [vmem:[#allocation4 + $0x8] sm:$0xff] %vm437_vm0, %v1217_v33  ;;  %v701_v59 = vsel %vm680_vm3, %v455_v57, 0 }
  0x1c   : > { %440 = vst.msk [vmem:[#allocation4 + $0x10] sm:$0xff] %vm437_vm0, %v1217_v33  ;;  %v555_v46 = vld [vmem:[#allocation2 + $0x18] sm:$0xff] }
  0x1d   : > { %1069 = vmatmul.msk.bf16.vlgmr.msra.gmra.mxu0 %vm437_vm0, %v446_v8  ;;  %1071 = vmatmul.msk.bf16.vlgmr.msra.gmra.mxu2 %vm437_vm0, %v448_v9  ;;  %441 = vst.msk [vmem:[#allocation4 + $0x18] sm:$0xff] %vm437_vm0, %v1217_v33 }
  0x1e   : > { %1070 = vmatmul.msk.bf16.vlgmr.msra.gmra.mxu1 %vm437_vm0, %v447_v10  ;;  %1072 = vmatmul.msk.bf16.vlgmr.msra.gmra.mxu3 %vm437_vm0, %v449_v11 }
  0x1f   : > { %729 = vmatpush.bf16.msrb.mxu2 %v720_v51  ;;  %748 = vmatpush.bf16.msrb.mxu3 %v739_v53 }
  0x20   : > { %691 = vmatpush.bf16.msrb.mxu0 %v682_v55  ;;  %710 = vmatpush.bf16.msrb.mxu1 %v701_v59 }
  0x23   : > { %v647_v53 = vld [vmem:[#allocation4 + $0x10] sm:$0xff] }
  0x24   : > { %v648_v51 = vld [vmem:[#allocation4 + $0x18] sm:$0xff] }
  0x9a   : > { %v474_v16 = vpop.f32.mrf.mxu0 }
  0x9b   : > { %v1301_v17 = vsel %vm545_vm2, %v474_v16, -1e+30  ;;  %v493_v18 = vpop.f32.mrf.mxu1 }
  0x9c   : > { %v556_v19 = vsel %vm437_vm0, %v1301_v17, -inf  ;;  %v1306_v20 = vsel %vm545_vm2, %v493_v18, -1e+30 }
  0x9d   : > { %557 = vmax.xlane.f32.xlu1 %v556_v19  ;;  %v559_v25 = vsel %vm437_vm0, %v1306_v20, -inf }
  0xa0   : > { %v512_v21 = vpop.f32.mrf.mxu2 }
  0xa1   : > { %v1309_v22 = vsel %vm545_vm2, %v512_v21, -1e+30  ;;  %v531_v26 = vpop.f32.mrf.mxu3 }
  0xa2   : > { %v476_v23 = vpop.f32.mrf.mxu0  ;;  %v562_v24 = vsel %vm437_vm0, %v1309_v22, -inf  ;;  %v1316_v28 = vsel %vm545_vm2, %v531_v26, -1e+30  ;;  %v618_v26 = vld [vmem:[#allocation3 + $0x10] sm:$0xff] }
  0xa3   : > { %563 = vmax.xlane.f32.xlu0 %v562_v24  ;;  %v495_v27 = vpop.f32.mrf.mxu1  ;;  %v565_v29 = vsel %vm437_vm0, %v1316_v28, -inf }
  0xa5   : > { %560 = vmax.xlane.f32.xlu1 %v559_v25 }
  0xa8   : > { %v514_v30 = vpop.f32.mrf.mxu2 }
  0xa9   : > { %v533_v31 = vpop.f32.mrf.mxu3  ;;  %v619_v30 = vld [vmem:[#allocation3 + $0x18] sm:$0xff] }
  0xab   : > { %566 = vmax.xlane.f32.xlu0 %v565_v29 }
 0x110   : > { %v558_v35 = vpop.xlane.xlu1 %557 }
 0x111   : > { %v1331_v36 = vmax.f32 %v1328_v34, %v558_v35  ;;  %v616_v35 = vld [vmem:[#allocation3] sm:$0xff] }
 0x113   : > { %v572_v37 = vsub.f32 %v1328_v34, %v1331_v36  ;;  %762 = vst.msk [vmem:[#allocation2] sm:$0xff] %vm428_vm1, %v1331_v36  ;;  %586 = vperm.xlu0 %1127, %v1331_v36  }
 0x115   : > { %v576_v21 = vmul.f32 1.442695, %v572_v37 }
 0x116   : > { %v564_v39 = vpop.xlane.xlu0 %563 }
 0x117   : > { %v1343_v41 = vmax.f32 %v1338_v38, %v564_v39 }
 0x118   : > { %v561_v42 = vpop.xlane.xlu1 %560 }
 0x119   : > { %v574_v43 = vsub.f32 %v1338_v38, %v1343_v41  ;;  %764 = vst.msk [vmem:[#allocation2 + $0x10] sm:$0xff] %vm428_vm1, %v1343_v41  ;;  %v1350_v44 = vmax.f32 %v1340_v40, %v561_v42  ;;  %596 = vperm.xlu2 %1126, %v1343_v41   ;;  %v617_v42 = vld [vmem:[#allocation3 + $0x8] sm:$0xff] }
 0x11b   : > { %v573_v45 = vsub.f32 %v1340_v40, %v1350_v44  ;;  %763 = vst.msk [vmem:[#allocation2 + $0x8] sm:$0xff] %vm428_vm1, %v1350_v44  ;;  %591 = vperm.xlu1 %1128, %v1350_v44  }
 0x11d   : > { %v578_v23 = vmul.f32 1.442695, %v573_v45 }
 0x11e   : > { %v567_v47 = vpop.xlane.xlu0 %566 }
 0x11f   : > { %v571_v48 = vmax.f32 %v555_v46, %v567_v47 }
 0x121   : > { %v575_v49 = vsub.f32 %v555_v46, %v571_v48  ;;  %765 = vst.msk [vmem:[#allocation2 + $0x18] sm:$0xff] %vm428_vm1, %v571_v48  ;;  %601 = vperm.xlu2 %1126, %v571_v48  }
 0x123   : > { %v582_v15 = vmul.f32 1.442695, %v575_v49 }
 0x173   : > { %v597_v56 = vpop.permute.xlu2 %596 }
 0x174   : > { %v606_v58 = vsub.f32 %v1309_v22, %v597_v56 }
 0x176   : > { %v612_v60 = vmul.f32 1.442695, %v606_v58 }
 0x178   : > { %1130 = vpow2.f32 %v612_v60 }
 0x17b   : > { %v602_v61 = vpop.permute.xlu2 %601 }
 0x17c   : > { %v607_v62 = vsub.f32 %v1316_v28, %v602_v61 }
 0x17e   : > { %v1131_v63 = vpop.eup %1130  ;;  %v614_v0 = vmul.f32 1.442695, %v607_v62 }
 0x17f   : > { %v630_v1 = vsel %vm437_vm0, %v1131_v63, 0.0  ;;  %v675_v2 = vpack.c.bf16 %v1131_v63, %v1131_v63 }
 0x180   : > { %1132 = vpow2.f32 %v614_v0  ;;  %631 = vadd.xlane.f32.xlu2 %v630_v1  ;;  %v645_v0 = vld [vmem:[#allocation4] sm:$0xff] }
 0x181   : > { %1075 = vmatmul.msk.bf16.vlgmr.msrb.gmra.mxu2 %vm437_vm0, %v675_v2 }
 0x185   : > { %v587_v3 = vpop.permute.xlu0 %586 }
 0x186   : > { %v1133_v4 = vpop.eup %1132  ;;  %v604_v5 = vsub.f32 %v1301_v17, %v587_v3 }
 0x187   : > { %v633_v6 = vsel %vm437_vm0, %v1133_v4, 0.0  ;;  %v676_v7 = vpack.c.bf16 %v1133_v4, %v1133_v4 }
 0x188   : > { %v608_v8 = vmul.f32 1.442695, %v604_v5  ;;  %634 = vadd.xlane.f32.xlu1 %v633_v6  ;;  %v646_v6 = vld [vmem:[#allocation4 + $0x8] sm:$0xff] }
 0x189   : > { %1076 = vmatmul.msk.bf16.vlgmr.msrb.gmra.mxu3 %vm437_vm0, %v676_v7 }
 0x18a   : > { %1134 = vpow2.f32 %v608_v8 }
 0x18d   : > { %v592_v9 = vpop.permute.xlu1 %591 }
 0x18e   : > { %v605_v10 = vsub.f32 %v1306_v20, %v592_v9  ;;  %v580_v20 = vmul.f32 1.442695, %v574_v43 }
 0x190   : > { %v1135_v11 = vpop.eup %1134  ;;  %v610_v12 = vmul.f32 1.442695, %v605_v10  ;;  %v812_v10 = vld [vmem:[#allocation5 + $0xc] sm:$0xf] }
 0x191   : > { %v624_v13 = vsel %vm437_vm0, %v1135_v11, 0.0  ;;  %v673_v14 = vpack.c.bf16 %v1135_v11, %v1135_v11  ;;  %v876_v11 = vsel %vm680_vm3, %v812_v10, 0 }
 0x192   : > { %1136 = vpow2.f32 %v610_v12  ;;  %625 = vadd.xlane.f32.xlu0 %v624_v13  ;;  %885 = vmatpush.bf16.msra.mxu3 %v876_v11  ;;  %v811_v12 = vld [vmem:[#allocation5 + $0x8] sm:$0xf] }
 0x193   : > { %1073 = vmatmul.msk.bf16.vlgmr.msrb.gmra.mxu0 %vm437_vm0, %v673_v14  ;;  %1138 = vpow2.f32 %v582_v15  ;;  %v857_v13 = vsel %vm680_vm3, %v811_v12, 0  ;;  %v810_v14 = vld [vmem:[#allocation5 + $0x4] sm:$0xf] }
 0x194   : > { %1140 = vpow2.f32 %v580_v20  ;;  %866 = vmatpush.bf16.msra.mxu2 %v857_v13  ;;  %v838_v15 = vsel %vm680_vm3, %v810_v14, 0 }
 0x195   : > { %1142 = vpow2.f32 %v576_v21  ;;  %847 = vmatpush.bf16.msra.mxu1 %v838_v15 }
 0x196   : > { %1144 = vpow2.f32 %v578_v23 }
 0x198   : > { %v1137_v16 = vpop.eup %1136 }
 0x199   : > { %v627_v17 = vsel %vm437_vm0, %v1137_v16, 0.0  ;;  %v674_v18 = vpack.c.bf16 %v1137_v16, %v1137_v16  ;;  %v1139_v19 = vpop.eup %1138  ;;  %v809_v16 = vld [vmem:[#allocation5] sm:$0xf] }
 0x19a   : > { %628 = vadd.xlane.f32.xlu2 %v627_v17  ;;  %v1141_v22 = vpop.eup %1140  ;;  %v623_v31 = vmul.f32 %v1139_v19, %v619_v30  ;;  %v819_v17 = vsel %vm680_vm3, %v809_v16, 0 }
 0x19b   : > { %1074 = vmatmul.msk.bf16.vlgmr.msrb.gmra.mxu1 %vm437_vm0, %v674_v18  ;;  %v1143_v24 = vpop.eup %1142  ;;  %v622_v27 = vmul.f32 %v1141_v22, %v618_v26  ;;  %828 = vmatpush.bf16.msra.mxu0 %v819_v17 }
 0x19c   : > { %v1145_v25 = vpop.eup %1144  ;;  %v620_v38 = vmul.f32 %v1143_v24, %v616_v35 }
 0x19d   : > { %v621_v46 = vmul.f32 %v1145_v25, %v617_v42 }
 0x1a1   : > { %666 = vperm.xlu1 %1128, %v1139_v19  }
 0x1b2   : > { %661 = vperm.xlu2 %1126, %v1141_v22  }
 0x1ba   : > { %651 = vperm.xlu2 %1126, %v1143_v24  }
 0x1c2   : > { %656 = vperm.xlu2 %1126, %v1145_v25  }
 0x1f3   : > { %v632_v28 = vpop.xlane.xlu2 %631 }
 0x1f4   : > { %v638_v29 = vadd.f32 %v632_v28, %v622_v27 }
 0x1f6   : > { %643 = vst.msk [vmem:[#allocation3 + $0x10] sm:$0xff] %vm428_vm1, %v638_v29 }
 0x1fb   : > { %v635_v32 = vpop.xlane.xlu1 %634 }
 0x1fc   : > { %v639_v33 = vadd.f32 %v635_v32, %v623_v31 }
 0x1fd   : > { %v775_v34 = vld [vmem:[#allocation3 + $0x10] sm:$0xff] }
 0x1fe   : > { %644 = vst.msk [vmem:[#allocation3 + $0x18] sm:$0xff] %vm428_vm1, %v639_v33  ;;  %1146 = vrcp.f32 %v775_v34 }
 0x204   : > { %v1147_v36 = vpop.eup %1146  ;;  %v731_v37 = vpop.f32.mrf.mxu2 }
 0x205   : > { %793 = vperm.xlu0 %1127, %v1147_v36   ;;  %v626_v39 = vpop.xlane.xlu0 %625  ;;  %v776_v40 = vld [vmem:[#allocation3 + $0x18] sm:$0xff] }
 0x206   : > { %v636_v41 = vadd.f32 %v626_v39, %v620_v38  ;;  %1148 = vrcp.f32 %v776_v40 }
 0x208   : > { %641 = vst.msk [vmem:[#allocation3] sm:$0xff] %vm428_vm1, %v636_v41 }
 0x20c   : > { %v1149_v43 = vpop.eup %1148  ;;  %v733_v44 = vpop.f32.mrf.mxu2 }
 0x20d   : > { %v750_v45 = vpop.f32.mrf.mxu3  ;;  %v629_v47 = vpop.xlane.xlu2 %628  ;;  %798 = vperm.xlu2 %1126, %v1149_v43   ;;  %v899_v43 = vld [vmem:[%s383_s26] sm:$0xf] }
 0x20e   : > { %v637_v48 = vadd.f32 %v629_v47, %v621_v46  ;;  %v900_v47 = vunpack.c.l.bf16 %v899_v43 }
 0x20f   : > { %v773_v49 = vld [vmem:[#allocation3] sm:$0xff] }
 0x210   : > { %642 = vst.msk [vmem:[#allocation3 + $0x8] sm:$0xff] %vm428_vm1, %v637_v48  ;;  %v693_v50 = vpop.f32.mrf.mxu0  ;;  %1150 = vrcp.f32 %v773_v49 }
 0x213   : > { %v667_v52 = vpop.permute.xlu1 %666 }
 0x214   : > { %v672_v54 = vmul.f32 %v667_v52, %v648_v51 }
 0x215   : > { %v752_v55 = vpop.f32.mrf.mxu3  ;;  %v662_v56 = vpop.permute.xlu2 %661 }
 0x216   : > { %v1151_v57 = vpop.eup %1150  ;;  %v757_v58 = vadd.f32 %v750_v45, %v672_v54  ;;  %v671_v59 = vmul.f32 %v662_v56, %v647_v53 }
 0x217   : > { %783 = vperm.xlu1 %1128, %v1151_v57   ;;  %v774_v60 = vld [vmem:[#allocation3 + $0x8] sm:$0xff] }
 0x218   : > { %761 = vst.msk [vmem:[#allocation4 + $0x18] sm:$0xff] %vm437_vm0, %v757_v58  ;;  %v756_v61 = vadd.f32 %v731_v37, %v671_v59  ;;  %v695_v62 = vpop.f32.mrf.mxu0  ;;  %v712_v63 = vpop.f32.mrf.mxu1  ;;  %1152 = vrcp.f32 %v774_v60 }
 0x21a   : > { %760 = vst.msk [vmem:[#allocation4 + $0x10] sm:$0xff] %vm437_vm0, %v756_v61 }
 0x21d   : > { %v652_v1 = vpop.permute.xlu2 %651 }
 0x21e   : > { %v1153_v2 = vpop.eup %1152  ;;  %v669_v3 = vmul.f32 %v652_v1, %v645_v0 }
 0x21f   : > { %788 = vperm.xlu2 %1126, %v1153_v2   ;;  %v772_v18 = vld [vmem:[#allocation4 + $0x18] sm:$0xff] }
 0x220   : > { %v754_v4 = vadd.f32 %v693_v50, %v669_v3  ;;  %v714_v5 = vpop.f32.mrf.mxu1  ;;  %v1129_v50 = vld [vmem:[%s1428_s5] ss:$0 sm:$0xff] }
 0x221   : > { %v771_v22 = vld [vmem:[#allocation4 + $0x10] sm:$0xff] }
 0x222   : > { %758 = vst.msk [vmem:[#allocation4] sm:$0xff] %vm437_vm0, %v754_v4 }
 0x225   : > { %v657_v7 = vpop.permute.xlu2 %656 }
 0x226   : > { %v670_v8 = vmul.f32 %v657_v7, %v646_v6 }
 0x228   : > { %v755_v9 = vadd.f32 %v712_v63, %v670_v8 }
 0x229   : > { %v769_v30 = vld [vmem:[#allocation4] sm:$0xff] }
 0x22a   : > { %759 = vst.msk [vmem:[#allocation4 + $0x8] sm:$0xff] %vm437_vm0, %v755_v9 }
 0x231   : > { %v770_v25 = vld [vmem:[#allocation4 + $0x8] sm:$0xff] }
 0x267   : > { %v799_v19 = vpop.permute.xlu2 %798 }
 0x268   : > { %v804_v20 = vmul.f32 %v799_v19, %v772_v18 }
 0x26a   : > { %v808_v21 = vpack.c.bf16 %v804_v20, %v804_v20 }
 0x26c   : > { %1080 = vmatmul.msk.bf16.vlgmr.msra.gmra.mxu3 %vm437_vm0, %v808_v21 }
 0x277   : > { %v794_v23 = vpop.permute.xlu0 %793 }
 0x278   : > { %v803_v24 = vmul.f32 %v794_v23, %v771_v22 }
 0x279   : > { %v789_v26 = vpop.permute.xlu2 %788 }
 0x27a   : > { %v807_v27 = vpack.c.bf16 %v803_v24, %v803_v24  ;;  %v802_v28 = vmul.f32 %v789_v26, %v770_v25 }
 0x27c   : > { %v806_v29 = vpack.c.bf16 %v802_v28, %v802_v28  ;;  %1079 = vmatmul.msk.bf16.vlgmr.msra.gmra.mxu2 %vm437_vm0, %v807_v27 }
 0x27e   : > { %1078 = vmatmul.msk.bf16.vlgmr.msra.gmra.mxu1 %vm437_vm0, %v806_v29 }
 0x289   : > { %v784_v31 = vpop.permute.xlu1 %783 }
 0x28a   : > { %v801_v32 = vmul.f32 %v784_v31, %v769_v30 }
 0x28c   : > { %v805_v33 = vpack.c.bf16 %v801_v32, %v801_v32 }
 0x28e   : > { %1077 = vmatmul.msk.bf16.vlgmr.msra.gmra.mxu0 %vm437_vm0, %v805_v33 }
 0x2ef   : > { %v887_v34 = vpop.f32.mrf.mxu3 }
 0x2f0   : > { %v897_v48 = vsel %vm891_vm4, %v887_v34, 0.0 }
 0x2f7   : > { %v889_v35 = vpop.f32.mrf.mxu3 }
 0x2fb   : > { %v849_v36 = vpop.f32.mrf.mxu1 }
 0x2fc   : > { %v893_v41 = vsel %vm891_vm4, %v849_v36, 0.0 }
 0x2ff   : > { %v868_v37 = vpop.f32.mrf.mxu2 }
 0x300   : > { %v895_v45 = vsel %vm891_vm4, %v868_v37, 0.0 }
 0x303   : > { %v851_v38 = vpop.f32.mrf.mxu1 }
 0x307   : > { %v870_v39 = vpop.f32.mrf.mxu2 }
 0x30b   : > { %v830_v40 = vpop.f32.mrf.mxu0 }
 0x30c   : > { %v892_v42 = vsel %vm891_vm4, %v830_v40, 0.0 }
 0x30d   : > { %v894_v44 = vadd.f32 %v893_v41, %v892_v42 }
 0x30f   : > { %v896_v46 = vadd.f32 %v895_v45, %v894_v44 }
 0x311   : > { %v898_v49 = vadd.f32 %v897_v48, %v896_v46 }
 0x313   : > { %v901_v51 = vadd.f32 %v900_v47, %v898_v49  ;;  %v832_v52 = vpop.f32.mrf.mxu0 }
 0x315   : > { %v906_v53 = vadd.f32 %v1129_v50, %v901_v51 }
 0x317   : > { %v907_v54 = vpack.c.bf16 %v906_v53, %v906_v53 }
 0x319   : > { %909 = vst.msk [vmem:[%s422_s30] sm:$0xf] %vm908_vm5, %v907_v54 }
 0x31a PF: > { %s17_s23 = sadd.s32 1, %s1210_s23   ;;  %s1430_s21 = smov %s1206_s22 }
 0x31b   : > { %p14_p8 = scmp.ge.s32.totalorder %s17_s23, 4   ;;  %s1431_s22 = smov %s1433_s25 }
 0x31d   :  { %16 = sbr.rel (!%p14_p8) target bundleno = 2 (0x2), region = 100 }
 0x322   :  { %935 = vsyncpa [#allocation6], 1 }
 0x323   :  { %937 = vsyncpa [#allocation6 + $0x1], 1 }

// kernel: gpt_forward.13
= control target key start
LH: loop header
LB: loop body
LE: loop exit
PB: predicated region body
PF: predicated region fallthrough
CT: control target
= control target key end

     0   :  { %vm24_vm0 = vcmask 261120   ;;  %v157_v5 = vmov 32.0   ;;  %s206_s0 = inlined_call_operand.vmem [shape: bf16[16,32], index: 0, kind: input, shape index: {}]   ;;  %s207_s1 = inlined_call_operand.vmem [shape: f32[1,32], index: 1, kind: input, shape index: {}]   ;;  %s208_s2 = inlined_call_operand.vmem [shape: f32[1,32], index: 2, kind: input, shape index: {}]   ;;  %s209_s3 = inlined_call_operand.vmem [shape: bf16[32,128], index: 3, kind: input, shape index: {}]   ;;  %s210_s4 = inlined_call_operand.vmem [shape: bf16[16,128], index: 4, kind: output, shape index: {}]  }
   0x1   :  { %v140_v0 = vld [vmem:[%s206_s0] sm:$0xff]   ;;  %151 = vrcp.f32 %v157_v5  ;;  %v138_v22 = vld [vmem:[%s209_s3 + $0x8] sm:$0xff] }
   0x2   :  { %v141_v1 = vunpack.c.l.bf16 %v140_v0  ;;  %v142_v3 = vunpack.c.h.bf16 %v140_v0  ;;  %112 = vmatpush.bf16.msra.mxu0 %v138_v22  ;;  %v137_v24 = vld [vmem:[%s209_s3] sm:$0xff] }
   0x3   :  { %v149_v43 = vld [vmem:[%s207_s1] ss:$0 sm:$0xff] }
   0x4   :  { %v25_v2 = vsel %vm24_vm0, %v141_v1, 0.0  ;;  %v28_v4 = vsel %vm24_vm0, %v142_v3, 0.0  ;;  %v150_v48 = vld [vmem:[%s208_s2] ss:$0 sm:$0xff] }
   0x5   :  { %26 = vadd.xlane.f32.xlu0 %v25_v2 }
   0x6   :  { %113 = vmatpush.bf16.msra.mxu0 %v137_v24 }
   0x7   :  { %v152_v6 = vpop.eup %151 }
   0x8   :  { %v32_v7 = vmul.f32 32.0, %v152_v6  ;;  %vm36_vm1 = vweird.f32 %v152_v6 }
   0xa   :  { %v33_v8 = vsub.f32 1.0, %v32_v7 }
   0xc   :  { %v34_v9 = vmul.f32 %v152_v6, %v33_v8 }
   0xd   :  { %29 = vadd.xlane.f32.xlu0 %v28_v4 }
   0xe   :  { %v35_v10 = vadd.f32 %v152_v6, %v34_v9 }
  0x10   :  { %v37_v11 = vsel %vm36_vm1, %v152_v6, %v35_v10 }
  0x78   :  { %v27_v12 = vpop.xlane.xlu0 %26 }
  0x79   :  { %v38_v13 = vmul.f32 %v37_v11, %v27_v12 }
  0x7b   :  { %v40_v14 = vsub.f32 %v141_v1, %v38_v13 }
  0x7d   :  { %v42_v15 = vmul.f32 %v40_v14, %v40_v14 }
  0x7f   :  { %v44_v16 = vsel %vm24_vm0, %v42_v15, 0.0 }
  0x80   :  { %45 = vadd.xlane.f32.xlu1 %v44_v16  ;;  %v30_v17 = vpop.xlane.xlu0 %29 }
  0x81   :  { %v39_v18 = vmul.f32 %v37_v11, %v30_v17 }
  0x83   :  { %v41_v19 = vsub.f32 %v142_v3, %v39_v18 }
  0x85   :  { %v43_v20 = vmul.f32 %v41_v19, %v41_v19 }
  0x87   :  { %v47_v21 = vsel %vm24_vm0, %v43_v20, 0.0 }
  0x88   :  { %48 = vadd.xlane.f32.xlu1 %v47_v21 }
  0xf3   :  { %v46_v23 = vpop.xlane.xlu1 %45 }
  0xf4   :  { %v50_v25 = vmul.f32 %v46_v23, %v37_v11 }
  0xf6   :  { %v52_v26 = vadd.f32 1e-05, %v50_v25 }
  0xf8   :  { %153 = vrsqrt.f32 %v52_v26  ;;  %vm60_vm3 = vweird.f32 %v52_v26 }
  0xfb   :  { %v49_v27 = vpop.xlane.xlu1 %48 }
  0xfc   :  { %v51_v28 = vmul.f32 %v49_v27, %v37_v11 }
  0xfe   :  { %v154_v29 = vpop.eup %153  ;;  %v53_v30 = vadd.f32 1e-05, %v51_v28 }
  0xff   :  { %v55_v31 = vmul.f32 %v154_v29, %v52_v26  ;;  %vm61_vm2 = vweird.f32 %v154_v29 }
 0x100   :  { %155 = vrsqrt.f32 %v53_v30  ;;  %vm62_vm4 = vmor %vm60_vm3, %vm61_vm2  ;;  %vm70_vm6 = vweird.f32 %v53_v30 }
 0x101   :  { %v56_v32 = vmul.f32 %v154_v29, %v55_v31 }
 0x103   :  { %v57_v33 = vmul.f32 0.5, %v56_v32 }
 0x105   :  { %v58_v34 = vsub.f32 1.5, %v57_v33 }
 0x106   :  { %v156_v35 = vpop.eup %155 }
 0x107   :  { %v59_v36 = vmul.f32 %v154_v29, %v58_v34  ;;  %v65_v37 = vmul.f32 %v156_v35, %v53_v30  ;;  %vm71_vm5 = vweird.f32 %v156_v35 }
 0x108   :  { %vm72_vm7 = vmor %vm70_vm6, %vm71_vm5 }
 0x109   :  { %v66_v38 = vmul.f32 %v156_v35, %v65_v37  ;;  %v63_v39 = vsel %vm62_vm4, %v154_v29, %v59_v36 }
 0x10a   :  { %v74_v42 = vmul.f32 %v63_v39, %v40_v14 }
 0x10b   :  { %v67_v40 = vmul.f32 0.5, %v66_v38 }
 0x10c   :  { %v79_v47 = vmul.f32 %v149_v43, %v74_v42 }
 0x10d   :  { %v68_v41 = vsub.f32 1.5, %v67_v40 }
 0x10e   :  { %v84_v50 = vadd.f32 %v150_v48, %v79_v47 }
 0x10f   :  { %v69_v44 = vmul.f32 %v156_v35, %v68_v41 }
 0x111   :  { %v73_v45 = vsel %vm72_vm7, %v156_v35, %v69_v44 }
 0x112   :  { %v75_v46 = vmul.f32 %v73_v45, %v41_v19 }
 0x114   :  { %v80_v49 = vmul.f32 %v149_v43, %v75_v46 }
 0x116   :  { %v85_v51 = vadd.f32 %v150_v48, %v80_v49 }
 0x118   :  { %v86_v52 = vpack.c.bf16 %v85_v51, %v84_v50 }
 0x11a   :  { %136 = vmatmul.msk.bf16.vlgmr.msra.gmra.mxu0 %vm24_vm0, %v86_v52 }
 0x197   :  { %v115_v53 = vpop.f32.mrf.mxu0 }
 0x19f   :  { %v117_v54 = vpop.f32.mrf.mxu0 }
 0x1a0   :  { %v146_v55 = vpack.c.bf16 %v117_v54, %v115_v53 }
 0x1a2   :  { %147 = vst [vmem:[%s210_s4] sm:$0xff] %v146_v55  }

// kernel: gpt_forward.12
= control target key start
LH: loop header
LB: loop body
LE: loop exit
PB: predicated region body
PF: predicated region fallthrough
CT: control target
= control target key end

     0   :  { %s714_s24 = smov 0   ;;  %s716_s25 = smov 0   ;;  %s804_s0 = inlined_call_operand.vmem [shape: bf16[2,8,32], index: 0, kind: input, shape index: {}]   ;;  %s805_s1 = inlined_call_operand.vmem [shape: f32[1,32], index: 1, kind: input, shape index: {}]   ;;  %s806_s2 = inlined_call_operand.vmem [shape: f32[1,32], index: 2, kind: input, shape index: {}, may-alias: {2,6}]   ;;  %s807_s3 = inlined_call_operand.vmem [shape: bf16[32,128], index: 3, kind: input, shape index: {}]   ;;  %s808_s4 = inlined_call_operand.vmem [shape: f32[1,128], index: 4, kind: input, shape index: {}]   ;;  %s809_s5 = inlined_call_operand.vmem [shape: bf16[128,32], index: 5, kind: input, shape index: {}]   ;;  %s810_s6 = inlined_call_operand.vmem [shape: f32[1,32], index: 6, kind: input, shape index: {}, may-alias: {2,6}]   ;;  %s811_s7 = inlined_call_operand.vmem [shape: bf16[2,8,32], index: 7, kind: output, shape index: {}]  }
   0x1   :  { %s718_s26 = smov 0  }
   0x2 LB: > { %s29_s27 = sadd.s32 1, %s667_s25  ;;  %p558_p0 = scmp.ge.s32.totalorder %s671_s26, 1  ;;  %s671_s26 = sphi %s718_s26, %s17_s26   ;;  %s667_s25 = sphi %s716_s25, %s813_s25   ;;  %s663_s24 = sphi %s714_s24, %s812_s24  }
   0x3   : > { %p31_p1 = scmp.ge.s32.totalorder %s29_s27, 2  ;;  %p255_p2 = scmp.lt.s32.totalorder %s671_s26, 3 }
   0x5   : > { %s815_s27 = smov (%p31_p1, %s29_s27), 0  ;;  %p256_p3 = pnand %p558_p0, %p255_p2 }
   0x6   : > { %p291_p4 = scmp.lt.s32.totalorder (!%p256_p3), %s663_s24, 1 }
   0x7   : > { %259 = sbr.rel (%p256_p3) target bundleno = 573 (0x23d), region = 48 }
   0xc   : > { %s817_s24 = smov (!%p291_p4, %s663_s24), 1  ;;  %vm310_vm0 = vcmask 261120   ;;  %v673_v3 = vmov 32.0   ;;  %v605_v15 = vld [vmem:[%s807_s3 + $0x8] sm:$0xff]  ;;  %v604_v16 = vld [vmem:[%s807_s3] sm:$0xff]  ;;  %v613_v17 = vld [vmem:[%s809_s5 + $0x38] sm:$0xff] }
   0xd   : > { %s559_s28 = sshll.u32 %s817_s24, 2  ;;  %643 = vrcp.f32 %v673_v3  ;;  %378 = vmatpush.bf16.msra.mxu0 %v605_v15  ;;  %463 = vmatpush.bf16.msra.mxu1 %v613_v17  ;;  %v612_v20 = vld [vmem:[%s809_s5 + $0x30] sm:$0xff]  ;;  %v639_v28 = vld [vmem:[%s805_s1] ss:$0 sm:$0xff]  ;;  %v611_v35 = vld [vmem:[%s809_s5 + $0x28] sm:$0xff]  ;;  %vm478_vm5 = vcmask 257024  }
   0xe   : > { %s297_s8 = scalar_lea.vmem %s804_s0, %s559_s28  ;;  %v640_v31 = vld [vmem:[%s806_s2] ss:$0 sm:$0xff]  ;;  %v609_v37 = vld [vmem:[%s809_s5 + $0x18] sm:$0xff]  ;;  %v608_v38 = vld [vmem:[%s809_s5 + $0x10] sm:$0xff]  ;;  %s304_s21 = scalar_lea.vmem %s811_s7, %s559_s28 }
   0xf   : > { %v306_v0 = vld [vmem:[%s297_s8] sm:$0xf]  ;;  %v607_v39 = vld [vmem:[%s809_s5 + $0x8] sm:$0xff] }
  0x10   : > { %v740_v1 = vunpack.c.l.bf16 %v306_v0  ;;  %v610_v36 = vld [vmem:[%s809_s5 + $0x20] sm:$0xff] }
  0x11   : > { %379 = vmatpush.bf16.msra.mxu0 %v604_v16  ;;  %464 = vmatpush.bf16.msra.mxu1 %v612_v20  ;;  %v606_v40 = vld [vmem:[%s809_s5] sm:$0xff] }
  0x12   : > { %v311_v2 = vsel %vm310_vm0, %v740_v1, 0.0  ;;  %v641_v41 = vld [vmem:[%s808_s4] ss:$0 sm:$0xff] }
  0x13   : > { %312 = vadd.xlane.f32.xlu0 %v311_v2  ;;  %v644_v4 = vpop.eup %643  ;;  %v642_v55 = vld [vmem:[%s810_s6] ss:$0 sm:$0xff] }
  0x14   : > { %v315_v5 = vmul.f32 32.0, %v644_v4  ;;  %vm319_vm1 = vweird.f32 %v644_v4 }
  0x15   : > { %465 = vmatpush.bf16.msra.mxu1 %v611_v35 }
  0x16   : > { %v316_v6 = vsub.f32 1.0, %v315_v5 }
  0x18   : > { %v317_v7 = vmul.f32 %v644_v4, %v316_v6 }
  0x19   : > { %466 = vmatpush.bf16.msra.mxu1 %v610_v36 }
  0x1a   : > { %v318_v8 = vadd.f32 %v644_v4, %v317_v7 }
  0x1c   : > { %v320_v9 = vsel %vm319_vm1, %v644_v4, %v318_v8 }
  0x1d   : > { %467 = vmatpush.bf16.msra.mxu1 %v609_v37 }
  0x21   : > { %468 = vmatpush.bf16.msra.mxu1 %v608_v38 }
  0x25   : > { %469 = vmatpush.bf16.msra.mxu1 %v607_v39 }
  0x29   : > { %470 = vmatpush.bf16.msra.mxu1 %v606_v40 }
  0x86   : > { %v313_v10 = vpop.xlane.xlu0 %312 }
  0x87   : > { %v321_v11 = vmul.f32 %v320_v9, %v313_v10 }
  0x89   : > { %v322_v12 = vsub.f32 %v740_v1, %v321_v11 }
  0x8b   : > { %v323_v13 = vmul.f32 %v322_v12, %v322_v12 }
  0x8d   : > { %v324_v14 = vsel %vm310_vm0, %v323_v13, 0.0 }
  0x8e   : > { %325 = vadd.xlane.f32.xlu0 %v324_v14 }
 0x101   : > { %v326_v18 = vpop.xlane.xlu0 %325 }
 0x102   : > { %v327_v19 = vmul.f32 %v326_v18, %v320_v9 }
 0x104   : > { %v328_v21 = vadd.f32 1e-05, %v327_v19 }
 0x106   : > { %645 = vrsqrt.f32 %v328_v21  ;;  %vm335_vm3 = vweird.f32 %v328_v21 }
 0x10c   : > { %v646_v22 = vpop.eup %645 }
 0x10d   : > { %v330_v23 = vmul.f32 %v646_v22, %v328_v21  ;;  %vm336_vm2 = vweird.f32 %v646_v22 }
 0x10e   : > { %vm337_vm4 = vmor %vm335_vm3, %vm336_vm2 }
 0x10f   : > { %v331_v24 = vmul.f32 %v646_v22, %v330_v23 }
 0x111   : > { %v332_v25 = vmul.f32 0.5, %v331_v24 }
 0x113   : > { %v333_v26 = vsub.f32 1.5, %v332_v25 }
 0x115   : > { %v334_v27 = vmul.f32 %v646_v22, %v333_v26 }
 0x117   : > { %v338_v29 = vsel %vm337_vm4, %v646_v22, %v334_v27 }
 0x118   : > { %v339_v30 = vmul.f32 %v338_v29, %v322_v12 }
 0x11a   : > { %v343_v32 = vmul.f32 %v639_v28, %v339_v30 }
 0x11c   : > { %v347_v33 = vadd.f32 %v640_v31, %v343_v32 }
 0x11e   : > { %v348_v34 = vpack.c.bf16 %v347_v33, %v347_v33 }
 0x120   : > { %569 = vmatmul.msk.bf16.vlgmr.msra.gmra.mxu0 %vm310_vm0, %v348_v34 }
 0x19d   : > { %v381_v42 = vpop.f32.mrf.mxu0 }
 0x19e   : > { %v382_v43 = vadd.f32 %v641_v41, %v381_v42 }
 0x1a0   : > { %v386_v44 = vmul.f32 0.044715, %v382_v43  ;;  %v385_v51 = vmul.f32 0.5, %v382_v43 }
 0x1a2   : > { %v387_v45 = vmul.f32 %v386_v44, %v382_v43 }
 0x1a4   : > { %v388_v46 = vmul.f32 %v387_v45, %v382_v43 }
 0x1a5   : > { %v383_v47 = vpop.f32.mrf.mxu0 }
 0x1a6   : > { %v389_v48 = vadd.f32 %v388_v46, %v382_v43 }
 0x1a8   : > { %v390_v49 = vmul.f32 0.7978845, %v389_v48 }
 0x1aa   : > { %647 = vtanh.f32 %v390_v49 }
 0x1b0   : > { %v648_v50 = vpop.eup %647 }
 0x1b1   : > { %v392_v52 = vadd.f32 1.0, %v648_v50 }
 0x1b3   : > { %v393_v53 = vmul.f32 %v392_v52, %v385_v51 }
 0x1b5   : > { %v394_v54 = vpack.c.bf16 %v393_v53, %v393_v53 }
 0x1b7   : > { %471 = vmatmul.bf16.vlgmr.msra.gmra.mxu1 %v394_v54 }
 0x234   : > { %v472_v56 = vpop.f32.mrf.mxu1 }
 0x235   : > { %v473_v57 = vadd.f32 %v642_v55, %v472_v56 }
 0x237   : > { %v476_v58 = vadd.f32 %v473_v57, %v740_v1 }
 0x239   : > { %v477_v59 = vpack.c.bf16 %v476_v58, %v476_v58 }
 0x23b   : > { %479 = vst.msk [vmem:[%s304_s21] sm:$0xf] %vm478_vm5, %v477_v59 }
 0x23c   : > { %v474_v60 = vpop.f32.mrf.mxu1 }
 0x23d PF: > { %s17_s26 = sadd.s32 1, %s671_s26   ;;  %s812_s24 = smov %s667_s25 }
 0x23e   : > { %p14_p5 = scmp.ge.s32.totalorder %s17_s26, 4   ;;  %s813_s25 = smov %s815_s27 }
 0x240   :  { %16 = sbr.rel (!%p14_p5) target bundleno = 2 (0x2), region = 78 }

</bundles_post_ra>
